<compile_context>
chip_gen: v5e
topology: v5e:2x2
jax: 0.10.0
libtpu: 0.0.40
codegen_flags: <defaults>
</compile_context>

<pallas_src>
import functools
import math

import numpy as np

import jax
import jax.numpy as jnp
from jax.experimental import pallas as pl
from jax.experimental.pallas import tpu as pltpu


def _round_up(x, m):
    return ((x + m - 1) // m) * m


# ----------------------------------------------------------------------------
# Static layout of the three packed parameter slabs
# ----------------------------------------------------------------------------
def _build_layout(latent_dim, hidden_dims, time_emb_dim, num_classes):
    n = time_emb_dim
    hdims = list(hidden_dims)
    n_layers = len(hdims) - 1

    qcs = _round_up(max(hdims[:-1]), 128)          # 128-aligned q/k/v column stride
    wide_cols = 3 * qcs
    narrow_cols = _round_up(max([2 * n, n, latent_dim] + hdims), 128)
    vec_cols = max(wide_cols, narrow_cols)

    Wmap, Qmap, Vmap = {}, {}, {}
    cnt = {"w": 0, "q": 0, "v": 0}

    def add_w(name, rows, cols):
        Wmap[name] = (cnt["w"], rows, cols)
        cnt["w"] += _round_up(rows, 8)

    def add_q(name, rows, cols):
        Qmap[name] = (cnt["q"], rows, cols)
        cnt["q"] += _round_up(rows, 8)

    def add_v(name, cols):
        Vmap[name] = (cnt["v"], 1, cols)
        cnt["v"] += 1

    add_w("te_w1", n, 2 * n)
    add_w("te_w2", 2 * n, n)
    add_w("ce_w1", n, n)
    add_w("ce_w2", n, n)
    add_w("ce_table", _round_up(num_classes, 8), n)
    add_w("lp_w", latent_dim, hdims[0])
    for i in range(n_layers):
        d, dn = hdims[i], hdims[i + 1]
        add_w(f"tp_w{i}", n, d)
        add_w(f"res_w{i}", d, d)
        add_q(f"wqkv{i}", d, wide_cols)
        add_w(f"wo{i}", d, d)
        add_w(f"down_w{i}", d, dn)
    add_w("ftc_w", 2 * n, hdims[-1])
    add_w("fin_w", hdims[-1], latent_dim)

    add_v("freq", n)
    add_v("phase", n)
    add_v("te_b1", 2 * n)
    add_v("te_b2", n)
    add_v("ce_b1", n)
    add_v("ce_b2", n)
    add_v("lp_b", hdims[0])
    for i in range(n_layers):
        d, dn = hdims[i], hdims[i + 1]
        for nm in ("tp_b2", "res_b", "res_ln_g", "res_ln_b", "ln_g", "ln_b"):
            add_v(f"{nm}{i}", d)
        add_v(f"bqkv{i}", wide_cols)
        add_v(f"bo{i}", d)
        add_v(f"down_b{i}", dn)
    add_v("ftc_b", hdims[-1])
    add_v("fn_g", hdims[-1])
    add_v("fn_b", hdims[-1])
    add_v("fin_b", latent_dim)

    return {
        "W": Wmap, "Q": Qmap, "V": Vmap, "qcs": qcs,
        "w_shape": (_round_up(cnt["w"], 8), narrow_cols),
        "q_shape": (_round_up(cnt["q"], 8), wide_cols),
        "v_shape": (_round_up(cnt["v"], 8), vec_cols),
    }


# ----------------------------------------------------------------------------
# Kernel
# ----------------------------------------------------------------------------
def _make_unet_kernel(*, batch, latent_dim, hidden_dims, time_emb_dim,
                      num_classes, num_heads, res_scale, layout):
    n_layers = len(hidden_dims) - 1
    f32 = jnp.float32
    Wm, Qm, Vm, qcs = layout["W"], layout["Q"], layout["V"], layout["qcs"]
    inv_blend = 1.0 / (1.0 + res_scale)

    def kernel(x_ref, t_ref, c_ref, w_ref, wqkv_ref, vec_ref, out_ref):
        def wmat(name):                    # (in, out) weight slice from narrow slab
            off, rows, cols = Wm[name]
            return w_ref[off:off + rows, 0:cols]

        def qkvmat(name):                  # fused q|k|v weight slice from wide slab
            off, rows, cols = Qm[name]
            return wqkv_ref[off:off + rows, 0:cols]

        def vrow(name):                    # (1, d) bias / LN / constant row
            off, _, cols = Vm[name]
            return vec_ref[off:off + 1, 0:cols]

        def matmul(a, b):                  # a:(m,k) @ b:(k,n)
            return jax.lax.dot_general(a, b, (((1,), (0,)), ((), ())),
                                       preferred_element_type=f32)

        def matmul_t(a, b):                # a:(m,k) @ b:(n,k)^T  (no transpose op)
            return jax.lax.dot_general(a, b, (((1,), (1,)), ((), ())),
                                       preferred_element_type=f32)

        def swish(v):
            return v * jax.nn.sigmoid(v)

        def layer_norm(v, g, b, eps=1e-5):
            mu = jnp.mean(v, axis=-1, keepdims=True)
            var = jnp.mean(jnp.square(v - mu), axis=-1, keepdims=True)
            return (v - mu) * jax.lax.rsqrt(var + eps) * g + b

        # ---- TimeEmbedding: sin(t*freq + phase) with precomputed freq/phase rows ----
        t = t_ref[...]                                                   # (B, 1)
        sincos = jnp.sin(t * vrow("freq") + vrow("phase"))               # (B, n)
        t_emb = matmul(swish(matmul(sincos, wmat("te_w1")) + vrow("te_b1")),
                       wmat("te_w2")) + vrow("te_b2")

        # ---- ClassEmbedding: MLP over the (8-row padded) table, VPU select-gather ---
        cls_out = matmul(swish(matmul(wmat("ce_table"), wmat("ce_w1")) + vrow("ce_b1")),
                         wmat("ce_w2")) + vrow("ce_b2")
        cidx = c_ref[...]                                                # (B, 1) int32
        c_emb = jnp.zeros((batch, time_emb_dim), f32)
        for k in range(num_classes):
            c_emb = jnp.where(cidx == k, cls_out[k:k + 1, :], c_emb)

        # Both embeddings pass through the SAME per-layer Linear:
        #   W t + b + W c + b == W (t + c) + 2 b   (bias stored pre-doubled).
        tc = t_emb + c_emb

        # ---- UNet trunk --------------------------------------------------------------
        x_val = x_ref[...]
        h = matmul(x_val, wmat("lp_w")) + vrow("lp_b")                   # (B, hd[0])

        for i in range(n_layers):
            d = hidden_dims[i]
            hd = d // num_heads
            sfx = str(i)

            h = h + matmul(tc, wmat("tp_w" + sfx)) + vrow("tp_b2" + sfx)

            h_res = h
            hb = swish(layer_norm(matmul(h, wmat("res_w" + sfx)) + vrow("res_b" + sfx),
                                  vrow("res_ln_g" + sfx), vrow("res_ln_b" + sfx)))
            h = hb + h_res                                               # dropout == id

            h_norm = layer_norm(h, vrow("ln_g" + sfx), vrow("ln_b" + sfx))

            # Fused q|k|v projection; blocks 128-lane aligned inside the wide slab.
            qkv = matmul(h_norm, qkvmat("wqkv" + sfx)) + vrow("bqkv" + sfx)
            q = qkv[:, 0:d] * (1.0 / math.sqrt(hd))
            k_ = qkv[:, qcs:qcs + d]
            v_ = qkv[:, 2 * qcs:2 * qcs + d]

            # Block-diagonal multi-head self-attention over the batch axis (seq = B).
            lane = jax.lax.broadcasted_iota(jnp.int32, (1, d), 1)
            masks = [jnp.logical_and(lane >= hh * hd,
                                     lane < (hh + 1) * hd).astype(f32)
                     for hh in range(num_heads)]
            k_stk = jnp.concatenate([k_ * m for m in masks], axis=0)     # (H*B, d)
            v_stk = jnp.concatenate([v_ * m for m in masks], axis=0)     # (H*B, d)
            seg = jnp.concatenate([jnp.broadcast_to(m, (batch, d)) for m in masks],
                                  axis=0)                                # (H*B, d)
            sc = matmul_t(q, k_stk)                                      # (B, H*B)
            # Shared per-row max: softmax is shift-invariant per head segment.
            probs = jnp.exp(sc - jnp.max(sc, axis=-1, keepdims=True))
            num = matmul(probs, v_stk)                                   # (B, d)
            den = matmul(probs, seg)                                     # (B, d)
            attn = num * pl.reciprocal(den, approx=True)
            h = h + matmul(attn, wmat("wo" + sfx)) + vrow("bo" + sfx)

            h = matmul(h, wmat("down_w" + sfx)) + vrow("down_b" + sfx)   # (B, hd[i+1])

        # ---- Tail: fused t/c projection, final norm, algebraically fused residual ----
        h = h + matmul(jnp.concatenate([t_emb, c_emb], axis=1),
                       wmat("ftc_w")) + vrow("ftc_b")
        h = layer_norm(h, vrow("fn_g"), vrow("fn_b"))
        blended = (h + res_scale * x_val) * inv_blend
        out_ref[...] = (matmul(blended, wmat("fin_w")) + vrow("fin_b")
                        ).astype(out_ref.dtype)

    return kernel


# ----------------------------------------------------------------------------
# Wrapper
# ----------------------------------------------------------------------------
def _cost_estimate(batch, latent_dim, hidden_dims, time_emb_dim, num_classes,
                   num_heads, qcs, operands, out_shape):
    n = time_emb_dim
    c8 = _round_up(num_classes, 8)
    hb = num_heads * batch
    mm = [(batch, n, 2 * n), (batch, 2 * n, n),
          (c8, n, n), (c8, n, n),
          (batch, latent_dim, hidden_dims[0])]
    for i in range(len(hidden_dims) - 1):
        d, dn = hidden_dims[i], hidden_dims[i + 1]
        mm += [(batch, n, d), (batch, d, d), (batch, d, 3 * qcs),
               (batch, d, hb), (batch, hb, d), (batch, hb, d),
               (batch, d, d), (batch, d, dn)]
    mm += [(batch, 2 * n, hidden_dims[-1]), (batch, hidden_dims[-1], latent_dim)]
    flops = sum(2 * m * k * o for m, k, o in mm)
    trans = (batch * n + batch * 2 * n + c8 * n
             + sum(2 * batch * d + batch * hb for d in hidden_dims[:-1]))
    bytes_accessed = sum(int(a.size) * a.dtype.itemsize for a in operands)
    bytes_accessed += int(math.prod(out_shape.shape)) * out_shape.dtype.itemsize
    return pl.CostEstimate(flops=int(flops), transcendentals=int(trans),
                           bytes_accessed=int(bytes_accessed))


def conditional_unet_forward(packed, x, t, c, *, hidden_dims, time_emb_dim,
                             num_classes, num_heads=8, res_scale=1.0):
    batch, latent_dim = x.shape
    hidden_dims = tuple(hidden_dims)
    assert latent_dim == hidden_dims[-1], (
        "self.final(residual) requires latent_dim == hidden_dims[-1]")
    assert time_emb_dim % 2 == 0 and time_emb_dim >= 4
    for d in hidden_dims:
        assert d % num_heads == 0

    layout = _build_layout(latent_dim, hidden_dims, time_emb_dim, num_classes)
    kernel = _make_unet_kernel(batch=batch, latent_dim=latent_dim,
                               hidden_dims=hidden_dims, time_emb_dim=time_emb_dim,
                               num_classes=num_classes, num_heads=num_heads,
                               res_scale=float(res_scale), layout=layout)

    x32 = x.astype(jnp.float32)
    t2 = t.reshape(batch, 1).astype(jnp.float32)
    c2 = c.reshape(batch, 1).astype(jnp.int32)
    operands = (x32, t2, c2, packed["w"], packed["wqkv"], packed["vec"])

    vmem = pl.BlockSpec(memory_space=pltpu.MemorySpace.VMEM)
    out_shape = jax.ShapeDtypeStruct((batch, latent_dim), jnp.float32)
    cost = _cost_estimate(batch, latent_dim, hidden_dims, time_emb_dim,
                          num_classes, num_heads, layout["qcs"], operands, out_shape)
    # NOTE(v7x): this gridless call runs on one TensorCore; shard independent
    # invocations across the 2 TCs at the caller (the batch axis cannot be split
    # inside the kernel because attention mixes it).
    return pl.pallas_call(
        kernel,
        out_shape=out_shape,
        in_specs=[vmem] * len(operands),
        out_specs=vmem,
        cost_estimate=cost,
    )(*operands)


# ----------------------------------------------------------------------------
# Parameter init (unpacked pytree: weights (in,out), biases/LN params (1,d))
# ----------------------------------------------------------------------------
def init_params(key, latent_dim, hidden_dims, time_emb_dim, num_classes):
    key_iter = iter(jax.random.split(key, 256))

    def nk():
        return next(key_iter)

    def linear_p(fan_in, fan_out):
        bound = 1.0 / math.sqrt(fan_in)
        w = jax.random.uniform(nk(), (fan_in, fan_out), jnp.float32, -bound, bound)
        b = jax.random.uniform(nk(), (1, fan_out), jnp.float32, -bound, bound)
        return w, b

    def ln_p(d):
        g = jax.random.uniform(nk(), (1, d), jnp.float32, 0.9, 1.1)
        b = jax.random.uniform(nk(), (1, d), jnp.float32, -0.05, 0.05)
        return g, b

    n = time_emb_dim
    p = {}
    p["te_w1"], p["te_b1"] = linear_p(n, 2 * n)
    p["te_w2"], p["te_b2"] = linear_p(2 * n, n)
    p["ce_table"] = jax.random.normal(nk(), (num_classes, n), jnp.float32)
    p["ce_w1"], p["ce_b1"] = linear_p(n, n)
    p["ce_w2"], p["ce_b2"] = linear_p(n, n)
    p["lp_w"], p["lp_b"] = linear_p(latent_dim, hidden_dims[0])

    layers = []
    for i in range(len(hidden_dims) - 1):
        d, d_next = hidden_dims[i], hidden_dims[i + 1]
        lp = {}
        lp["tp_w"], lp["tp_b"] = linear_p(n, d)
        lp["res_w"], lp["res_b"] = linear_p(d, d)
        lp["res_ln_g"], lp["res_ln_b"] = ln_p(d)
        lp["ln_g"], lp["ln_b"] = ln_p(d)
        lp["wq"], lp["bq"] = linear_p(d, d)
        lp["wk"], lp["bk"] = linear_p(d, d)
        lp["wv"], lp["bv"] = linear_p(d, d)
        lp["wo"], lp["bo"] = linear_p(d, d)
        lp["down_w"], lp["down_b"] = linear_p(d, d_next)
        layers.append(lp)
    p["layers"] = layers

    d_last = hidden_dims[-1]
    p["ftp_w"], p["ftp_b"] = linear_p(n, d_last)
    p["fcp_w"], p["fcp_b"] = linear_p(n, d_last)
    p["fn_g"], p["fn_b"] = ln_p(d_last)
    p["fin_w"], p["fin_b"] = linear_p(d_last, latent_dim)
    return p


# ----------------------------------------------------------------------------
# One-time host-side packing into the three slabs
# ----------------------------------------------------------------------------
def pack_params(params, *, latent_dim, hidden_dims, time_emb_dim, num_classes):
    layout = _build_layout(latent_dim, hidden_dims, time_emb_dim, num_classes)
    qcs = layout["qcs"]
    w = np.zeros(layout["w_shape"], np.float32)
    q = np.zeros(layout["q_shape"], np.float32)
    v = np.zeros(layout["v_shape"], np.float32)
    Wm, Qm, Vm = layout["W"], layout["Q"], layout["V"]

    def put(slab, entry, arr):
        off = entry[0]
        a = np.asarray(arr, np.float32)
        slab[off:off + a.shape[0], 0:a.shape[1]] = a

    p = params
    put(w, Wm["te_w1"], p["te_w1"]); put(w, Wm["te_w2"], p["te_w2"])
    put(w, Wm["ce_w1"], p["ce_w1"]); put(w, Wm["ce_w2"], p["ce_w2"])
    put(w, Wm["ce_table"], p["ce_table"])
    put(w, Wm["lp_w"], p["lp_w"])
    for i, lp in enumerate(p["layers"]):
        d = hidden_dims[i]
        put(w, Wm[f"tp_w{i}"], lp["tp_w"])
        put(w, Wm[f"res_w{i}"], lp["res_w"])
        put(w, Wm[f"wo{i}"], lp["wo"])
        put(w, Wm[f"down_w{i}"], lp["down_w"])
        off = Qm[f"wqkv{i}"][0]
        q[off:off + d, 0:d] = np.asarray(lp["wq"], np.float32)
        q[off:off + d, qcs:qcs + d] = np.asarray(lp["wk"], np.float32)
        q[off:off + d, 2 * qcs:2 * qcs + d] = np.asarray(lp["wv"], np.float32)
    put(w, Wm["ftc_w"], np.concatenate([np.asarray(p["ftp_w"], np.float32),
                                        np.asarray(p["fcp_w"], np.float32)], axis=0))
    put(w, Wm["fin_w"], p["fin_w"])

    n = time_emb_dim
    half = n // 2
    freqs = np.exp(np.arange(half, dtype=np.float64)
                   * -(math.log(10000.0) / (half - 1))).astype(np.float32)
    put(v, Vm["freq"], np.concatenate([freqs, freqs])[None, :])
    put(v, Vm["phase"], np.concatenate([np.zeros(half, np.float32),
                                        np.full(half, math.pi / 2, np.float32)])[None, :])
    put(v, Vm["te_b1"], p["te_b1"]); put(v, Vm["te_b2"], p["te_b2"])
    put(v, Vm["ce_b1"], p["ce_b1"]); put(v, Vm["ce_b2"], p["ce_b2"])
    put(v, Vm["lp_b"], p["lp_b"])
    for i, lp in enumerate(p["layers"]):
        d = hidden_dims[i]
        put(v, Vm[f"tp_b2{i}"], 2.0 * np.asarray(lp["tp_b"], np.float32))
        put(v, Vm[f"res_b{i}"], lp["res_b"])
        put(v, Vm[f"res_ln_g{i}"], lp["res_ln_g"])
        put(v, Vm[f"res_ln_b{i}"], lp["res_ln_b"])
        put(v, Vm[f"ln_g{i}"], lp["ln_g"])
        put(v, Vm[f"ln_b{i}"], lp["ln_b"])
        off = Vm[f"bqkv{i}"][0]
        v[off, 0:d] = np.asarray(lp["bq"], np.float32).reshape(-1)
        v[off, qcs:qcs + d] = np.asarray(lp["bk"], np.float32).reshape(-1)
        v[off, 2 * qcs:2 * qcs + d] = np.asarray(lp["bv"], np.float32).reshape(-1)
        put(v, Vm[f"bo{i}"], lp["bo"])
        put(v, Vm[f"down_b{i}"], lp["down_b"])
    put(v, Vm["ftc_b"], np.asarray(p["ftp_b"], np.float32)
        + np.asarray(p["fcp_b"], np.float32))
    put(v, Vm["fn_g"], p["fn_g"]); put(v, Vm["fn_b"], p["fn_b"])
    put(v, Vm["fin_b"], p["fin_b"])

    return {"w": jnp.asarray(w), "wqkv": jnp.asarray(q), "vec": jnp.asarray(v)}


# ----------------------------------------------------------------------------
# Pure-JAX reference (mirrors the PyTorch forward: unfused projections, per-head
# slicing, exact softmax) to validate the kernel's algebraic shortcuts.
# ----------------------------------------------------------------------------
def _reference(params, x, t, c, *, hidden_dims, time_emb_dim, num_heads, res_scale):
    P = jax.lax.Precision.HIGHEST

    def lin(v, w, b):
        return jnp.dot(v, w, precision=P) + b

    def swish(v):
        return v * jax.nn.sigmoid(v)

    def layer_norm(v, g, b, eps=1e-5):
        mu = jnp.mean(v, axis=-1, keepdims=True)
        var = jnp.mean(jnp.square(v - mu), axis=-1, keepdims=True)
        return (v - mu) / jnp.sqrt(var + eps) * g + b

    p = params
    half = time_emb_dim // 2
    freqs = jnp.exp(jnp.arange(half, dtype=jnp.float32)
                    * -(math.log(10000.0) / (half - 1)))
    ang = t.astype(jnp.float32)[:, None] * freqs[None, :]
    sincos = jnp.concatenate([jnp.sin(ang), jnp.cos(ang)], axis=1)
    t_emb = lin(swish(lin(sincos, p["te_w1"], p["te_b1"])), p["te_w2"], p["te_b2"])

    emb = p["ce_table"][c]
    c_emb = lin(swish(lin(emb, p["ce_w1"], p["ce_b1"])), p["ce_w2"], p["ce_b2"])

    h = lin(x, p["lp_w"], p["lp_b"])
    for i, lp in enumerate(p["layers"]):
        d = hidden_dims[i]
        hd = d // num_heads
        h = h + lin(t_emb, lp["tp_w"], lp["tp_b"]) + lin(c_emb, lp["tp_w"], lp["tp_b"])
        h_residual = h
        hb = swish(layer_norm(lin(h, lp["res_w"], lp["res_b"]),
                              lp["res_ln_g"], lp["res_ln_b"]))
        h = hb + h_residual
        h_norm = layer_norm(h, lp["ln_g"], lp["ln_b"])
        q = lin(h_norm, lp["wq"], lp["bq"]) / math.sqrt(hd)
        k_ = lin(h_norm, lp["wk"], lp["bk"])
        v_ = lin(h_norm, lp["wv"], lp["bv"])
        heads = []
        for hh in range(num_heads):
            sl = slice(hh * hd, (hh + 1) * hd)
            s = jnp.dot(q[:, sl], k_[:, sl].T, precision=P)
            a = jax.nn.softmax(s, axis=-1)
            heads.append(jnp.dot(a, v_[:, sl], precision=P))
        attn = jnp.concatenate(heads, axis=-1)
        h = h + lin(attn, lp["wo"], lp["bo"])
        h = lin(h, lp["down_w"], lp["down_b"])

    h = h + lin(t_emb, p["ftp_w"], p["ftp_b"]) + lin(c_emb, p["fcp_w"], p["fcp_b"])
    h = layer_norm(h, p["fn_g"], p["fn_b"])
    out = lin(h, p["fin_w"], p["fin_b"])
    out_res = lin(x, p["fin_w"], p["fin_b"])
    return (out + res_scale * out_res) / (1.0 + res_scale)


# ----------------------------------------------------------------------------
if __name__ == "__main__":
    # Small shapes consistent with the module (scaled-down ConditionalUNet).
    latent_dim = 32
    hidden_dims = [32, 64, 128, 64, 32]
    time_emb_dim = 32
    num_classes = 2
    num_heads = 8
    batch = 8
    res_scale = 1.0

    key = jax.random.PRNGKey(0)
    k_params, k_x, k_t, k_c = jax.random.split(key, 4)
    params = init_params(k_params, latent_dim, hidden_dims, time_emb_dim, num_classes)
    packed = pack_params(params, latent_dim=latent_dim, hidden_dims=hidden_dims,
                         time_emb_dim=time_emb_dim, num_classes=num_classes)
    x = jax.random.normal(k_x, (batch, latent_dim), jnp.float32)
    t = jax.random.uniform(k_t, (batch,), jnp.float32, 0.0, 100.0)
    c = jax.random.randint(k_c, (batch,), 0, num_classes, dtype=jnp.int32)

    fwd = jax.jit(functools.partial(conditional_unet_forward,
                                    hidden_dims=tuple(hidden_dims),
                                    time_emb_dim=time_emb_dim,
                                    num_classes=num_classes,
                                    num_heads=num_heads,
                                    res_scale=res_scale))
    out = jax.block_until_ready(fwd(packed, x, t, c))

    ref = _reference(params, x, t, c, hidden_dims=hidden_dims,
                     time_emb_dim=time_emb_dim, num_heads=num_heads,
                     res_scale=res_scale)
    assert out.shape == (batch, latent_dim)
    max_diff = float(jnp.max(jnp.abs(out - ref)))
    assert jnp.allclose(out, ref, atol=2e-3, rtol=2e-3), (
        f"mismatch vs reference (max abs diff {max_diff:.3e})")
    print("KERNEL_OK")
</pallas_src>

<mosaic_0001>
module attributes {stable_mosaic.version = 11 : i64} {
  func.func @kernel(%arg0: memref<8x32xf32, #tpu.memory_space<vmem>>, %arg1: memref<8x1xf32, #tpu.memory_space<vmem>>, %arg2: memref<8x1xi32, #tpu.memory_space<vmem>>, %arg3: memref<1288x128xf32, #tpu.memory_space<vmem>>, %arg4: memref<288x384xf32, #tpu.memory_space<vmem>>, %arg5: memref<48x384xf32, #tpu.memory_space<vmem>>, %arg6: memref<8x32xf32, #tpu.memory_space<vmem>>) attributes {dimension_semantics = [], scalar_prefetch = 0 : i64, scratch_operands = 0 : i64, tpu.core_type = #tpu.core_type<tc>} {
    %c0 = arith.constant 0 : index
    %c0_0 = arith.constant 0 : index
    %0 = vector.load %arg1[%c0, %c0_0] : memref<8x1xf32, #tpu.memory_space<vmem>>, vector<8x1xf32>
    %c0_1 = arith.constant 0 : index
    %c0_2 = arith.constant 0 : index
    %1 = vector.load %arg5[%c0_1, %c0_2] : memref<48x384xf32, #tpu.memory_space<vmem>>, vector<1x32xf32>
    %2 = vector.broadcast %0 : vector<8x1xf32> to vector<8x32xf32>
    %3 = vector.broadcast %1 : vector<1x32xf32> to vector<8x32xf32>
    %4 = arith.mulf %2, %3 : vector<8x32xf32>
    %c1 = arith.constant 1 : index
    %c0_3 = arith.constant 0 : index
    %5 = vector.load %arg5[%c1, %c0_3] : memref<48x384xf32, #tpu.memory_space<vmem>>, vector<1x32xf32>
    %6 = vector.broadcast %5 : vector<1x32xf32> to vector<8x32xf32>
    %7 = arith.addf %4, %6 : vector<8x32xf32>
    %8 = math.sin %7 : vector<8x32xf32>
    %c0_4 = arith.constant 0 : index
    %c0_5 = arith.constant 0 : index
    %9 = vector.load %arg3[%c0_4, %c0_5] : memref<1288x128xf32, #tpu.memory_space<vmem>>, vector<32x64xf32>
    %cst = arith.constant dense<0.000000e+00> : vector<8x64xf32>
    %10 = tpu.matmul %8, %9, %cst {dimension_numbers = #tpu.dot_dimension_numbers<[1], [0], [0], [1], [0, 0, 1, 1], [], []>} : vector<8x32xf32>, vector<32x64xf32>, vector<8x64xf32> -> vector<8x64xf32>
    %c2 = arith.constant 2 : index
    %c0_6 = arith.constant 0 : index
    %11 = vector.load %arg5[%c2, %c0_6] : memref<48x384xf32, #tpu.memory_space<vmem>>, vector<1x64xf32>
    %12 = vector.broadcast %11 : vector<1x64xf32> to vector<8x64xf32>
    %13 = arith.addf %10, %12 : vector<8x64xf32>
    %14 = arith.negf %13 : vector<8x64xf32>
    %15 = math.exp %14 : vector<8x64xf32>
    %cst_7 = arith.constant 1.000000e+00 : f32
    %16 = vector.broadcast %cst_7 : f32 to vector<8x64xf32>
    %17 = arith.addf %16, %15 : vector<8x64xf32>
    %18 = arith.divf %16, %17 : vector<8x64xf32>
    %19 = arith.mulf %13, %18 : vector<8x64xf32>
    %c32 = arith.constant 32 : index
    %c0_8 = arith.constant 0 : index
    %20 = vector.load %arg3[%c32, %c0_8] : memref<1288x128xf32, #tpu.memory_space<vmem>>, vector<64x32xf32>
    %cst_9 = arith.constant dense<0.000000e+00> : vector<8x32xf32>
    %21 = tpu.matmul %19, %20, %cst_9 {dimension_numbers = #tpu.dot_dimension_numbers<[1], [0], [0], [1], [0, 0, 1, 1], [], []>} : vector<8x64xf32>, vector<64x32xf32>, vector<8x32xf32> -> vector<8x32xf32>
    %c3 = arith.constant 3 : index
    %c0_10 = arith.constant 0 : index
    %22 = vector.load %arg5[%c3, %c0_10] : memref<48x384xf32, #tpu.memory_space<vmem>>, vector<1x32xf32>
    %23 = vector.broadcast %22 : vector<1x32xf32> to vector<8x32xf32>
    %24 = arith.addf %21, %23 : vector<8x32xf32>
    %c160 = arith.constant 160 : index
    %c0_11 = arith.constant 0 : index
    %25 = vector.load %arg3[%c160, %c0_11] : memref<1288x128xf32, #tpu.memory_space<vmem>>, vector<8x32xf32>
    %c96 = arith.constant 96 : index
    %c0_12 = arith.constant 0 : index
    %26 = vector.load %arg3[%c96, %c0_12] : memref<1288x128xf32, #tpu.memory_space<vmem>>, vector<32x32xf32>
    %cst_13 = arith.constant dense<0.000000e+00> : vector<8x32xf32>
    %27 = tpu.matmul %25, %26, %cst_13 {dimension_numbers = #tpu.dot_dimension_numbers<[1], [0], [0], [1], [0, 0, 1, 1], [], []>} : vector<8x32xf32>, vector<32x32xf32>, vector<8x32xf32> -> vector<8x32xf32>
    %c4 = arith.constant 4 : index
    %c0_14 = arith.constant 0 : index
    %28 = vector.load %arg5[%c4, %c0_14] : memref<48x384xf32, #tpu.memory_space<vmem>>, vector<1x32xf32>
    %29 = vector.broadcast %28 : vector<1x32xf32> to vector<8x32xf32>
    %30 = arith.addf %27, %29 : vector<8x32xf32>
    %31 = arith.negf %30 : vector<8x32xf32>
    %32 = math.exp %31 : vector<8x32xf32>
    %cst_15 = arith.constant 1.000000e+00 : f32
    %33 = vector.broadcast %cst_15 : f32 to vector<8x32xf32>
    %34 = arith.addf %33, %32 : vector<8x32xf32>
    %35 = arith.divf %33, %34 : vector<8x32xf32>
    %36 = arith.mulf %30, %35 : vector<8x32xf32>
    %c128 = arith.constant 128 : index
    %c0_16 = arith.constant 0 : index
    %37 = vector.load %arg3[%c128, %c0_16] : memref<1288x128xf32, #tpu.memory_space<vmem>>, vector<32x32xf32>
    %cst_17 = arith.constant dense<0.000000e+00> : vector<8x32xf32>
    %38 = tpu.matmul %36, %37, %cst_17 {dimension_numbers = #tpu.dot_dimension_numbers<[1], [0], [0], [1], [0, 0, 1, 1], [], []>} : vector<8x32xf32>, vector<32x32xf32>, vector<8x32xf32> -> vector<8x32xf32>
    %c5 = arith.constant 5 : index
    %c0_18 = arith.constant 0 : index
    %39 = vector.load %arg5[%c5, %c0_18] : memref<48x384xf32, #tpu.memory_space<vmem>>, vector<1x32xf32>
    %40 = vector.broadcast %39 : vector<1x32xf32> to vector<8x32xf32>
    %41 = arith.addf %38, %40 : vector<8x32xf32>
    %c0_19 = arith.constant 0 : index
    %c0_20 = arith.constant 0 : index
    %42 = vector.load %arg2[%c0_19, %c0_20] : memref<8x1xi32, #tpu.memory_space<vmem>>, vector<8x1xi32>
    %cst_21 = arith.constant 0.000000e+00 : f32
    %43 = vector.broadcast %cst_21 : f32 to vector<8x32xf32>
    %c0_i32 = arith.constant 0 : i32
    %44 = vector.broadcast %c0_i32 : i32 to vector<8x1xi32>
    %45 = arith.cmpi eq, %42, %44 : vector<8x1xi32>
    %46 = vector.extract_strided_slice %41 {offsets = [0, 0], sizes = [1, 32], strides = [1, 1]} : vector<8x32xf32> to vector<1x32xf32>
    %47 = vector.shape_cast %45 : vector<8x1xi1> to vector<8x1xi1>
    %48 = vector.broadcast %47 : vector<8x1xi1> to vector<8x32xi1>
    %49 = vector.shape_cast %46 : vector<1x32xf32> to vector<1x32xf32>
    %50 = vector.broadcast %49 : vector<1x32xf32> to vector<8x32xf32>
    %51 = arith.select %48, %50, %43 : vector<8x32xi1>, vector<8x32xf32>
    %c1_i32 = arith.constant 1 : i32
    %52 = vector.broadcast %c1_i32 : i32 to vector<8x1xi32>
    %53 = arith.cmpi eq, %42, %52 : vector<8x1xi32>
    %54 = vector.extract_strided_slice %41 {offsets = [1, 0], sizes = [1, 32], strides = [1, 1]} : vector<8x32xf32> to vector<1x32xf32>
    %55 = vector.shape_cast %53 : vector<8x1xi1> to vector<8x1xi1>
    %56 = vector.broadcast %55 : vector<8x1xi1> to vector<8x32xi1>
    %57 = vector.shape_cast %54 : vector<1x32xf32> to vector<1x32xf32>
    %58 = vector.broadcast %57 : vector<1x32xf32> to vector<8x32xf32>
    %59 = arith.select %56, %58, %51 : vector<8x32xi1>, vector<8x32xf32>
    %60 = arith.addf %24, %59 : vector<8x32xf32>
    %c0_22 = arith.constant 0 : index
    %c0_23 = arith.constant 0 : index
    %61 = vector.load %arg0[%c0_22, %c0_23] : memref<8x32xf32, #tpu.memory_space<vmem>>, vector<8x32xf32>
    %c168 = arith.constant 168 : index
    %c0_24 = arith.constant 0 : index
    %62 = vector.load %arg3[%c168, %c0_24] : memref<1288x128xf32, #tpu.memory_space<vmem>>, vector<32x32xf32>
    %cst_25 = arith.constant dense<0.000000e+00> : vector<8x32xf32>
    %63 = tpu.matmul %61, %62, %cst_25 {dimension_numbers = #tpu.dot_dimension_numbers<[1], [0], [0], [1], [0, 0, 1, 1], [], []>} : vector<8x32xf32>, vector<32x32xf32>, vector<8x32xf32> -> vector<8x32xf32>
    %c6 = arith.constant 6 : index
    %c0_26 = arith.constant 0 : index
    %64 = vector.load %arg5[%c6, %c0_26] : memref<48x384xf32, #tpu.memory_space<vmem>>, vector<1x32xf32>
    %65 = vector.broadcast %64 : vector<1x32xf32> to vector<8x32xf32>
    %66 = arith.addf %63, %65 : vector<8x32xf32>
    %c200 = arith.constant 200 : index
    %c0_27 = arith.constant 0 : index
    %67 = vector.load %arg3[%c200, %c0_27] : memref<1288x128xf32, #tpu.memory_space<vmem>>, vector<32x32xf32>
    %cst_28 = arith.constant dense<0.000000e+00> : vector<8x32xf32>
    %68 = tpu.matmul %60, %67, %cst_28 {dimension_numbers = #tpu.dot_dimension_numbers<[1], [0], [0], [1], [0, 0, 1, 1], [], []>} : vector<8x32xf32>, vector<32x32xf32>, vector<8x32xf32> -> vector<8x32xf32>
    %69 = arith.addf %66, %68 : vector<8x32xf32>
    %c7 = arith.constant 7 : index
    %c0_29 = arith.constant 0 : index
    %70 = vector.load %arg5[%c7, %c0_29] : memref<48x384xf32, #tpu.memory_space<vmem>>, vector<1x32xf32>
    %71 = vector.broadcast %70 : vector<1x32xf32> to vector<8x32xf32>
    %72 = arith.addf %69, %71 : vector<8x32xf32>
    %c232 = arith.constant 232 : index
    %c0_30 = arith.constant 0 : index
    %73 = vector.load %arg3[%c232, %c0_30] : memref<1288x128xf32, #tpu.memory_space<vmem>>, vector<32x32xf32>
    %cst_31 = arith.constant dense<0.000000e+00> : vector<8x32xf32>
    %74 = tpu.matmul %72, %73, %cst_31 {dimension_numbers = #tpu.dot_dimension_numbers<[1], [0], [0], [1], [0, 0, 1, 1], [], []>} : vector<8x32xf32>, vector<32x32xf32>, vector<8x32xf32> -> vector<8x32xf32>
    %c8 = arith.constant 8 : index
    %c0_32 = arith.constant 0 : index
    %75 = vector.load %arg5[%c8, %c0_32] : memref<48x384xf32, #tpu.memory_space<vmem>>, vector<1x32xf32>
    %76 = vector.broadcast %75 : vector<1x32xf32> to vector<8x32xf32>
    %77 = arith.addf %74, %76 : vector<8x32xf32>
    %c9 = arith.constant 9 : index
    %c0_33 = arith.constant 0 : index
    %78 = vector.load %arg5[%c9, %c0_33] : memref<48x384xf32, #tpu.memory_space<vmem>>, vector<1x32xf32>
    %c10 = arith.constant 10 : index
    %c0_34 = arith.constant 0 : index
    %79 = vector.load %arg5[%c10, %c0_34] : memref<48x384xf32, #tpu.memory_space<vmem>>, vector<1x32xf32>
    %cst_35 = arith.constant dense<0.000000e+00> : vector<8xf32>
    %80 = vector.multi_reduction <add>, %77, %cst_35 [1] : vector<8x32xf32> to vector<8xf32>
    %81 = vector.shape_cast %80 : vector<8xf32> to vector<8x1xf32>
    %cst_36 = arith.constant 3.200000e+01 : f32
    %82 = vector.broadcast %cst_36 : f32 to vector<8x1xf32>
    %83 = arith.divf %81, %82 : vector<8x1xf32>
    %84 = vector.broadcast %83 : vector<8x1xf32> to vector<8x32xf32>
    %85 = arith.subf %77, %84 : vector<8x32xf32>
    %86 = arith.mulf %85, %85 : vector<8x32xf32>
    %cst_37 = arith.constant dense<0.000000e+00> : vector<8xf32>
    %87 = vector.multi_reduction <add>, %86, %cst_37 [1] : vector<8x32xf32> to vector<8xf32>
    %88 = vector.shape_cast %87 : vector<8xf32> to vector<8x1xf32>
    %cst_38 = arith.constant 3.200000e+01 : f32
    %89 = vector.broadcast %cst_38 : f32 to vector<8x1xf32>
    %90 = arith.divf %88, %89 : vector<8x1xf32>
    %91 = vector.broadcast %83 : vector<8x1xf32> to vector<8x32xf32>
    %92 = arith.subf %77, %91 : vector<8x32xf32>
    %cst_39 = arith.constant 9.99999974E-6 : f32
    %93 = vector.broadcast %cst_39 : f32 to vector<8x1xf32>
    %94 = arith.addf %90, %93 : vector<8x1xf32>
    %95 = math.rsqrt %94 : vector<8x1xf32>
    %96 = vector.broadcast %95 : vector<8x1xf32> to vector<8x32xf32>
    %97 = arith.mulf %92, %96 : vector<8x32xf32>
    %98 = vector.broadcast %78 : vector<1x32xf32> to vector<8x32xf32>
    %99 = arith.mulf %97, %98 : vector<8x32xf32>
    %100 = vector.broadcast %79 : vector<1x32xf32> to vector<8x32xf32>
    %101 = arith.addf %99, %100 : vector<8x32xf32>
    %102 = arith.negf %101 : vector<8x32xf32>
    %103 = math.exp %102 : vector<8x32xf32>
    %cst_40 = arith.constant 1.000000e+00 : f32
    %104 = vector.broadcast %cst_40 : f32 to vector<8x32xf32>
    %105 = arith.addf %104, %103 : vector<8x32xf32>
    %106 = arith.divf %104, %105 : vector<8x32xf32>
    %107 = arith.mulf %101, %106 : vector<8x32xf32>
    %108 = arith.addf %107, %72 : vector<8x32xf32>
    %c11 = arith.constant 11 : index
    %c0_41 = arith.constant 0 : index
    %109 = vector.load %arg5[%c11, %c0_41] : memref<48x384xf32, #tpu.memory_space<vmem>>, vector<1x32xf32>
    %c12 = arith.constant 12 : index
    %c0_42 = arith.constant 0 : index
    %110 = vector.load %arg5[%c12, %c0_42] : memref<48x384xf32, #tpu.memory_space<vmem>>, vector<1x32xf32>
    %cst_43 = arith.constant dense<0.000000e+00> : vector<8xf32>
    %111 = vector.multi_reduction <add>, %108, %cst_43 [1] : vector<8x32xf32> to vector<8xf32>
    %112 = vector.shape_cast %111 : vector<8xf32> to vector<8x1xf32>
    %cst_44 = arith.constant 3.200000e+01 : f32
    %113 = vector.broadcast %cst_44 : f32 to vector<8x1xf32>
    %114 = arith.divf %112, %113 : vector<8x1xf32>
    %115 = vector.broadcast %114 : vector<8x1xf32> to vector<8x32xf32>
    %116 = arith.subf %108, %115 : vector<8x32xf32>
    %117 = arith.mulf %116, %116 : vector<8x32xf32>
    %cst_45 = arith.constant dense<0.000000e+00> : vector<8xf32>
    %118 = vector.multi_reduction <add>, %117, %cst_45 [1] : vector<8x32xf32> to vector<8xf32>
    %119 = vector.shape_cast %118 : vector<8xf32> to vector<8x1xf32>
    %cst_46 = arith.constant 3.200000e+01 : f32
    %120 = vector.broadcast %cst_46 : f32 to vector<8x1xf32>
    %121 = arith.divf %119, %120 : vector<8x1xf32>
    %122 = vector.broadcast %114 : vector<8x1xf32> to vector<8x32xf32>
    %123 = arith.subf %108, %122 : vector<8x32xf32>
    %cst_47 = arith.constant 9.99999974E-6 : f32
    %124 = vector.broadcast %cst_47 : f32 to vector<8x1xf32>
    %125 = arith.addf %121, %124 : vector<8x1xf32>
    %126 = math.rsqrt %125 : vector<8x1xf32>
    %127 = vector.broadcast %126 : vector<8x1xf32> to vector<8x32xf32>
    %128 = arith.mulf %123, %127 : vector<8x32xf32>
    %129 = vector.broadcast %109 : vector<1x32xf32> to vector<8x32xf32>
    %130 = arith.mulf %128, %129 : vector<8x32xf32>
    %131 = vector.broadcast %110 : vector<1x32xf32> to vector<8x32xf32>
    %132 = arith.addf %130, %131 : vector<8x32xf32>
    %c0_48 = arith.constant 0 : index
    %c0_49 = arith.constant 0 : index
    %133 = vector.load %arg4[%c0_48, %c0_49] : memref<288x384xf32, #tpu.memory_space<vmem>>, vector<32x384xf32>
    %cst_50 = arith.constant dense<0.000000e+00> : vector<8x384xf32>
    %134 = tpu.matmul %132, %133, %cst_50 {dimension_numbers = #tpu.dot_dimension_numbers<[1], [0], [0], [1], [0, 0, 1, 1], [], []>} : vector<8x32xf32>, vector<32x384xf32>, vector<8x384xf32> -> vector<8x384xf32>
    %c13 = arith.constant 13 : index
    %c0_51 = arith.constant 0 : index
    %135 = vector.load %arg5[%c13, %c0_51] : memref<48x384xf32, #tpu.memory_space<vmem>>, vector<1x384xf32>
    %136 = vector.broadcast %135 : vector<1x384xf32> to vector<8x384xf32>
    %137 = arith.addf %134, %136 : vector<8x384xf32>
    %138 = vector.extract_strided_slice %137 {offsets = [0, 0], sizes = [8, 32], strides = [1, 1]} : vector<8x384xf32> to vector<8x32xf32>
    %cst_52 = arith.constant 5.000000e-01 : f32
    %139 = vector.broadcast %cst_52 : f32 to vector<8x32xf32>
    %140 = arith.mulf %138, %139 : vector<8x32xf32>
    %141 = vector.extract_strided_slice %137 {offsets = [0, 128], sizes = [8, 32], strides = [1, 1]} : vector<8x384xf32> to vector<8x32xf32>
    %142 = vector.extract_strided_slice %137 {offsets = [0, 256], sizes = [8, 32], strides = [1, 1]} : vector<8x384xf32> to vector<8x32xf32>
    %143 = tpu.iota {dimensions = array<i32: 1>} : vector<1x32xi32>
    %c0_i32_53 = arith.constant 0 : i32
    %144 = vector.broadcast %c0_i32_53 : i32 to vector<1x32xi32>
    %145 = arith.cmpi sge, %143, %144 : vector<1x32xi32>
    %c4_i32 = arith.constant 4 : i32
    %146 = vector.broadcast %c4_i32 : i32 to vector<1x32xi32>
    %147 = arith.cmpi slt, %143, %146 : vector<1x32xi32>
    %148 = arith.andi %145, %147 : vector<1x32xi1>
    %149 = arith.extui %148 : vector<1x32xi1> to vector<1x32xi32>
    %150 = arith.sitofp %149 : vector<1x32xi32> to vector<1x32xf32>
    %c4_i32_54 = arith.constant 4 : i32
    %151 = vector.broadcast %c4_i32_54 : i32 to vector<1x32xi32>
    %152 = arith.cmpi sge, %143, %151 : vector<1x32xi32>
    %c8_i32 = arith.constant 8 : i32
    %153 = vector.broadcast %c8_i32 : i32 to vector<1x32xi32>
    %154 = arith.cmpi slt, %143, %153 : vector<1x32xi32>
    %155 = arith.andi %152, %154 : vector<1x32xi1>
    %156 = arith.extui %155 : vector<1x32xi1> to vector<1x32xi32>
    %157 = arith.sitofp %156 : vector<1x32xi32> to vector<1x32xf32>
    %c8_i32_55 = arith.constant 8 : i32
    %158 = vector.broadcast %c8_i32_55 : i32 to vector<1x32xi32>
    %159 = arith.cmpi sge, %143, %158 : vector<1x32xi32>
    %c12_i32 = arith.constant 12 : i32
    %160 = vector.broadcast %c12_i32 : i32 to vector<1x32xi32>
    %161 = arith.cmpi slt, %143, %160 : vector<1x32xi32>
    %162 = arith.andi %159, %161 : vector<1x32xi1>
    %163 = arith.extui %162 : vector<1x32xi1> to vector<1x32xi32>
    %164 = arith.sitofp %163 : vector<1x32xi32> to vector<1x32xf32>
    %c12_i32_56 = arith.constant 12 : i32
    %165 = vector.broadcast %c12_i32_56 : i32 to vector<1x32xi32>
    %166 = arith.cmpi sge, %143, %165 : vector<1x32xi32>
    %c16_i32 = arith.constant 16 : i32
    %167 = vector.broadcast %c16_i32 : i32 to vector<1x32xi32>
    %168 = arith.cmpi slt, %143, %167 : vector<1x32xi32>
    %169 = arith.andi %166, %168 : vector<1x32xi1>
    %170 = arith.extui %169 : vector<1x32xi1> to vector<1x32xi32>
    %171 = arith.sitofp %170 : vector<1x32xi32> to vector<1x32xf32>
    %c16_i32_57 = arith.constant 16 : i32
    %172 = vector.broadcast %c16_i32_57 : i32 to vector<1x32xi32>
    %173 = arith.cmpi sge, %143, %172 : vector<1x32xi32>
    %c20_i32 = arith.constant 20 : i32
    %174 = vector.broadcast %c20_i32 : i32 to vector<1x32xi32>
    %175 = arith.cmpi slt, %143, %174 : vector<1x32xi32>
    %176 = arith.andi %173, %175 : vector<1x32xi1>
    %177 = arith.extui %176 : vector<1x32xi1> to vector<1x32xi32>
    %178 = arith.sitofp %177 : vector<1x32xi32> to vector<1x32xf32>
    %c20_i32_58 = arith.constant 20 : i32
    %179 = vector.broadcast %c20_i32_58 : i32 to vector<1x32xi32>
    %180 = arith.cmpi sge, %143, %179 : vector<1x32xi32>
    %c24_i32 = arith.constant 24 : i32
    %181 = vector.broadcast %c24_i32 : i32 to vector<1x32xi32>
    %182 = arith.cmpi slt, %143, %181 : vector<1x32xi32>
    %183 = arith.andi %180, %182 : vector<1x32xi1>
    %184 = arith.extui %183 : vector<1x32xi1> to vector<1x32xi32>
    %185 = arith.sitofp %184 : vector<1x32xi32> to vector<1x32xf32>
    %c24_i32_59 = arith.constant 24 : i32
    %186 = vector.broadcast %c24_i32_59 : i32 to vector<1x32xi32>
    %187 = arith.cmpi sge, %143, %186 : vector<1x32xi32>
    %c28_i32 = arith.constant 28 : i32
    %188 = vector.broadcast %c28_i32 : i32 to vector<1x32xi32>
    %189 = arith.cmpi slt, %143, %188 : vector<1x32xi32>
    %190 = arith.andi %187, %189 : vector<1x32xi1>
    %191 = arith.extui %190 : vector<1x32xi1> to vector<1x32xi32>
    %192 = arith.sitofp %191 : vector<1x32xi32> to vector<1x32xf32>
    %c28_i32_60 = arith.constant 28 : i32
    %193 = vector.broadcast %c28_i32_60 : i32 to vector<1x32xi32>
    %194 = arith.cmpi sge, %143, %193 : vector<1x32xi32>
    %c32_i32 = arith.constant 32 : i32
    %195 = vector.broadcast %c32_i32 : i32 to vector<1x32xi32>
    %196 = arith.cmpi slt, %143, %195 : vector<1x32xi32>
    %197 = arith.andi %194, %196 : vector<1x32xi1>
    %198 = arith.extui %197 : vector<1x32xi1> to vector<1x32xi32>
    %199 = arith.sitofp %198 : vector<1x32xi32> to vector<1x32xf32>
    %200 = vector.broadcast %150 : vector<1x32xf32> to vector<8x32xf32>
    %201 = arith.mulf %141, %200 : vector<8x32xf32>
    %202 = vector.broadcast %157 : vector<1x32xf32> to vector<8x32xf32>
    %203 = arith.mulf %141, %202 : vector<8x32xf32>
    %204 = vector.broadcast %164 : vector<1x32xf32> to vector<8x32xf32>
    %205 = arith.mulf %141, %204 : vector<8x32xf32>
    %206 = vector.broadcast %171 : vector<1x32xf32> to vector<8x32xf32>
    %207 = arith.mulf %141, %206 : vector<8x32xf32>
    %208 = vector.broadcast %178 : vector<1x32xf32> to vector<8x32xf32>
    %209 = arith.mulf %141, %208 : vector<8x32xf32>
    %210 = vector.broadcast %185 : vector<1x32xf32> to vector<8x32xf32>
    %211 = arith.mulf %141, %210 : vector<8x32xf32>
    %212 = vector.broadcast %192 : vector<1x32xf32> to vector<8x32xf32>
    %213 = arith.mulf %141, %212 : vector<8x32xf32>
    %214 = vector.broadcast %199 : vector<1x32xf32> to vector<8x32xf32>
    %215 = arith.mulf %141, %214 : vector<8x32xf32>
    %216 = tpu.concatenate %201, %203, %205, %207, %209, %211, %213, %215 in 0 : vector<8x32xf32>, vector<8x32xf32>, vector<8x32xf32>, vector<8x32xf32>, vector<8x32xf32>, vector<8x32xf32>, vector<8x32xf32>, vector<8x32xf32> -> vector<64x32xf32>
    %217 = vector.broadcast %150 : vector<1x32xf32> to vector<8x32xf32>
    %218 = arith.mulf %142, %217 : vector<8x32xf32>
    %219 = vector.broadcast %157 : vector<1x32xf32> to vector<8x32xf32>
    %220 = arith.mulf %142, %219 : vector<8x32xf32>
    %221 = vector.broadcast %164 : vector<1x32xf32> to vector<8x32xf32>
    %222 = arith.mulf %142, %221 : vector<8x32xf32>
    %223 = vector.broadcast %171 : vector<1x32xf32> to vector<8x32xf32>
    %224 = arith.mulf %142, %223 : vector<8x32xf32>
    %225 = vector.broadcast %178 : vector<1x32xf32> to vector<8x32xf32>
    %226 = arith.mulf %142, %225 : vector<8x32xf32>
    %227 = vector.broadcast %185 : vector<1x32xf32> to vector<8x32xf32>
    %228 = arith.mulf %142, %227 : vector<8x32xf32>
    %229 = vector.broadcast %192 : vector<1x32xf32> to vector<8x32xf32>
    %230 = arith.mulf %142, %229 : vector<8x32xf32>
    %231 = vector.broadcast %199 : vector<1x32xf32> to vector<8x32xf32>
    %232 = arith.mulf %142, %231 : vector<8x32xf32>
    %233 = tpu.concatenate %218, %220, %222, %224, %226, %228, %230, %232 in 0 : vector<8x32xf32>, vector<8x32xf32>, vector<8x32xf32>, vector<8x32xf32>, vector<8x32xf32>, vector<8x32xf32>, vector<8x32xf32>, vector<8x32xf32> -> vector<64x32xf32>
    %234 = vector.shape_cast %150 : vector<1x32xf32> to vector<1x32xf32>
    %235 = vector.broadcast %234 : vector<1x32xf32> to vector<8x32xf32>
    %236 = vector.shape_cast %157 : vector<1x32xf32> to vector<1x32xf32>
    %237 = vector.broadcast %236 : vector<1x32xf32> to vector<8x32xf32>
    %238 = vector.shape_cast %164 : vector<1x32xf32> to vector<1x32xf32>
    %239 = vector.broadcast %238 : vector<1x32xf32> to vector<8x32xf32>
    %240 = vector.shape_cast %171 : vector<1x32xf32> to vector<1x32xf32>
    %241 = vector.broadcast %240 : vector<1x32xf32> to vector<8x32xf32>
    %242 = vector.shape_cast %178 : vector<1x32xf32> to vector<1x32xf32>
    %243 = vector.broadcast %242 : vector<1x32xf32> to vector<8x32xf32>
    %244 = vector.shape_cast %185 : vector<1x32xf32> to vector<1x32xf32>
    %245 = vector.broadcast %244 : vector<1x32xf32> to vector<8x32xf32>
    %246 = vector.shape_cast %192 : vector<1x32xf32> to vector<1x32xf32>
    %247 = vector.broadcast %246 : vector<1x32xf32> to vector<8x32xf32>
    %248 = vector.shape_cast %199 : vector<1x32xf32> to vector<1x32xf32>
    %249 = vector.broadcast %248 : vector<1x32xf32> to vector<8x32xf32>
    %250 = tpu.concatenate %235, %237, %239, %241, %243, %245, %247, %249 in 0 : vector<8x32xf32>, vector<8x32xf32>, vector<8x32xf32>, vector<8x32xf32>, vector<8x32xf32>, vector<8x32xf32>, vector<8x32xf32>, vector<8x32xf32> -> vector<64x32xf32>
    %cst_61 = arith.constant dense<0.000000e+00> : vector<8x64xf32>
    %251 = tpu.matmul %140, %216, %cst_61 {dimension_numbers = #tpu.dot_dimension_numbers<[1], [1], [0], [0], [0, 0, 1, 0], [], []>} : vector<8x32xf32>, vector<64x32xf32>, vector<8x64xf32> -> vector<8x64xf32>
    %cst_62 = arith.constant dense<0xFF800000> : vector<8xf32>
    %252 = vector.multi_reduction <maximumf>, %251, %cst_62 [1] : vector<8x64xf32> to vector<8xf32>
    %253 = vector.shape_cast %252 : vector<8xf32> to vector<8x1xf32>
    %254 = vector.broadcast %253 : vector<8x1xf32> to vector<8x64xf32>
    %255 = arith.subf %251, %254 : vector<8x64xf32>
    %256 = math.exp %255 : vector<8x64xf32>
    %cst_63 = arith.constant dense<0.000000e+00> : vector<8x32xf32>
    %257 = tpu.matmul %256, %233, %cst_63 {dimension_numbers = #tpu.dot_dimension_numbers<[1], [0], [0], [1], [0, 0, 1, 1], [], []>} : vector<8x64xf32>, vector<64x32xf32>, vector<8x32xf32> -> vector<8x32xf32>
    %cst_64 = arith.constant dense<0.000000e+00> : vector<8x32xf32>
    %258 = tpu.matmul %256, %250, %cst_64 {dimension_numbers = #tpu.dot_dimension_numbers<[1], [0], [0], [1], [0, 0, 1, 1], [], []>} : vector<8x64xf32>, vector<64x32xf32>, vector<8x32xf32> -> vector<8x32xf32>
    %259 = tpu.reciprocal %258 {approx = true} : vector<8x32xf32> -> vector<8x32xf32>
    %260 = arith.mulf %257, %259 : vector<8x32xf32>
    %c264 = arith.constant 264 : index
    %c0_65 = arith.constant 0 : index
    %261 = vector.load %arg3[%c264, %c0_65] : memref<1288x128xf32, #tpu.memory_space<vmem>>, vector<32x32xf32>
    %cst_66 = arith.constant dense<0.000000e+00> : vector<8x32xf32>
    %262 = tpu.matmul %260, %261, %cst_66 {dimension_numbers = #tpu.dot_dimension_numbers<[1], [0], [0], [1], [0, 0, 1, 1], [], []>} : vector<8x32xf32>, vector<32x32xf32>, vector<8x32xf32> -> vector<8x32xf32>
    %263 = arith.addf %108, %262 : vector<8x32xf32>
    %c14 = arith.constant 14 : index
    %c0_67 = arith.constant 0 : index
    %264 = vector.load %arg5[%c14, %c0_67] : memref<48x384xf32, #tpu.memory_space<vmem>>, vector<1x32xf32>
    %265 = vector.broadcast %264 : vector<1x32xf32> to vector<8x32xf32>
    %266 = arith.addf %263, %265 : vector<8x32xf32>
    %c296 = arith.constant 296 : index
    %c0_68 = arith.constant 0 : index
    %267 = vector.load %arg3[%c296, %c0_68] : memref<1288x128xf32, #tpu.memory_space<vmem>>, vector<32x64xf32>
    %cst_69 = arith.constant dense<0.000000e+00> : vector<8x64xf32>
    %268 = tpu.matmul %266, %267, %cst_69 {dimension_numbers = #tpu.dot_dimension_numbers<[1], [0], [0], [1], [0, 0, 1, 1], [], []>} : vector<8x32xf32>, vector<32x64xf32>, vector<8x64xf32> -> vector<8x64xf32>
    %c15 = arith.constant 15 : index
    %c0_70 = arith.constant 0 : index
    %269 = vector.load %arg5[%c15, %c0_70] : memref<48x384xf32, #tpu.memory_space<vmem>>, vector<1x64xf32>
    %270 = vector.broadcast %269 : vector<1x64xf32> to vector<8x64xf32>
    %271 = arith.addf %268, %270 : vector<8x64xf32>
    %c328 = arith.constant 328 : index
    %c0_71 = arith.constant 0 : index
    %272 = vector.load %arg3[%c328, %c0_71] : memref<1288x128xf32, #tpu.memory_space<vmem>>, vector<32x64xf32>
    %cst_72 = arith.constant dense<0.000000e+00> : vector<8x64xf32>
    %273 = tpu.matmul %60, %272, %cst_72 {dimension_numbers = #tpu.dot_dimension_numbers<[1], [0], [0], [1], [0, 0, 1, 1], [], []>} : vector<8x32xf32>, vector<32x64xf32>, vector<8x64xf32> -> vector<8x64xf32>
    %274 = arith.addf %271, %273 : vector<8x64xf32>
    %c16 = arith.constant 16 : index
    %c0_73 = arith.constant 0 : index
    %275 = vector.load %arg5[%c16, %c0_73] : memref<48x384xf32, #tpu.memory_space<vmem>>, vector<1x64xf32>
    %276 = vector.broadcast %275 : vector<1x64xf32> to vector<8x64xf32>
    %277 = arith.addf %274, %276 : vector<8x64xf32>
    %c360 = arith.constant 360 : index
    %c0_74 = arith.constant 0 : index
    %278 = vector.load %arg3[%c360, %c0_74] : memref<1288x128xf32, #tpu.memory_space<vmem>>, vector<64x64xf32>
    %cst_75 = arith.constant dense<0.000000e+00> : vector<8x64xf32>
    %279 = tpu.matmul %277, %278, %cst_75 {dimension_numbers = #tpu.dot_dimension_numbers<[1], [0], [0], [1], [0, 0, 1, 1], [], []>} : vector<8x64xf32>, vector<64x64xf32>, vector<8x64xf32> -> vector<8x64xf32>
    %c17 = arith.constant 17 : index
    %c0_76 = arith.constant 0 : index
    %280 = vector.load %arg5[%c17, %c0_76] : memref<48x384xf32, #tpu.memory_space<vmem>>, vector<1x64xf32>
    %281 = vector.broadcast %280 : vector<1x64xf32> to vector<8x64xf32>
    %282 = arith.addf %279, %281 : vector<8x64xf32>
    %c18 = arith.constant 18 : index
    %c0_77 = arith.constant 0 : index
    %283 = vector.load %arg5[%c18, %c0_77] : memref<48x384xf32, #tpu.memory_space<vmem>>, vector<1x64xf32>
    %c19 = arith.constant 19 : index
    %c0_78 = arith.constant 0 : index
    %284 = vector.load %arg5[%c19, %c0_78] : memref<48x384xf32, #tpu.memory_space<vmem>>, vector<1x64xf32>
    %cst_79 = arith.constant dense<0.000000e+00> : vector<8xf32>
    %285 = vector.multi_reduction <add>, %282, %cst_79 [1] : vector<8x64xf32> to vector<8xf32>
    %286 = vector.shape_cast %285 : vector<8xf32> to vector<8x1xf32>
    %cst_80 = arith.constant 6.400000e+01 : f32
    %287 = vector.broadcast %cst_80 : f32 to vector<8x1xf32>
    %288 = arith.divf %286, %287 : vector<8x1xf32>
    %289 = vector.broadcast %288 : vector<8x1xf32> to vector<8x64xf32>
    %290 = arith.subf %282, %289 : vector<8x64xf32>
    %291 = arith.mulf %290, %290 : vector<8x64xf32>
    %cst_81 = arith.constant dense<0.000000e+00> : vector<8xf32>
    %292 = vector.multi_reduction <add>, %291, %cst_81 [1] : vector<8x64xf32> to vector<8xf32>
    %293 = vector.shape_cast %292 : vector<8xf32> to vector<8x1xf32>
    %cst_82 = arith.constant 6.400000e+01 : f32
    %294 = vector.broadcast %cst_82 : f32 to vector<8x1xf32>
    %295 = arith.divf %293, %294 : vector<8x1xf32>
    %296 = vector.broadcast %288 : vector<8x1xf32> to vector<8x64xf32>
    %297 = arith.subf %282, %296 : vector<8x64xf32>
    %cst_83 = arith.constant 9.99999974E-6 : f32
    %298 = vector.broadcast %cst_83 : f32 to vector<8x1xf32>
    %299 = arith.addf %295, %298 : vector<8x1xf32>
    %300 = math.rsqrt %299 : vector<8x1xf32>
    %301 = vector.broadcast %300 : vector<8x1xf32> to vector<8x64xf32>
    %302 = arith.mulf %297, %301 : vector<8x64xf32>
    %303 = vector.broadcast %283 : vector<1x64xf32> to vector<8x64xf32>
    %304 = arith.mulf %302, %303 : vector<8x64xf32>
    %305 = vector.broadcast %284 : vector<1x64xf32> to vector<8x64xf32>
    %306 = arith.addf %304, %305 : vector<8x64xf32>
    %307 = arith.negf %306 : vector<8x64xf32>
    %308 = math.exp %307 : vector<8x64xf32>
    %cst_84 = arith.constant 1.000000e+00 : f32
    %309 = vector.broadcast %cst_84 : f32 to vector<8x64xf32>
    %310 = arith.addf %309, %308 : vector<8x64xf32>
    %311 = arith.divf %309, %310 : vector<8x64xf32>
    %312 = arith.mulf %306, %311 : vector<8x64xf32>
    %313 = arith.addf %312, %277 : vector<8x64xf32>
    %c20 = arith.constant 20 : index
    %c0_85 = arith.constant 0 : index
    %314 = vector.load %arg5[%c20, %c0_85] : memref<48x384xf32, #tpu.memory_space<vmem>>, vector<1x64xf32>
    %c21 = arith.constant 21 : index
    %c0_86 = arith.constant 0 : index
    %315 = vector.load %arg5[%c21, %c0_86] : memref<48x384xf32, #tpu.memory_space<vmem>>, vector<1x64xf32>
    %cst_87 = arith.constant dense<0.000000e+00> : vector<8xf32>
    %316 = vector.multi_reduction <add>, %313, %cst_87 [1] : vector<8x64xf32> to vector<8xf32>
    %317 = vector.shape_cast %316 : vector<8xf32> to vector<8x1xf32>
    %cst_88 = arith.constant 6.400000e+01 : f32
    %318 = vector.broadcast %cst_88 : f32 to vector<8x1xf32>
    %319 = arith.divf %317, %318 : vector<8x1xf32>
    %320 = vector.broadcast %319 : vector<8x1xf32> to vector<8x64xf32>
    %321 = arith.subf %313, %320 : vector<8x64xf32>
    %322 = arith.mulf %321, %321 : vector<8x64xf32>
    %cst_89 = arith.constant dense<0.000000e+00> : vector<8xf32>
    %323 = vector.multi_reduction <add>, %322, %cst_89 [1] : vector<8x64xf32> to vector<8xf32>
    %324 = vector.shape_cast %323 : vector<8xf32> to vector<8x1xf32>
    %cst_90 = arith.constant 6.400000e+01 : f32
    %325 = vector.broadcast %cst_90 : f32 to vector<8x1xf32>
    %326 = arith.divf %324, %325 : vector<8x1xf32>
    %327 = vector.broadcast %319 : vector<8x1xf32> to vector<8x64xf32>
    %328 = arith.subf %313, %327 : vector<8x64xf32>
    %cst_91 = arith.constant 9.99999974E-6 : f32
    %329 = vector.broadcast %cst_91 : f32 to vector<8x1xf32>
    %330 = arith.addf %326, %329 : vector<8x1xf32>
    %331 = math.rsqrt %330 : vector<8x1xf32>
    %332 = vector.broadcast %331 : vector<8x1xf32> to vector<8x64xf32>
    %333 = arith.mulf %328, %332 : vector<8x64xf32>
    %334 = vector.broadcast %314 : vector<1x64xf32> to vector<8x64xf32>
    %335 = arith.mulf %333, %334 : vector<8x64xf32>
    %336 = vector.broadcast %315 : vector<1x64xf32> to vector<8x64xf32>
    %337 = arith.addf %335, %336 : vector<8x64xf32>
    %c32_92 = arith.constant 32 : index
    %c0_93 = arith.constant 0 : index
    %338 = vector.load %arg4[%c32_92, %c0_93] : memref<288x384xf32, #tpu.memory_space<vmem>>, vector<64x384xf32>
    %cst_94 = arith.constant dense<0.000000e+00> : vector<8x384xf32>
    %339 = tpu.matmul %337, %338, %cst_94 {dimension_numbers = #tpu.dot_dimension_numbers<[1], [0], [0], [1], [0, 0, 1, 1], [], []>} : vector<8x64xf32>, vector<64x384xf32>, vector<8x384xf32> -> vector<8x384xf32>
    %c22 = arith.constant 22 : index
    %c0_95 = arith.constant 0 : index
    %340 = vector.load %arg5[%c22, %c0_95] : memref<48x384xf32, #tpu.memory_space<vmem>>, vector<1x384xf32>
    %341 = vector.broadcast %340 : vector<1x384xf32> to vector<8x384xf32>
    %342 = arith.addf %339, %341 : vector<8x384xf32>
    %343 = vector.extract_strided_slice %342 {offsets = [0, 0], sizes = [8, 64], strides = [1, 1]} : vector<8x384xf32> to vector<8x64xf32>
    %cst_96 = arith.constant 0.353553385 : f32
    %344 = vector.broadcast %cst_96 : f32 to vector<8x64xf32>
    %345 = arith.mulf %343, %344 : vector<8x64xf32>
    %346 = vector.extract_strided_slice %342 {offsets = [0, 128], sizes = [8, 64], strides = [1, 1]} : vector<8x384xf32> to vector<8x64xf32>
    %347 = vector.extract_strided_slice %342 {offsets = [0, 256], sizes = [8, 64], strides = [1, 1]} : vector<8x384xf32> to vector<8x64xf32>
    %348 = tpu.iota {dimensions = array<i32: 1>} : vector<1x64xi32>
    %c0_i32_97 = arith.constant 0 : i32
    %349 = vector.broadcast %c0_i32_97 : i32 to vector<1x64xi32>
    %350 = arith.cmpi sge, %348, %349 : vector<1x64xi32>
    %c8_i32_98 = arith.constant 8 : i32
    %351 = vector.broadcast %c8_i32_98 : i32 to vector<1x64xi32>
    %352 = arith.cmpi slt, %348, %351 : vector<1x64xi32>
    %353 = arith.andi %350, %352 : vector<1x64xi1>
    %354 = arith.extui %353 : vector<1x64xi1> to vector<1x64xi32>
    %355 = arith.sitofp %354 : vector<1x64xi32> to vector<1x64xf32>
    %c8_i32_99 = arith.constant 8 : i32
    %356 = vector.broadcast %c8_i32_99 : i32 to vector<1x64xi32>
    %357 = arith.cmpi sge, %348, %356 : vector<1x64xi32>
    %c16_i32_100 = arith.constant 16 : i32
    %358 = vector.broadcast %c16_i32_100 : i32 to vector<1x64xi32>
    %359 = arith.cmpi slt, %348, %358 : vector<1x64xi32>
    %360 = arith.andi %357, %359 : vector<1x64xi1>
    %361 = arith.extui %360 : vector<1x64xi1> to vector<1x64xi32>
    %362 = arith.sitofp %361 : vector<1x64xi32> to vector<1x64xf32>
    %c16_i32_101 = arith.constant 16 : i32
    %363 = vector.broadcast %c16_i32_101 : i32 to vector<1x64xi32>
    %364 = arith.cmpi sge, %348, %363 : vector<1x64xi32>
    %c24_i32_102 = arith.constant 24 : i32
    %365 = vector.broadcast %c24_i32_102 : i32 to vector<1x64xi32>
    %366 = arith.cmpi slt, %348, %365 : vector<1x64xi32>
    %367 = arith.andi %364, %366 : vector<1x64xi1>
    %368 = arith.extui %367 : vector<1x64xi1> to vector<1x64xi32>
    %369 = arith.sitofp %368 : vector<1x64xi32> to vector<1x64xf32>
    %c24_i32_103 = arith.constant 24 : i32
    %370 = vector.broadcast %c24_i32_103 : i32 to vector<1x64xi32>
    %371 = arith.cmpi sge, %348, %370 : vector<1x64xi32>
    %c32_i32_104 = arith.constant 32 : i32
    %372 = vector.broadcast %c32_i32_104 : i32 to vector<1x64xi32>
    %373 = arith.cmpi slt, %348, %372 : vector<1x64xi32>
    %374 = arith.andi %371, %373 : vector<1x64xi1>
    %375 = arith.extui %374 : vector<1x64xi1> to vector<1x64xi32>
    %376 = arith.sitofp %375 : vector<1x64xi32> to vector<1x64xf32>
    %c32_i32_105 = arith.constant 32 : i32
    %377 = vector.broadcast %c32_i32_105 : i32 to vector<1x64xi32>
    %378 = arith.cmpi sge, %348, %377 : vector<1x64xi32>
    %c40_i32 = arith.constant 40 : i32
    %379 = vector.broadcast %c40_i32 : i32 to vector<1x64xi32>
    %380 = arith.cmpi slt, %348, %379 : vector<1x64xi32>
    %381 = arith.andi %378, %380 : vector<1x64xi1>
    %382 = arith.extui %381 : vector<1x64xi1> to vector<1x64xi32>
    %383 = arith.sitofp %382 : vector<1x64xi32> to vector<1x64xf32>
    %c40_i32_106 = arith.constant 40 : i32
    %384 = vector.broadcast %c40_i32_106 : i32 to vector<1x64xi32>
    %385 = arith.cmpi sge, %348, %384 : vector<1x64xi32>
    %c48_i32 = arith.constant 48 : i32
    %386 = vector.broadcast %c48_i32 : i32 to vector<1x64xi32>
    %387 = arith.cmpi slt, %348, %386 : vector<1x64xi32>
    %388 = arith.andi %385, %387 : vector<1x64xi1>
    %389 = arith.extui %388 : vector<1x64xi1> to vector<1x64xi32>
    %390 = arith.sitofp %389 : vector<1x64xi32> to vector<1x64xf32>
    %c48_i32_107 = arith.constant 48 : i32
    %391 = vector.broadcast %c48_i32_107 : i32 to vector<1x64xi32>
    %392 = arith.cmpi sge, %348, %391 : vector<1x64xi32>
    %c56_i32 = arith.constant 56 : i32
    %393 = vector.broadcast %c56_i32 : i32 to vector<1x64xi32>
    %394 = arith.cmpi slt, %348, %393 : vector<1x64xi32>
    %395 = arith.andi %392, %394 : vector<1x64xi1>
    %396 = arith.extui %395 : vector<1x64xi1> to vector<1x64xi32>
    %397 = arith.sitofp %396 : vector<1x64xi32> to vector<1x64xf32>
    %c56_i32_108 = arith.constant 56 : i32
    %398 = vector.broadcast %c56_i32_108 : i32 to vector<1x64xi32>
    %399 = arith.cmpi sge, %348, %398 : vector<1x64xi32>
    %c64_i32 = arith.constant 64 : i32
    %400 = vector.broadcast %c64_i32 : i32 to vector<1x64xi32>
    %401 = arith.cmpi slt, %348, %400 : vector<1x64xi32>
    %402 = arith.andi %399, %401 : vector<1x64xi1>
    %403 = arith.extui %402 : vector<1x64xi1> to vector<1x64xi32>
    %404 = arith.sitofp %403 : vector<1x64xi32> to vector<1x64xf32>
    %405 = vector.broadcast %355 : vector<1x64xf32> to vector<8x64xf32>
    %406 = arith.mulf %346, %405 : vector<8x64xf32>
    %407 = vector.broadcast %362 : vector<1x64xf32> to vector<8x64xf32>
    %408 = arith.mulf %346, %407 : vector<8x64xf32>
    %409 = vector.broadcast %369 : vector<1x64xf32> to vector<8x64xf32>
    %410 = arith.mulf %346, %409 : vector<8x64xf32>
    %411 = vector.broadcast %376 : vector<1x64xf32> to vector<8x64xf32>
    %412 = arith.mulf %346, %411 : vector<8x64xf32>
    %413 = vector.broadcast %383 : vector<1x64xf32> to vector<8x64xf32>
    %414 = arith.mulf %346, %413 : vector<8x64xf32>
    %415 = vector.broadcast %390 : vector<1x64xf32> to vector<8x64xf32>
    %416 = arith.mulf %346, %415 : vector<8x64xf32>
    %417 = vector.broadcast %397 : vector<1x64xf32> to vector<8x64xf32>
    %418 = arith.mulf %346, %417 : vector<8x64xf32>
    %419 = vector.broadcast %404 : vector<1x64xf32> to vector<8x64xf32>
    %420 = arith.mulf %346, %419 : vector<8x64xf32>
    %421 = tpu.concatenate %406, %408, %410, %412, %414, %416, %418, %420 in 0 : vector<8x64xf32>, vector<8x64xf32>, vector<8x64xf32>, vector<8x64xf32>, vector<8x64xf32>, vector<8x64xf32>, vector<8x64xf32>, vector<8x64xf32> -> vector<64x64xf32>
    %422 = vector.broadcast %355 : vector<1x64xf32> to vector<8x64xf32>
    %423 = arith.mulf %347, %422 : vector<8x64xf32>
    %424 = vector.broadcast %362 : vector<1x64xf32> to vector<8x64xf32>
    %425 = arith.mulf %347, %424 : vector<8x64xf32>
    %426 = vector.broadcast %369 : vector<1x64xf32> to vector<8x64xf32>
    %427 = arith.mulf %347, %426 : vector<8x64xf32>
    %428 = vector.broadcast %376 : vector<1x64xf32> to vector<8x64xf32>
    %429 = arith.mulf %347, %428 : vector<8x64xf32>
    %430 = vector.broadcast %383 : vector<1x64xf32> to vector<8x64xf32>
    %431 = arith.mulf %347, %430 : vector<8x64xf32>
    %432 = vector.broadcast %390 : vector<1x64xf32> to vector<8x64xf32>
    %433 = arith.mulf %347, %432 : vector<8x64xf32>
    %434 = vector.broadcast %397 : vector<1x64xf32> to vector<8x64xf32>
    %435 = arith.mulf %347, %434 : vector<8x64xf32>
    %436 = vector.broadcast %404 : vector<1x64xf32> to vector<8x64xf32>
    %437 = arith.mulf %347, %436 : vector<8x64xf32>
    %438 = tpu.concatenate %423, %425, %427, %429, %431, %433, %435, %437 in 0 : vector<8x64xf32>, vector<8x64xf32>, vector<8x64xf32>, vector<8x64xf32>, vector<8x64xf32>, vector<8x64xf32>, vector<8x64xf32>, vector<8x64xf32> -> vector<64x64xf32>
    %439 = vector.shape_cast %355 : vector<1x64xf32> to vector<1x64xf32>
    %440 = vector.broadcast %439 : vector<1x64xf32> to vector<8x64xf32>
    %441 = vector.shape_cast %362 : vector<1x64xf32> to vector<1x64xf32>
    %442 = vector.broadcast %441 : vector<1x64xf32> to vector<8x64xf32>
    %443 = vector.shape_cast %369 : vector<1x64xf32> to vector<1x64xf32>
    %444 = vector.broadcast %443 : vector<1x64xf32> to vector<8x64xf32>
    %445 = vector.shape_cast %376 : vector<1x64xf32> to vector<1x64xf32>
    %446 = vector.broadcast %445 : vector<1x64xf32> to vector<8x64xf32>
    %447 = vector.shape_cast %383 : vector<1x64xf32> to vector<1x64xf32>
    %448 = vector.broadcast %447 : vector<1x64xf32> to vector<8x64xf32>
    %449 = vector.shape_cast %390 : vector<1x64xf32> to vector<1x64xf32>
    %450 = vector.broadcast %449 : vector<1x64xf32> to vector<8x64xf32>
    %451 = vector.shape_cast %397 : vector<1x64xf32> to vector<1x64xf32>
    %452 = vector.broadcast %451 : vector<1x64xf32> to vector<8x64xf32>
    %453 = vector.shape_cast %404 : vector<1x64xf32> to vector<1x64xf32>
    %454 = vector.broadcast %453 : vector<1x64xf32> to vector<8x64xf32>
    %455 = tpu.concatenate %440, %442, %444, %446, %448, %450, %452, %454 in 0 : vector<8x64xf32>, vector<8x64xf32>, vector<8x64xf32>, vector<8x64xf32>, vector<8x64xf32>, vector<8x64xf32>, vector<8x64xf32>, vector<8x64xf32> -> vector<64x64xf32>
    %cst_109 = arith.constant dense<0.000000e+00> : vector<8x64xf32>
    %456 = tpu.matmul %345, %421, %cst_109 {dimension_numbers = #tpu.dot_dimension_numbers<[1], [1], [0], [0], [0, 0, 1, 0], [], []>} : vector<8x64xf32>, vector<64x64xf32>, vector<8x64xf32> -> vector<8x64xf32>
    %cst_110 = arith.constant dense<0xFF800000> : vector<8xf32>
    %457 = vector.multi_reduction <maximumf>, %456, %cst_110 [1] : vector<8x64xf32> to vector<8xf32>
    %458 = vector.shape_cast %457 : vector<8xf32> to vector<8x1xf32>
    %459 = vector.broadcast %458 : vector<8x1xf32> to vector<8x64xf32>
    %460 = arith.subf %456, %459 : vector<8x64xf32>
    %461 = math.exp %460 : vector<8x64xf32>
    %cst_111 = arith.constant dense<0.000000e+00> : vector<8x64xf32>
    %462 = tpu.matmul %461, %438, %cst_111 {dimension_numbers = #tpu.dot_dimension_numbers<[1], [0], [0], [1], [0, 0, 1, 1], [], []>} : vector<8x64xf32>, vector<64x64xf32>, vector<8x64xf32> -> vector<8x64xf32>
    %cst_112 = arith.constant dense<0.000000e+00> : vector<8x64xf32>
    %463 = tpu.matmul %461, %455, %cst_112 {dimension_numbers = #tpu.dot_dimension_numbers<[1], [0], [0], [1], [0, 0, 1, 1], [], []>} : vector<8x64xf32>, vector<64x64xf32>, vector<8x64xf32> -> vector<8x64xf32>
    %464 = tpu.reciprocal %463 {approx = true} : vector<8x64xf32> -> vector<8x64xf32>
    %465 = arith.mulf %462, %464 : vector<8x64xf32>
    %c424 = arith.constant 424 : index
    %c0_113 = arith.constant 0 : index
    %466 = vector.load %arg3[%c424, %c0_113] : memref<1288x128xf32, #tpu.memory_space<vmem>>, vector<64x64xf32>
    %cst_114 = arith.constant dense<0.000000e+00> : vector<8x64xf32>
    %467 = tpu.matmul %465, %466, %cst_114 {dimension_numbers = #tpu.dot_dimension_numbers<[1], [0], [0], [1], [0, 0, 1, 1], [], []>} : vector<8x64xf32>, vector<64x64xf32>, vector<8x64xf32> -> vector<8x64xf32>
    %468 = arith.addf %313, %467 : vector<8x64xf32>
    %c23 = arith.constant 23 : index
    %c0_115 = arith.constant 0 : index
    %469 = vector.load %arg5[%c23, %c0_115] : memref<48x384xf32, #tpu.memory_space<vmem>>, vector<1x64xf32>
    %470 = vector.broadcast %469 : vector<1x64xf32> to vector<8x64xf32>
    %471 = arith.addf %468, %470 : vector<8x64xf32>
    %c488 = arith.constant 488 : index
    %c0_116 = arith.constant 0 : index
    %472 = vector.load %arg3[%c488, %c0_116] : memref<1288x128xf32, #tpu.memory_space<vmem>>, vector<64x128xf32>
    %cst_117 = arith.constant dense<0.000000e+00> : vector<8x128xf32>
    %473 = tpu.matmul %471, %472, %cst_117 {dimension_numbers = #tpu.dot_dimension_numbers<[1], [0], [0], [1], [0, 0, 1, 1], [], []>} : vector<8x64xf32>, vector<64x128xf32>, vector<8x128xf32> -> vector<8x128xf32>
    %c24 = arith.constant 24 : index
    %c0_118 = arith.constant 0 : index
    %474 = vector.load %arg5[%c24, %c0_118] : memref<48x384xf32, #tpu.memory_space<vmem>>, vector<1x128xf32>
    %475 = vector.broadcast %474 : vector<1x128xf32> to vector<8x128xf32>
    %476 = arith.addf %473, %475 : vector<8x128xf32>
    %c552 = arith.constant 552 : index
    %c0_119 = arith.constant 0 : index
    %477 = vector.load %arg3[%c552, %c0_119] : memref<1288x128xf32, #tpu.memory_space<vmem>>, vector<32x128xf32>
    %cst_120 = arith.constant dense<0.000000e+00> : vector<8x128xf32>
    %478 = tpu.matmul %60, %477, %cst_120 {dimension_numbers = #tpu.dot_dimension_numbers<[1], [0], [0], [1], [0, 0, 1, 1], [], []>} : vector<8x32xf32>, vector<32x128xf32>, vector<8x128xf32> -> vector<8x128xf32>
    %479 = arith.addf %476, %478 : vector<8x128xf32>
    %c25 = arith.constant 25 : index
    %c0_121 = arith.constant 0 : index
    %480 = vector.load %arg5[%c25, %c0_121] : memref<48x384xf32, #tpu.memory_space<vmem>>, vector<1x128xf32>
    %481 = vector.broadcast %480 : vector<1x128xf32> to vector<8x128xf32>
    %482 = arith.addf %479, %481 : vector<8x128xf32>
    %c584 = arith.constant 584 : index
    %c0_122 = arith.constant 0 : index
    %483 = vector.load %arg3[%c584, %c0_122] : memref<1288x128xf32, #tpu.memory_space<vmem>>, vector<128x128xf32>
    %cst_123 = arith.constant dense<0.000000e+00> : vector<8x128xf32>
    %484 = tpu.matmul %482, %483, %cst_123 {dimension_numbers = #tpu.dot_dimension_numbers<[1], [0], [0], [1], [0, 0, 1, 1], [], []>} : vector<8x128xf32>, vector<128x128xf32>, vector<8x128xf32> -> vector<8x128xf32>
    %c26 = arith.constant 26 : index
    %c0_124 = arith.constant 0 : index
    %485 = vector.load %arg5[%c26, %c0_124] : memref<48x384xf32, #tpu.memory_space<vmem>>, vector<1x128xf32>
    %486 = vector.broadcast %485 : vector<1x128xf32> to vector<8x128xf32>
    %487 = arith.addf %484, %486 : vector<8x128xf32>
    %c27 = arith.constant 27 : index
    %c0_125 = arith.constant 0 : index
    %488 = vector.load %arg5[%c27, %c0_125] : memref<48x384xf32, #tpu.memory_space<vmem>>, vector<1x128xf32>
    %c28 = arith.constant 28 : index
    %c0_126 = arith.constant 0 : index
    %489 = vector.load %arg5[%c28, %c0_126] : memref<48x384xf32, #tpu.memory_space<vmem>>, vector<1x128xf32>
    %cst_127 = arith.constant dense<0.000000e+00> : vector<8xf32>
    %490 = vector.multi_reduction <add>, %487, %cst_127 [1] : vector<8x128xf32> to vector<8xf32>
    %491 = vector.shape_cast %490 : vector<8xf32> to vector<8x1xf32>
    %cst_128 = arith.constant 1.280000e+02 : f32
    %492 = vector.broadcast %cst_128 : f32 to vector<8x1xf32>
    %493 = arith.divf %491, %492 : vector<8x1xf32>
    %494 = vector.broadcast %493 : vector<8x1xf32> to vector<8x128xf32>
    %495 = arith.subf %487, %494 : vector<8x128xf32>
    %496 = arith.mulf %495, %495 : vector<8x128xf32>
    %cst_129 = arith.constant dense<0.000000e+00> : vector<8xf32>
    %497 = vector.multi_reduction <add>, %496, %cst_129 [1] : vector<8x128xf32> to vector<8xf32>
    %498 = vector.shape_cast %497 : vector<8xf32> to vector<8x1xf32>
    %cst_130 = arith.constant 1.280000e+02 : f32
    %499 = vector.broadcast %cst_130 : f32 to vector<8x1xf32>
    %500 = arith.divf %498, %499 : vector<8x1xf32>
    %501 = vector.broadcast %493 : vector<8x1xf32> to vector<8x128xf32>
    %502 = arith.subf %487, %501 : vector<8x128xf32>
    %cst_131 = arith.constant 9.99999974E-6 : f32
    %503 = vector.broadcast %cst_131 : f32 to vector<8x1xf32>
    %504 = arith.addf %500, %503 : vector<8x1xf32>
    %505 = math.rsqrt %504 : vector<8x1xf32>
    %506 = vector.broadcast %505 : vector<8x1xf32> to vector<8x128xf32>
    %507 = arith.mulf %502, %506 : vector<8x128xf32>
    %508 = vector.broadcast %488 : vector<1x128xf32> to vector<8x128xf32>
    %509 = arith.mulf %507, %508 : vector<8x128xf32>
    %510 = vector.broadcast %489 : vector<1x128xf32> to vector<8x128xf32>
    %511 = arith.addf %509, %510 : vector<8x128xf32>
    %512 = arith.negf %511 : vector<8x128xf32>
    %513 = math.exp %512 : vector<8x128xf32>
    %cst_132 = arith.constant 1.000000e+00 : f32
    %514 = vector.broadcast %cst_132 : f32 to vector<8x128xf32>
    %515 = arith.addf %514, %513 : vector<8x128xf32>
    %516 = arith.divf %514, %515 : vector<8x128xf32>
    %517 = arith.mulf %511, %516 : vector<8x128xf32>
    %518 = arith.addf %517, %482 : vector<8x128xf32>
    %c29 = arith.constant 29 : index
    %c0_133 = arith.constant 0 : index
    %519 = vector.load %arg5[%c29, %c0_133] : memref<48x384xf32, #tpu.memory_space<vmem>>, vector<1x128xf32>
    %c30 = arith.constant 30 : index
    %c0_134 = arith.constant 0 : index
    %520 = vector.load %arg5[%c30, %c0_134] : memref<48x384xf32, #tpu.memory_space<vmem>>, vector<1x128xf32>
    %cst_135 = arith.constant dense<0.000000e+00> : vector<8xf32>
    %521 = vector.multi_reduction <add>, %518, %cst_135 [1] : vector<8x128xf32> to vector<8xf32>
    %522 = vector.shape_cast %521 : vector<8xf32> to vector<8x1xf32>
    %cst_136 = arith.constant 1.280000e+02 : f32
    %523 = vector.broadcast %cst_136 : f32 to vector<8x1xf32>
    %524 = arith.divf %522, %523 : vector<8x1xf32>
    %525 = vector.broadcast %524 : vector<8x1xf32> to vector<8x128xf32>
    %526 = arith.subf %518, %525 : vector<8x128xf32>
    %527 = arith.mulf %526, %526 : vector<8x128xf32>
    %cst_137 = arith.constant dense<0.000000e+00> : vector<8xf32>
    %528 = vector.multi_reduction <add>, %527, %cst_137 [1] : vector<8x128xf32> to vector<8xf32>
    %529 = vector.shape_cast %528 : vector<8xf32> to vector<8x1xf32>
    %cst_138 = arith.constant 1.280000e+02 : f32
    %530 = vector.broadcast %cst_138 : f32 to vector<8x1xf32>
    %531 = arith.divf %529, %530 : vector<8x1xf32>
    %532 = vector.broadcast %524 : vector<8x1xf32> to vector<8x128xf32>
    %533 = arith.subf %518, %532 : vector<8x128xf32>
    %cst_139 = arith.constant 9.99999974E-6 : f32
    %534 = vector.broadcast %cst_139 : f32 to vector<8x1xf32>
    %535 = arith.addf %531, %534 : vector<8x1xf32>
    %536 = math.rsqrt %535 : vector<8x1xf32>
    %537 = vector.broadcast %536 : vector<8x1xf32> to vector<8x128xf32>
    %538 = arith.mulf %533, %537 : vector<8x128xf32>
    %539 = vector.broadcast %519 : vector<1x128xf32> to vector<8x128xf32>
    %540 = arith.mulf %538, %539 : vector<8x128xf32>
    %541 = vector.broadcast %520 : vector<1x128xf32> to vector<8x128xf32>
    %542 = arith.addf %540, %541 : vector<8x128xf32>
    %c96_140 = arith.constant 96 : index
    %c0_141 = arith.constant 0 : index
    %543 = vector.load %arg4[%c96_140, %c0_141] : memref<288x384xf32, #tpu.memory_space<vmem>>, vector<128x384xf32>
    %cst_142 = arith.constant dense<0.000000e+00> : vector<8x384xf32>
    %544 = tpu.matmul %542, %543, %cst_142 {dimension_numbers = #tpu.dot_dimension_numbers<[1], [0], [0], [1], [0, 0, 1, 1], [], []>} : vector<8x128xf32>, vector<128x384xf32>, vector<8x384xf32> -> vector<8x384xf32>
    %c31 = arith.constant 31 : index
    %c0_143 = arith.constant 0 : index
    %545 = vector.load %arg5[%c31, %c0_143] : memref<48x384xf32, #tpu.memory_space<vmem>>, vector<1x384xf32>
    %546 = vector.broadcast %545 : vector<1x384xf32> to vector<8x384xf32>
    %547 = arith.addf %544, %546 : vector<8x384xf32>
    %548 = vector.extract_strided_slice %547 {offsets = [0, 0], sizes = [8, 128], strides = [1, 1]} : vector<8x384xf32> to vector<8x128xf32>
    %cst_144 = arith.constant 2.500000e-01 : f32
    %549 = vector.broadcast %cst_144 : f32 to vector<8x128xf32>
    %550 = arith.mulf %548, %549 : vector<8x128xf32>
    %551 = vector.extract_strided_slice %547 {offsets = [0, 128], sizes = [8, 128], strides = [1, 1]} : vector<8x384xf32> to vector<8x128xf32>
    %552 = vector.extract_strided_slice %547 {offsets = [0, 256], sizes = [8, 128], strides = [1, 1]} : vector<8x384xf32> to vector<8x128xf32>
    %553 = tpu.iota {dimensions = array<i32: 1>} : vector<1x128xi32>
    %c0_i32_145 = arith.constant 0 : i32
    %554 = vector.broadcast %c0_i32_145 : i32 to vector<1x128xi32>
    %555 = arith.cmpi sge, %553, %554 : vector<1x128xi32>
    %c16_i32_146 = arith.constant 16 : i32
    %556 = vector.broadcast %c16_i32_146 : i32 to vector<1x128xi32>
    %557 = arith.cmpi slt, %553, %556 : vector<1x128xi32>
    %558 = arith.andi %555, %557 : vector<1x128xi1>
    %559 = arith.extui %558 : vector<1x128xi1> to vector<1x128xi32>
    %560 = arith.sitofp %559 : vector<1x128xi32> to vector<1x128xf32>
    %c16_i32_147 = arith.constant 16 : i32
    %561 = vector.broadcast %c16_i32_147 : i32 to vector<1x128xi32>
    %562 = arith.cmpi sge, %553, %561 : vector<1x128xi32>
    %c32_i32_148 = arith.constant 32 : i32
    %563 = vector.broadcast %c32_i32_148 : i32 to vector<1x128xi32>
    %564 = arith.cmpi slt, %553, %563 : vector<1x128xi32>
    %565 = arith.andi %562, %564 : vector<1x128xi1>
    %566 = arith.extui %565 : vector<1x128xi1> to vector<1x128xi32>
    %567 = arith.sitofp %566 : vector<1x128xi32> to vector<1x128xf32>
    %c32_i32_149 = arith.constant 32 : i32
    %568 = vector.broadcast %c32_i32_149 : i32 to vector<1x128xi32>
    %569 = arith.cmpi sge, %553, %568 : vector<1x128xi32>
    %c48_i32_150 = arith.constant 48 : i32
    %570 = vector.broadcast %c48_i32_150 : i32 to vector<1x128xi32>
    %571 = arith.cmpi slt, %553, %570 : vector<1x128xi32>
    %572 = arith.andi %569, %571 : vector<1x128xi1>
    %573 = arith.extui %572 : vector<1x128xi1> to vector<1x128xi32>
    %574 = arith.sitofp %573 : vector<1x128xi32> to vector<1x128xf32>
    %c48_i32_151 = arith.constant 48 : i32
    %575 = vector.broadcast %c48_i32_151 : i32 to vector<1x128xi32>
    %576 = arith.cmpi sge, %553, %575 : vector<1x128xi32>
    %c64_i32_152 = arith.constant 64 : i32
    %577 = vector.broadcast %c64_i32_152 : i32 to vector<1x128xi32>
    %578 = arith.cmpi slt, %553, %577 : vector<1x128xi32>
    %579 = arith.andi %576, %578 : vector<1x128xi1>
    %580 = arith.extui %579 : vector<1x128xi1> to vector<1x128xi32>
    %581 = arith.sitofp %580 : vector<1x128xi32> to vector<1x128xf32>
    %c64_i32_153 = arith.constant 64 : i32
    %582 = vector.broadcast %c64_i32_153 : i32 to vector<1x128xi32>
    %583 = arith.cmpi sge, %553, %582 : vector<1x128xi32>
    %c80_i32 = arith.constant 80 : i32
    %584 = vector.broadcast %c80_i32 : i32 to vector<1x128xi32>
    %585 = arith.cmpi slt, %553, %584 : vector<1x128xi32>
    %586 = arith.andi %583, %585 : vector<1x128xi1>
    %587 = arith.extui %586 : vector<1x128xi1> to vector<1x128xi32>
    %588 = arith.sitofp %587 : vector<1x128xi32> to vector<1x128xf32>
    %c80_i32_154 = arith.constant 80 : i32
    %589 = vector.broadcast %c80_i32_154 : i32 to vector<1x128xi32>
    %590 = arith.cmpi sge, %553, %589 : vector<1x128xi32>
    %c96_i32 = arith.constant 96 : i32
    %591 = vector.broadcast %c96_i32 : i32 to vector<1x128xi32>
    %592 = arith.cmpi slt, %553, %591 : vector<1x128xi32>
    %593 = arith.andi %590, %592 : vector<1x128xi1>
    %594 = arith.extui %593 : vector<1x128xi1> to vector<1x128xi32>
    %595 = arith.sitofp %594 : vector<1x128xi32> to vector<1x128xf32>
    %c96_i32_155 = arith.constant 96 : i32
    %596 = vector.broadcast %c96_i32_155 : i32 to vector<1x128xi32>
    %597 = arith.cmpi sge, %553, %596 : vector<1x128xi32>
    %c112_i32 = arith.constant 112 : i32
    %598 = vector.broadcast %c112_i32 : i32 to vector<1x128xi32>
    %599 = arith.cmpi slt, %553, %598 : vector<1x128xi32>
    %600 = arith.andi %597, %599 : vector<1x128xi1>
    %601 = arith.extui %600 : vector<1x128xi1> to vector<1x128xi32>
    %602 = arith.sitofp %601 : vector<1x128xi32> to vector<1x128xf32>
    %c112_i32_156 = arith.constant 112 : i32
    %603 = vector.broadcast %c112_i32_156 : i32 to vector<1x128xi32>
    %604 = arith.cmpi sge, %553, %603 : vector<1x128xi32>
    %c128_i32 = arith.constant 128 : i32
    %605 = vector.broadcast %c128_i32 : i32 to vector<1x128xi32>
    %606 = arith.cmpi slt, %553, %605 : vector<1x128xi32>
    %607 = arith.andi %604, %606 : vector<1x128xi1>
    %608 = arith.extui %607 : vector<1x128xi1> to vector<1x128xi32>
    %609 = arith.sitofp %608 : vector<1x128xi32> to vector<1x128xf32>
    %610 = vector.broadcast %560 : vector<1x128xf32> to vector<8x128xf32>
    %611 = arith.mulf %551, %610 : vector<8x128xf32>
    %612 = vector.broadcast %567 : vector<1x128xf32> to vector<8x128xf32>
    %613 = arith.mulf %551, %612 : vector<8x128xf32>
    %614 = vector.broadcast %574 : vector<1x128xf32> to vector<8x128xf32>
    %615 = arith.mulf %551, %614 : vector<8x128xf32>
    %616 = vector.broadcast %581 : vector<1x128xf32> to vector<8x128xf32>
    %617 = arith.mulf %551, %616 : vector<8x128xf32>
    %618 = vector.broadcast %588 : vector<1x128xf32> to vector<8x128xf32>
    %619 = arith.mulf %551, %618 : vector<8x128xf32>
    %620 = vector.broadcast %595 : vector<1x128xf32> to vector<8x128xf32>
    %621 = arith.mulf %551, %620 : vector<8x128xf32>
    %622 = vector.broadcast %602 : vector<1x128xf32> to vector<8x128xf32>
    %623 = arith.mulf %551, %622 : vector<8x128xf32>
    %624 = vector.broadcast %609 : vector<1x128xf32> to vector<8x128xf32>
    %625 = arith.mulf %551, %624 : vector<8x128xf32>
    %626 = tpu.concatenate %611, %613, %615, %617, %619, %621, %623, %625 in 0 : vector<8x128xf32>, vector<8x128xf32>, vector<8x128xf32>, vector<8x128xf32>, vector<8x128xf32>, vector<8x128xf32>, vector<8x128xf32>, vector<8x128xf32> -> vector<64x128xf32>
    %627 = vector.broadcast %560 : vector<1x128xf32> to vector<8x128xf32>
    %628 = arith.mulf %552, %627 : vector<8x128xf32>
    %629 = vector.broadcast %567 : vector<1x128xf32> to vector<8x128xf32>
    %630 = arith.mulf %552, %629 : vector<8x128xf32>
    %631 = vector.broadcast %574 : vector<1x128xf32> to vector<8x128xf32>
    %632 = arith.mulf %552, %631 : vector<8x128xf32>
    %633 = vector.broadcast %581 : vector<1x128xf32> to vector<8x128xf32>
    %634 = arith.mulf %552, %633 : vector<8x128xf32>
    %635 = vector.broadcast %588 : vector<1x128xf32> to vector<8x128xf32>
    %636 = arith.mulf %552, %635 : vector<8x128xf32>
    %637 = vector.broadcast %595 : vector<1x128xf32> to vector<8x128xf32>
    %638 = arith.mulf %552, %637 : vector<8x128xf32>
    %639 = vector.broadcast %602 : vector<1x128xf32> to vector<8x128xf32>
    %640 = arith.mulf %552, %639 : vector<8x128xf32>
    %641 = vector.broadcast %609 : vector<1x128xf32> to vector<8x128xf32>
    %642 = arith.mulf %552, %641 : vector<8x128xf32>
    %643 = tpu.concatenate %628, %630, %632, %634, %636, %638, %640, %642 in 0 : vector<8x128xf32>, vector<8x128xf32>, vector<8x128xf32>, vector<8x128xf32>, vector<8x128xf32>, vector<8x128xf32>, vector<8x128xf32>, vector<8x128xf32> -> vector<64x128xf32>
    %644 = vector.shape_cast %560 : vector<1x128xf32> to vector<1x128xf32>
    %645 = vector.broadcast %644 : vector<1x128xf32> to vector<8x128xf32>
    %646 = vector.shape_cast %567 : vector<1x128xf32> to vector<1x128xf32>
    %647 = vector.broadcast %646 : vector<1x128xf32> to vector<8x128xf32>
    %648 = vector.shape_cast %574 : vector<1x128xf32> to vector<1x128xf32>
    %649 = vector.broadcast %648 : vector<1x128xf32> to vector<8x128xf32>
    %650 = vector.shape_cast %581 : vector<1x128xf32> to vector<1x128xf32>
    %651 = vector.broadcast %650 : vector<1x128xf32> to vector<8x128xf32>
    %652 = vector.shape_cast %588 : vector<1x128xf32> to vector<1x128xf32>
    %653 = vector.broadcast %652 : vector<1x128xf32> to vector<8x128xf32>
    %654 = vector.shape_cast %595 : vector<1x128xf32> to vector<1x128xf32>
    %655 = vector.broadcast %654 : vector<1x128xf32> to vector<8x128xf32>
    %656 = vector.shape_cast %602 : vector<1x128xf32> to vector<1x128xf32>
    %657 = vector.broadcast %656 : vector<1x128xf32> to vector<8x128xf32>
    %658 = vector.shape_cast %609 : vector<1x128xf32> to vector<1x128xf32>
    %659 = vector.broadcast %658 : vector<1x128xf32> to vector<8x128xf32>
    %660 = tpu.concatenate %645, %647, %649, %651, %653, %655, %657, %659 in 0 : vector<8x128xf32>, vector<8x128xf32>, vector<8x128xf32>, vector<8x128xf32>, vector<8x128xf32>, vector<8x128xf32>, vector<8x128xf32>, vector<8x128xf32> -> vector<64x128xf32>
    %cst_157 = arith.constant dense<0.000000e+00> : vector<8x64xf32>
    %661 = tpu.matmul %550, %626, %cst_157 {dimension_numbers = #tpu.dot_dimension_numbers<[1], [1], [0], [0], [0, 0, 1, 0], [], []>} : vector<8x128xf32>, vector<64x128xf32>, vector<8x64xf32> -> vector<8x64xf32>
    %cst_158 = arith.constant dense<0xFF800000> : vector<8xf32>
    %662 = vector.multi_reduction <maximumf>, %661, %cst_158 [1] : vector<8x64xf32> to vector<8xf32>
    %663 = vector.shape_cast %662 : vector<8xf32> to vector<8x1xf32>
    %664 = vector.broadcast %663 : vector<8x1xf32> to vector<8x64xf32>
    %665 = arith.subf %661, %664 : vector<8x64xf32>
    %666 = math.exp %665 : vector<8x64xf32>
    %cst_159 = arith.constant dense<0.000000e+00> : vector<8x128xf32>
    %667 = tpu.matmul %666, %643, %cst_159 {dimension_numbers = #tpu.dot_dimension_numbers<[1], [0], [0], [1], [0, 0, 1, 1], [], []>} : vector<8x64xf32>, vector<64x128xf32>, vector<8x128xf32> -> vector<8x128xf32>
    %cst_160 = arith.constant dense<0.000000e+00> : vector<8x128xf32>
    %668 = tpu.matmul %666, %660, %cst_160 {dimension_numbers = #tpu.dot_dimension_numbers<[1], [0], [0], [1], [0, 0, 1, 1], [], []>} : vector<8x64xf32>, vector<64x128xf32>, vector<8x128xf32> -> vector<8x128xf32>
    %669 = tpu.reciprocal %668 {approx = true} : vector<8x128xf32> -> vector<8x128xf32>
    %670 = arith.mulf %667, %669 : vector<8x128xf32>
    %c712 = arith.constant 712 : index
    %c0_161 = arith.constant 0 : index
    %671 = vector.load %arg3[%c712, %c0_161] : memref<1288x128xf32, #tpu.memory_space<vmem>>, vector<128x128xf32>
    %cst_162 = arith.constant dense<0.000000e+00> : vector<8x128xf32>
    %672 = tpu.matmul %670, %671, %cst_162 {dimension_numbers = #tpu.dot_dimension_numbers<[1], [0], [0], [1], [0, 0, 1, 1], [], []>} : vector<8x128xf32>, vector<128x128xf32>, vector<8x128xf32> -> vector<8x128xf32>
    %673 = arith.addf %518, %672 : vector<8x128xf32>
    %c32_163 = arith.constant 32 : index
    %c0_164 = arith.constant 0 : index
    %674 = vector.load %arg5[%c32_163, %c0_164] : memref<48x384xf32, #tpu.memory_space<vmem>>, vector<1x128xf32>
    %675 = vector.broadcast %674 : vector<1x128xf32> to vector<8x128xf32>
    %676 = arith.addf %673, %675 : vector<8x128xf32>
    %c840 = arith.constant 840 : index
    %c0_165 = arith.constant 0 : index
    %677 = vector.load %arg3[%c840, %c0_165] : memref<1288x128xf32, #tpu.memory_space<vmem>>, vector<128x64xf32>
    %cst_166 = arith.constant dense<0.000000e+00> : vector<8x64xf32>
    %678 = tpu.matmul %676, %677, %cst_166 {dimension_numbers = #tpu.dot_dimension_numbers<[1], [0], [0], [1], [0, 0, 1, 1], [], []>} : vector<8x128xf32>, vector<128x64xf32>, vector<8x64xf32> -> vector<8x64xf32>
    %c33 = arith.constant 33 : index
    %c0_167 = arith.constant 0 : index
    %679 = vector.load %arg5[%c33, %c0_167] : memref<48x384xf32, #tpu.memory_space<vmem>>, vector<1x64xf32>
    %680 = vector.broadcast %679 : vector<1x64xf32> to vector<8x64xf32>
    %681 = arith.addf %678, %680 : vector<8x64xf32>
    %c968 = arith.constant 968 : index
    %c0_168 = arith.constant 0 : index
    %682 = vector.load %arg3[%c968, %c0_168] : memref<1288x128xf32, #tpu.memory_space<vmem>>, vector<32x64xf32>
    %cst_169 = arith.constant dense<0.000000e+00> : vector<8x64xf32>
    %683 = tpu.matmul %60, %682, %cst_169 {dimension_numbers = #tpu.dot_dimension_numbers<[1], [0], [0], [1], [0, 0, 1, 1], [], []>} : vector<8x32xf32>, vector<32x64xf32>, vector<8x64xf32> -> vector<8x64xf32>
    %684 = arith.addf %681, %683 : vector<8x64xf32>
    %c34 = arith.constant 34 : index
    %c0_170 = arith.constant 0 : index
    %685 = vector.load %arg5[%c34, %c0_170] : memref<48x384xf32, #tpu.memory_space<vmem>>, vector<1x64xf32>
    %686 = vector.broadcast %685 : vector<1x64xf32> to vector<8x64xf32>
    %687 = arith.addf %684, %686 : vector<8x64xf32>
    %c1000 = arith.constant 1000 : index
    %c0_171 = arith.constant 0 : index
    %688 = vector.load %arg3[%c1000, %c0_171] : memref<1288x128xf32, #tpu.memory_space<vmem>>, vector<64x64xf32>
    %cst_172 = arith.constant dense<0.000000e+00> : vector<8x64xf32>
    %689 = tpu.matmul %687, %688, %cst_172 {dimension_numbers = #tpu.dot_dimension_numbers<[1], [0], [0], [1], [0, 0, 1, 1], [], []>} : vector<8x64xf32>, vector<64x64xf32>, vector<8x64xf32> -> vector<8x64xf32>
    %c35 = arith.constant 35 : index
    %c0_173 = arith.constant 0 : index
    %690 = vector.load %arg5[%c35, %c0_173] : memref<48x384xf32, #tpu.memory_space<vmem>>, vector<1x64xf32>
    %691 = vector.broadcast %690 : vector<1x64xf32> to vector<8x64xf32>
    %692 = arith.addf %689, %691 : vector<8x64xf32>
    %c36 = arith.constant 36 : index
    %c0_174 = arith.constant 0 : index
    %693 = vector.load %arg5[%c36, %c0_174] : memref<48x384xf32, #tpu.memory_space<vmem>>, vector<1x64xf32>
    %c37 = arith.constant 37 : index
    %c0_175 = arith.constant 0 : index
    %694 = vector.load %arg5[%c37, %c0_175] : memref<48x384xf32, #tpu.memory_space<vmem>>, vector<1x64xf32>
    %cst_176 = arith.constant dense<0.000000e+00> : vector<8xf32>
    %695 = vector.multi_reduction <add>, %692, %cst_176 [1] : vector<8x64xf32> to vector<8xf32>
    %696 = vector.shape_cast %695 : vector<8xf32> to vector<8x1xf32>
    %cst_177 = arith.constant 6.400000e+01 : f32
    %697 = vector.broadcast %cst_177 : f32 to vector<8x1xf32>
    %698 = arith.divf %696, %697 : vector<8x1xf32>
    %699 = vector.broadcast %698 : vector<8x1xf32> to vector<8x64xf32>
    %700 = arith.subf %692, %699 : vector<8x64xf32>
    %701 = arith.mulf %700, %700 : vector<8x64xf32>
    %cst_178 = arith.constant dense<0.000000e+00> : vector<8xf32>
    %702 = vector.multi_reduction <add>, %701, %cst_178 [1] : vector<8x64xf32> to vector<8xf32>
    %703 = vector.shape_cast %702 : vector<8xf32> to vector<8x1xf32>
    %cst_179 = arith.constant 6.400000e+01 : f32
    %704 = vector.broadcast %cst_179 : f32 to vector<8x1xf32>
    %705 = arith.divf %703, %704 : vector<8x1xf32>
    %706 = vector.broadcast %698 : vector<8x1xf32> to vector<8x64xf32>
    %707 = arith.subf %692, %706 : vector<8x64xf32>
    %cst_180 = arith.constant 9.99999974E-6 : f32
    %708 = vector.broadcast %cst_180 : f32 to vector<8x1xf32>
    %709 = arith.addf %705, %708 : vector<8x1xf32>
    %710 = math.rsqrt %709 : vector<8x1xf32>
    %711 = vector.broadcast %710 : vector<8x1xf32> to vector<8x64xf32>
    %712 = arith.mulf %707, %711 : vector<8x64xf32>
    %713 = vector.broadcast %693 : vector<1x64xf32> to vector<8x64xf32>
    %714 = arith.mulf %712, %713 : vector<8x64xf32>
    %715 = vector.broadcast %694 : vector<1x64xf32> to vector<8x64xf32>
    %716 = arith.addf %714, %715 : vector<8x64xf32>
    %717 = arith.negf %716 : vector<8x64xf32>
    %718 = math.exp %717 : vector<8x64xf32>
    %cst_181 = arith.constant 1.000000e+00 : f32
    %719 = vector.broadcast %cst_181 : f32 to vector<8x64xf32>
    %720 = arith.addf %719, %718 : vector<8x64xf32>
    %721 = arith.divf %719, %720 : vector<8x64xf32>
    %722 = arith.mulf %716, %721 : vector<8x64xf32>
    %723 = arith.addf %722, %687 : vector<8x64xf32>
    %c38 = arith.constant 38 : index
    %c0_182 = arith.constant 0 : index
    %724 = vector.load %arg5[%c38, %c0_182] : memref<48x384xf32, #tpu.memory_space<vmem>>, vector<1x64xf32>
    %c39 = arith.constant 39 : index
    %c0_183 = arith.constant 0 : index
    %725 = vector.load %arg5[%c39, %c0_183] : memref<48x384xf32, #tpu.memory_space<vmem>>, vector<1x64xf32>
    %cst_184 = arith.constant dense<0.000000e+00> : vector<8xf32>
    %726 = vector.multi_reduction <add>, %723, %cst_184 [1] : vector<8x64xf32> to vector<8xf32>
    %727 = vector.shape_cast %726 : vector<8xf32> to vector<8x1xf32>
    %cst_185 = arith.constant 6.400000e+01 : f32
    %728 = vector.broadcast %cst_185 : f32 to vector<8x1xf32>
    %729 = arith.divf %727, %728 : vector<8x1xf32>
    %730 = vector.broadcast %729 : vector<8x1xf32> to vector<8x64xf32>
    %731 = arith.subf %723, %730 : vector<8x64xf32>
    %732 = arith.mulf %731, %731 : vector<8x64xf32>
    %cst_186 = arith.constant dense<0.000000e+00> : vector<8xf32>
    %733 = vector.multi_reduction <add>, %732, %cst_186 [1] : vector<8x64xf32> to vector<8xf32>
    %734 = vector.shape_cast %733 : vector<8xf32> to vector<8x1xf32>
    %cst_187 = arith.constant 6.400000e+01 : f32
    %735 = vector.broadcast %cst_187 : f32 to vector<8x1xf32>
    %736 = arith.divf %734, %735 : vector<8x1xf32>
    %737 = vector.broadcast %729 : vector<8x1xf32> to vector<8x64xf32>
    %738 = arith.subf %723, %737 : vector<8x64xf32>
    %cst_188 = arith.constant 9.99999974E-6 : f32
    %739 = vector.broadcast %cst_188 : f32 to vector<8x1xf32>
    %740 = arith.addf %736, %739 : vector<8x1xf32>
    %741 = math.rsqrt %740 : vector<8x1xf32>
    %742 = vector.broadcast %741 : vector<8x1xf32> to vector<8x64xf32>
    %743 = arith.mulf %738, %742 : vector<8x64xf32>
    %744 = vector.broadcast %724 : vector<1x64xf32> to vector<8x64xf32>
    %745 = arith.mulf %743, %744 : vector<8x64xf32>
    %746 = vector.broadcast %725 : vector<1x64xf32> to vector<8x64xf32>
    %747 = arith.addf %745, %746 : vector<8x64xf32>
    %c224 = arith.constant 224 : index
    %c0_189 = arith.constant 0 : index
    %748 = vector.load %arg4[%c224, %c0_189] : memref<288x384xf32, #tpu.memory_space<vmem>>, vector<64x384xf32>
    %cst_190 = arith.constant dense<0.000000e+00> : vector<8x384xf32>
    %749 = tpu.matmul %747, %748, %cst_190 {dimension_numbers = #tpu.dot_dimension_numbers<[1], [0], [0], [1], [0, 0, 1, 1], [], []>} : vector<8x64xf32>, vector<64x384xf32>, vector<8x384xf32> -> vector<8x384xf32>
    %c40 = arith.constant 40 : index
    %c0_191 = arith.constant 0 : index
    %750 = vector.load %arg5[%c40, %c0_191] : memref<48x384xf32, #tpu.memory_space<vmem>>, vector<1x384xf32>
    %751 = vector.broadcast %750 : vector<1x384xf32> to vector<8x384xf32>
    %752 = arith.addf %749, %751 : vector<8x384xf32>
    %753 = vector.extract_strided_slice %752 {offsets = [0, 0], sizes = [8, 64], strides = [1, 1]} : vector<8x384xf32> to vector<8x64xf32>
    %cst_192 = arith.constant 0.353553385 : f32
    %754 = vector.broadcast %cst_192 : f32 to vector<8x64xf32>
    %755 = arith.mulf %753, %754 : vector<8x64xf32>
    %756 = vector.extract_strided_slice %752 {offsets = [0, 128], sizes = [8, 64], strides = [1, 1]} : vector<8x384xf32> to vector<8x64xf32>
    %757 = vector.extract_strided_slice %752 {offsets = [0, 256], sizes = [8, 64], strides = [1, 1]} : vector<8x384xf32> to vector<8x64xf32>
    %758 = tpu.iota {dimensions = array<i32: 1>} : vector<1x64xi32>
    %c0_i32_193 = arith.constant 0 : i32
    %759 = vector.broadcast %c0_i32_193 : i32 to vector<1x64xi32>
    %760 = arith.cmpi sge, %758, %759 : vector<1x64xi32>
    %c8_i32_194 = arith.constant 8 : i32
    %761 = vector.broadcast %c8_i32_194 : i32 to vector<1x64xi32>
    %762 = arith.cmpi slt, %758, %761 : vector<1x64xi32>
    %763 = arith.andi %760, %762 : vector<1x64xi1>
    %764 = arith.extui %763 : vector<1x64xi1> to vector<1x64xi32>
    %765 = arith.sitofp %764 : vector<1x64xi32> to vector<1x64xf32>
    %c8_i32_195 = arith.constant 8 : i32
    %766 = vector.broadcast %c8_i32_195 : i32 to vector<1x64xi32>
    %767 = arith.cmpi sge, %758, %766 : vector<1x64xi32>
    %c16_i32_196 = arith.constant 16 : i32
    %768 = vector.broadcast %c16_i32_196 : i32 to vector<1x64xi32>
    %769 = arith.cmpi slt, %758, %768 : vector<1x64xi32>
    %770 = arith.andi %767, %769 : vector<1x64xi1>
    %771 = arith.extui %770 : vector<1x64xi1> to vector<1x64xi32>
    %772 = arith.sitofp %771 : vector<1x64xi32> to vector<1x64xf32>
    %c16_i32_197 = arith.constant 16 : i32
    %773 = vector.broadcast %c16_i32_197 : i32 to vector<1x64xi32>
    %774 = arith.cmpi sge, %758, %773 : vector<1x64xi32>
    %c24_i32_198 = arith.constant 24 : i32
    %775 = vector.broadcast %c24_i32_198 : i32 to vector<1x64xi32>
    %776 = arith.cmpi slt, %758, %775 : vector<1x64xi32>
    %777 = arith.andi %774, %776 : vector<1x64xi1>
    %778 = arith.extui %777 : vector<1x64xi1> to vector<1x64xi32>
    %779 = arith.sitofp %778 : vector<1x64xi32> to vector<1x64xf32>
    %c24_i32_199 = arith.constant 24 : i32
    %780 = vector.broadcast %c24_i32_199 : i32 to vector<1x64xi32>
    %781 = arith.cmpi sge, %758, %780 : vector<1x64xi32>
    %c32_i32_200 = arith.constant 32 : i32
    %782 = vector.broadcast %c32_i32_200 : i32 to vector<1x64xi32>
    %783 = arith.cmpi slt, %758, %782 : vector<1x64xi32>
    %784 = arith.andi %781, %783 : vector<1x64xi1>
    %785 = arith.extui %784 : vector<1x64xi1> to vector<1x64xi32>
    %786 = arith.sitofp %785 : vector<1x64xi32> to vector<1x64xf32>
    %c32_i32_201 = arith.constant 32 : i32
    %787 = vector.broadcast %c32_i32_201 : i32 to vector<1x64xi32>
    %788 = arith.cmpi sge, %758, %787 : vector<1x64xi32>
    %c40_i32_202 = arith.constant 40 : i32
    %789 = vector.broadcast %c40_i32_202 : i32 to vector<1x64xi32>
    %790 = arith.cmpi slt, %758, %789 : vector<1x64xi32>
    %791 = arith.andi %788, %790 : vector<1x64xi1>
    %792 = arith.extui %791 : vector<1x64xi1> to vector<1x64xi32>
    %793 = arith.sitofp %792 : vector<1x64xi32> to vector<1x64xf32>
    %c40_i32_203 = arith.constant 40 : i32
    %794 = vector.broadcast %c40_i32_203 : i32 to vector<1x64xi32>
    %795 = arith.cmpi sge, %758, %794 : vector<1x64xi32>
    %c48_i32_204 = arith.constant 48 : i32
    %796 = vector.broadcast %c48_i32_204 : i32 to vector<1x64xi32>
    %797 = arith.cmpi slt, %758, %796 : vector<1x64xi32>
    %798 = arith.andi %795, %797 : vector<1x64xi1>
    %799 = arith.extui %798 : vector<1x64xi1> to vector<1x64xi32>
    %800 = arith.sitofp %799 : vector<1x64xi32> to vector<1x64xf32>
    %c48_i32_205 = arith.constant 48 : i32
    %801 = vector.broadcast %c48_i32_205 : i32 to vector<1x64xi32>
    %802 = arith.cmpi sge, %758, %801 : vector<1x64xi32>
    %c56_i32_206 = arith.constant 56 : i32
    %803 = vector.broadcast %c56_i32_206 : i32 to vector<1x64xi32>
    %804 = arith.cmpi slt, %758, %803 : vector<1x64xi32>
    %805 = arith.andi %802, %804 : vector<1x64xi1>
    %806 = arith.extui %805 : vector<1x64xi1> to vector<1x64xi32>
    %807 = arith.sitofp %806 : vector<1x64xi32> to vector<1x64xf32>
    %c56_i32_207 = arith.constant 56 : i32
    %808 = vector.broadcast %c56_i32_207 : i32 to vector<1x64xi32>
    %809 = arith.cmpi sge, %758, %808 : vector<1x64xi32>
    %c64_i32_208 = arith.constant 64 : i32
    %810 = vector.broadcast %c64_i32_208 : i32 to vector<1x64xi32>
    %811 = arith.cmpi slt, %758, %810 : vector<1x64xi32>
    %812 = arith.andi %809, %811 : vector<1x64xi1>
    %813 = arith.extui %812 : vector<1x64xi1> to vector<1x64xi32>
    %814 = arith.sitofp %813 : vector<1x64xi32> to vector<1x64xf32>
    %815 = vector.broadcast %765 : vector<1x64xf32> to vector<8x64xf32>
    %816 = arith.mulf %756, %815 : vector<8x64xf32>
    %817 = vector.broadcast %772 : vector<1x64xf32> to vector<8x64xf32>
    %818 = arith.mulf %756, %817 : vector<8x64xf32>
    %819 = vector.broadcast %779 : vector<1x64xf32> to vector<8x64xf32>
    %820 = arith.mulf %756, %819 : vector<8x64xf32>
    %821 = vector.broadcast %786 : vector<1x64xf32> to vector<8x64xf32>
    %822 = arith.mulf %756, %821 : vector<8x64xf32>
    %823 = vector.broadcast %793 : vector<1x64xf32> to vector<8x64xf32>
    %824 = arith.mulf %756, %823 : vector<8x64xf32>
    %825 = vector.broadcast %800 : vector<1x64xf32> to vector<8x64xf32>
    %826 = arith.mulf %756, %825 : vector<8x64xf32>
    %827 = vector.broadcast %807 : vector<1x64xf32> to vector<8x64xf32>
    %828 = arith.mulf %756, %827 : vector<8x64xf32>
    %829 = vector.broadcast %814 : vector<1x64xf32> to vector<8x64xf32>
    %830 = arith.mulf %756, %829 : vector<8x64xf32>
    %831 = tpu.concatenate %816, %818, %820, %822, %824, %826, %828, %830 in 0 : vector<8x64xf32>, vector<8x64xf32>, vector<8x64xf32>, vector<8x64xf32>, vector<8x64xf32>, vector<8x64xf32>, vector<8x64xf32>, vector<8x64xf32> -> vector<64x64xf32>
    %832 = vector.broadcast %765 : vector<1x64xf32> to vector<8x64xf32>
    %833 = arith.mulf %757, %832 : vector<8x64xf32>
    %834 = vector.broadcast %772 : vector<1x64xf32> to vector<8x64xf32>
    %835 = arith.mulf %757, %834 : vector<8x64xf32>
    %836 = vector.broadcast %779 : vector<1x64xf32> to vector<8x64xf32>
    %837 = arith.mulf %757, %836 : vector<8x64xf32>
    %838 = vector.broadcast %786 : vector<1x64xf32> to vector<8x64xf32>
    %839 = arith.mulf %757, %838 : vector<8x64xf32>
    %840 = vector.broadcast %793 : vector<1x64xf32> to vector<8x64xf32>
    %841 = arith.mulf %757, %840 : vector<8x64xf32>
    %842 = vector.broadcast %800 : vector<1x64xf32> to vector<8x64xf32>
    %843 = arith.mulf %757, %842 : vector<8x64xf32>
    %844 = vector.broadcast %807 : vector<1x64xf32> to vector<8x64xf32>
    %845 = arith.mulf %757, %844 : vector<8x64xf32>
    %846 = vector.broadcast %814 : vector<1x64xf32> to vector<8x64xf32>
    %847 = arith.mulf %757, %846 : vector<8x64xf32>
    %848 = tpu.concatenate %833, %835, %837, %839, %841, %843, %845, %847 in 0 : vector<8x64xf32>, vector<8x64xf32>, vector<8x64xf32>, vector<8x64xf32>, vector<8x64xf32>, vector<8x64xf32>, vector<8x64xf32>, vector<8x64xf32> -> vector<64x64xf32>
    %849 = vector.shape_cast %765 : vector<1x64xf32> to vector<1x64xf32>
    %850 = vector.broadcast %849 : vector<1x64xf32> to vector<8x64xf32>
    %851 = vector.shape_cast %772 : vector<1x64xf32> to vector<1x64xf32>
    %852 = vector.broadcast %851 : vector<1x64xf32> to vector<8x64xf32>
    %853 = vector.shape_cast %779 : vector<1x64xf32> to vector<1x64xf32>
    %854 = vector.broadcast %853 : vector<1x64xf32> to vector<8x64xf32>
    %855 = vector.shape_cast %786 : vector<1x64xf32> to vector<1x64xf32>
    %856 = vector.broadcast %855 : vector<1x64xf32> to vector<8x64xf32>
    %857 = vector.shape_cast %793 : vector<1x64xf32> to vector<1x64xf32>
    %858 = vector.broadcast %857 : vector<1x64xf32> to vector<8x64xf32>
    %859 = vector.shape_cast %800 : vector<1x64xf32> to vector<1x64xf32>
    %860 = vector.broadcast %859 : vector<1x64xf32> to vector<8x64xf32>
    %861 = vector.shape_cast %807 : vector<1x64xf32> to vector<1x64xf32>
    %862 = vector.broadcast %861 : vector<1x64xf32> to vector<8x64xf32>
    %863 = vector.shape_cast %814 : vector<1x64xf32> to vector<1x64xf32>
    %864 = vector.broadcast %863 : vector<1x64xf32> to vector<8x64xf32>
    %865 = tpu.concatenate %850, %852, %854, %856, %858, %860, %862, %864 in 0 : vector<8x64xf32>, vector<8x64xf32>, vector<8x64xf32>, vector<8x64xf32>, vector<8x64xf32>, vector<8x64xf32>, vector<8x64xf32>, vector<8x64xf32> -> vector<64x64xf32>
    %cst_209 = arith.constant dense<0.000000e+00> : vector<8x64xf32>
    %866 = tpu.matmul %755, %831, %cst_209 {dimension_numbers = #tpu.dot_dimension_numbers<[1], [1], [0], [0], [0, 0, 1, 0], [], []>} : vector<8x64xf32>, vector<64x64xf32>, vector<8x64xf32> -> vector<8x64xf32>
    %cst_210 = arith.constant dense<0xFF800000> : vector<8xf32>
    %867 = vector.multi_reduction <maximumf>, %866, %cst_210 [1] : vector<8x64xf32> to vector<8xf32>
    %868 = vector.shape_cast %867 : vector<8xf32> to vector<8x1xf32>
    %869 = vector.broadcast %868 : vector<8x1xf32> to vector<8x64xf32>
    %870 = arith.subf %866, %869 : vector<8x64xf32>
    %871 = math.exp %870 : vector<8x64xf32>
    %cst_211 = arith.constant dense<0.000000e+00> : vector<8x64xf32>
    %872 = tpu.matmul %871, %848, %cst_211 {dimension_numbers = #tpu.dot_dimension_numbers<[1], [0], [0], [1], [0, 0, 1, 1], [], []>} : vector<8x64xf32>, vector<64x64xf32>, vector<8x64xf32> -> vector<8x64xf32>
    %cst_212 = arith.constant dense<0.000000e+00> : vector<8x64xf32>
    %873 = tpu.matmul %871, %865, %cst_212 {dimension_numbers = #tpu.dot_dimension_numbers<[1], [0], [0], [1], [0, 0, 1, 1], [], []>} : vector<8x64xf32>, vector<64x64xf32>, vector<8x64xf32> -> vector<8x64xf32>
    %874 = tpu.reciprocal %873 {approx = true} : vector<8x64xf32> -> vector<8x64xf32>
    %875 = arith.mulf %872, %874 : vector<8x64xf32>
    %c1064 = arith.constant 1064 : index
    %c0_213 = arith.constant 0 : index
    %876 = vector.load %arg3[%c1064, %c0_213] : memref<1288x128xf32, #tpu.memory_space<vmem>>, vector<64x64xf32>
    %cst_214 = arith.constant dense<0.000000e+00> : vector<8x64xf32>
    %877 = tpu.matmul %875, %876, %cst_214 {dimension_numbers = #tpu.dot_dimension_numbers<[1], [0], [0], [1], [0, 0, 1, 1], [], []>} : vector<8x64xf32>, vector<64x64xf32>, vector<8x64xf32> -> vector<8x64xf32>
    %878 = arith.addf %723, %877 : vector<8x64xf32>
    %c41 = arith.constant 41 : index
    %c0_215 = arith.constant 0 : index
    %879 = vector.load %arg5[%c41, %c0_215] : memref<48x384xf32, #tpu.memory_space<vmem>>, vector<1x64xf32>
    %880 = vector.broadcast %879 : vector<1x64xf32> to vector<8x64xf32>
    %881 = arith.addf %878, %880 : vector<8x64xf32>
    %c1128 = arith.constant 1128 : index
    %c0_216 = arith.constant 0 : index
    %882 = vector.load %arg3[%c1128, %c0_216] : memref<1288x128xf32, #tpu.memory_space<vmem>>, vector<64x32xf32>
    %cst_217 = arith.constant dense<0.000000e+00> : vector<8x32xf32>
    %883 = tpu.matmul %881, %882, %cst_217 {dimension_numbers = #tpu.dot_dimension_numbers<[1], [0], [0], [1], [0, 0, 1, 1], [], []>} : vector<8x64xf32>, vector<64x32xf32>, vector<8x32xf32> -> vector<8x32xf32>
    %c42 = arith.constant 42 : index
    %c0_218 = arith.constant 0 : index
    %884 = vector.load %arg5[%c42, %c0_218] : memref<48x384xf32, #tpu.memory_space<vmem>>, vector<1x32xf32>
    %885 = vector.broadcast %884 : vector<1x32xf32> to vector<8x32xf32>
    %886 = arith.addf %883, %885 : vector<8x32xf32>
    %887 = tpu.concatenate %24, %59 in 1 : vector<8x32xf32>, vector<8x32xf32> -> vector<8x64xf32>
    %c1192 = arith.constant 1192 : index
    %c0_219 = arith.constant 0 : index
    %888 = vector.load %arg3[%c1192, %c0_219] : memref<1288x128xf32, #tpu.memory_space<vmem>>, vector<64x32xf32>
    %cst_220 = arith.constant dense<0.000000e+00> : vector<8x32xf32>
    %889 = tpu.matmul %887, %888, %cst_220 {dimension_numbers = #tpu.dot_dimension_numbers<[1], [0], [0], [1], [0, 0, 1, 1], [], []>} : vector<8x64xf32>, vector<64x32xf32>, vector<8x32xf32> -> vector<8x32xf32>
    %890 = arith.addf %886, %889 : vector<8x32xf32>
    %c43 = arith.constant 43 : index
    %c0_221 = arith.constant 0 : index
    %891 = vector.load %arg5[%c43, %c0_221] : memref<48x384xf32, #tpu.memory_space<vmem>>, vector<1x32xf32>
    %892 = vector.broadcast %891 : vector<1x32xf32> to vector<8x32xf32>
    %893 = arith.addf %890, %892 : vector<8x32xf32>
    %c44 = arith.constant 44 : index
    %c0_222 = arith.constant 0 : index
    %894 = vector.load %arg5[%c44, %c0_222] : memref<48x384xf32, #tpu.memory_space<vmem>>, vector<1x32xf32>
    %c45 = arith.constant 45 : index
    %c0_223 = arith.constant 0 : index
    %895 = vector.load %arg5[%c45, %c0_223] : memref<48x384xf32, #tpu.memory_space<vmem>>, vector<1x32xf32>
    %cst_224 = arith.constant dense<0.000000e+00> : vector<8xf32>
    %896 = vector.multi_reduction <add>, %893, %cst_224 [1] : vector<8x32xf32> to vector<8xf32>
    %897 = vector.shape_cast %896 : vector<8xf32> to vector<8x1xf32>
    %cst_225 = arith.constant 3.200000e+01 : f32
    %898 = vector.broadcast %cst_225 : f32 to vector<8x1xf32>
    %899 = arith.divf %897, %898 : vector<8x1xf32>
    %900 = vector.broadcast %899 : vector<8x1xf32> to vector<8x32xf32>
    %901 = arith.subf %893, %900 : vector<8x32xf32>
    %902 = arith.mulf %901, %901 : vector<8x32xf32>
    %cst_226 = arith.constant dense<0.000000e+00> : vector<8xf32>
    %903 = vector.multi_reduction <add>, %902, %cst_226 [1] : vector<8x32xf32> to vector<8xf32>
    %904 = vector.shape_cast %903 : vector<8xf32> to vector<8x1xf32>
    %cst_227 = arith.constant 3.200000e+01 : f32
    %905 = vector.broadcast %cst_227 : f32 to vector<8x1xf32>
    %906 = arith.divf %904, %905 : vector<8x1xf32>
    %907 = vector.broadcast %899 : vector<8x1xf32> to vector<8x32xf32>
    %908 = arith.subf %893, %907 : vector<8x32xf32>
    %cst_228 = arith.constant 9.99999974E-6 : f32
    %909 = vector.broadcast %cst_228 : f32 to vector<8x1xf32>
    %910 = arith.addf %906, %909 : vector<8x1xf32>
    %911 = math.rsqrt %910 : vector<8x1xf32>
    %912 = vector.broadcast %911 : vector<8x1xf32> to vector<8x32xf32>
    %913 = arith.mulf %908, %912 : vector<8x32xf32>
    %914 = vector.broadcast %894 : vector<1x32xf32> to vector<8x32xf32>
    %915 = arith.mulf %913, %914 : vector<8x32xf32>
    %916 = vector.broadcast %895 : vector<1x32xf32> to vector<8x32xf32>
    %917 = arith.addf %915, %916 : vector<8x32xf32>
    %cst_229 = arith.constant 1.000000e+00 : f32
    %918 = vector.broadcast %cst_229 : f32 to vector<8x32xf32>
    %919 = arith.mulf %918, %61 : vector<8x32xf32>
    %920 = arith.addf %917, %919 : vector<8x32xf32>
    %cst_230 = arith.constant 5.000000e-01 : f32
    %921 = vector.broadcast %cst_230 : f32 to vector<8x32xf32>
    %922 = arith.mulf %920, %921 : vector<8x32xf32>
    %c1256 = arith.constant 1256 : index
    %c0_231 = arith.constant 0 : index
    %923 = vector.load %arg3[%c1256, %c0_231] : memref<1288x128xf32, #tpu.memory_space<vmem>>, vector<32x32xf32>
    %cst_232 = arith.constant dense<0.000000e+00> : vector<8x32xf32>
    %924 = tpu.matmul %922, %923, %cst_232 {dimension_numbers = #tpu.dot_dimension_numbers<[1], [0], [0], [1], [0, 0, 1, 1], [], []>} : vector<8x32xf32>, vector<32x32xf32>, vector<8x32xf32> -> vector<8x32xf32>
    %c46 = arith.constant 46 : index
    %c0_233 = arith.constant 0 : index
    %925 = vector.load %arg5[%c46, %c0_233] : memref<48x384xf32, #tpu.memory_space<vmem>>, vector<1x32xf32>
    %926 = vector.broadcast %925 : vector<1x32xf32> to vector<8x32xf32>
    %927 = arith.addf %924, %926 : vector<8x32xf32>
    %c0_234 = arith.constant 0 : index
    %c0_235 = arith.constant 0 : index
    %928 = vector.load %arg6[%c0_234, %c0_235] : memref<8x32xf32, #tpu.memory_space<vmem>>, vector<8x32xf32>
    tpu.vector_store %arg6[%c0_234, %c0_235], %927 {strides = array<i32>} : memref<8x32xf32, #tpu.memory_space<vmem>>, vector<8x32xf32>,
    return
  }
}

</mosaic_0001>

<bundles_post_ra>
// kernel: conditional_unet_forward.1
= control target key start
LH: loop header
LB: loop body
LE: loop exit
PB: predicated region body
PF: predicated region fallthrough
CT: control target
= control target key end

     0   :  { %11 = vsyncpa [#allocation3], 0  ;;  %s3317_s0 = inlined_call_operand.vmem [shape: f32[8,32], index: 0, kind: input, shape index: {}]   ;;  %s3318_s1 = inlined_call_operand.vmem [shape: f32[8,1], index: 1, kind: input, shape index: {}]   ;;  %s3319_s2 = inlined_call_operand.vmem [shape: s32[8,1], index: 2, kind: input, shape index: {}]   ;;  %s3320_s3 = inlined_call_operand.hbm [shape: f32[1288,128], index: 3, kind: input, shape index: {}]   ;;  %s3321_s4 = inlined_call_operand.hbm [shape: f32[288,384], index: 4, kind: input, shape index: {}]   ;;  %s3322_s5 = inlined_call_operand.hbm [shape: f32[48,384], index: 5, kind: input, shape index: {}]   ;;  %s3323_s6 = inlined_call_operand.hbm [shape: f32[8,32], index: 6, kind: output, shape index: {}]  }
   0x1   :  { %12 = vsyncpa [#allocation6], 0  ;;  %s37_s23 = sshll.u32 %s3321_s4, 4  ;;  %s38_s23 = int_to_ptr.hbm [resolvable:$true] %s37_s23 }
   0x2   :  { %13 = vsyncpa [#allocation4], 0  ;;  %s2622_s24 = smov [#allocation5]   ;;  %s24_s28 = sshll.u32 %s3320_s3, 4  ;;  %s25_s28 = int_to_ptr.hbm [resolvable:$true] %s24_s28 }
   0x3   :  { %s39_s25 = sshll.u32 %s2622_s24, 4  ;;  %s2623_s29 = smov 384   ;;  %s40_s25 = int_to_ptr.vmem [resolvable:$true] %s39_s25 }
   0x4   :  { %s2624_s30 = smov 24   ;;  %s2625_s7 = smov [#allocation2]  }
   0x5   :  { %45 = dma.hbm_to_vmem [thread:$0]  %s38_s23, 13824, %s40_s25, [#allocation6], %s2623_s29, %s2623_s29, %s2624_s30  }
   0x6   :  { %s26_s8 = sshll.u32 %s2625_s7, 4  ;;  %s2626_s9 = smov 128   ;;  %s27_s8 = int_to_ptr.vmem [resolvable:$true] %s26_s8 }
   0x7   :  { %s2627_s10 = smov 8   ;;  %s50_s12 = sshll.u32 %s3322_s5, 4  ;;  %s51_s12 = int_to_ptr.hbm [resolvable:$true] %s50_s12 }
   0x8   :  { %32 = dma.hbm_to_vmem [thread:$0]  %s25_s28, 20608, %s27_s8, [#allocation3], %s2626_s9, %s2626_s9, %s2627_s10  }
   0x9   :  { %s2628_s13 = smov [#allocation7]  }
   0xa   :  { %s52_s14 = sshll.u32 %s2628_s13, 4  ;;  %s53_s14 = int_to_ptr.vmem [resolvable:$true] %s52_s14 }
   0xb   :  { %58 = dma.hbm_to_vmem [thread:$0]  %s51_s12, 2304, %s53_s14, [#allocation6], %s2623_s29, %s2623_s29, %s2624_s30  }
   0xc   :  { %2616 = dma.done.wait [#allocation3], 20608  }
   0xd   :  { %2617 = vsyncadd [#allocation3], 4294946688 }
   0xe   :  { %2618 = dma.done.wait [#allocation6], 16128  }
   0xf   :  { %2619 = vsyncadd [#allocation6], 4294951168  ;;  %v2629_v0 = vmov 0   ;;  %v322_v1 = vld [vmem:[#allocation2 + $0x78] sm:$0xff]  ;;  %v71_v2 = vld [vmem:[%s3318_s1] sm:$0xff]  ;;  %vm3330_vm1 = vcmask 261120  }
  0x10   :  { %2453 = vset.pattern.permute.xlu0 %v2629_v0  ;;  %2454 = vset.pattern.permute.xlu1 %v2629_v0  ;;  %v321_v3 = vld [vmem:[#allocation2 + $0x70] sm:$0xff]  ;;  %v320_v4 = vld [vmem:[#allocation2 + $0x68] sm:$0xff]  ;;  %v2695_v5 = vld [vmem:[%s3319_s2] sm:$0xff]  ;;  %v2630_v26 = vmov 2102212464   ;;  %s2641_s17 = smov 32  }
  0x11   :  { %339 = vmatpush.msra.mxu2 %v322_v1  ;;  %75 = vperm.xlu0 %2453, %v71_v2   ;;  %vm396_vm0 = vcmp.eq.s32.totalorder %v2695_v5, 0  ;;  %v319_v6 = vld [vmem:[#allocation2 + $0x60] sm:$0xff]  ;;  %v72_v9 = vld [vmem:[#allocation7] ss:$0 sm:$0xff]  ;;  %v79_v10 = vld [vmem:[#allocation7 + $0x1] ss:$0 sm:$0xff] }
  0x12   :  { %v318_v7 = vld [vmem:[#allocation2 + $0xa0] sm:$0xff]  ;;  %v397_v8 = vsel %vm396_vm0, 1, %v2629_v0  ;;  %v370_v23 = vld [vmem:[#allocation2 + $0x98] sm:$0xff]  ;;  %v2631_v28 = vmov 920167782   ;;  %v369_v33 = vld [vmem:[#allocation2 + $0x90] sm:$0xff] }
  0x13   :  { %340 = vmatpush.msra.mxu2 %v321_v3  ;;  %387 = vmatpush.msra.mxu3 %v370_v23  ;;  %v2632_v31 = vmov 1326507024   ;;  %v2633_v34 = vmov 683565275   ;;  %v2634_v36 = vmov 2475754826  }
  0x14   :  { %v2635_v39 = vmov 2131351028   ;;  %v368_v45 = vld [vmem:[#allocation2 + $0x88] sm:$0xff]  ;;  %v367_v53 = vld [vmem:[#allocation2 + $0x80] sm:$0xff]  ;;  %vm404_vm7 = vcmp.eq.s32.totalorder %v2695_v5, 1  ;;  %v239_v59 = vld [vmem:[#allocation2 + $0x18] sm:$0xff] }
  0x15   :  { %341 = vmatpush.msra.mxu2 %v320_v4  ;;  %388 = vmatpush.msra.mxu3 %v369_v33  ;;  %v323_v48 = vld [vmem:[#allocation7 + $0x4] ss:$0 sm:$0xff]  ;;  %v238_v60 = vld [vmem:[#allocation2 + $0x10] sm:$0xff]  ;;  %v405_v62 = vsel %vm404_vm7, 1, %v2629_v0  ;;  %s2642_s20 = smov [#allocation8]   ;;  %s2292_s24 = sshll.u32 %s3323_s6, 4  ;;  %s2293_s24 = int_to_ptr.hbm [resolvable:$true] %s2292_s24 }
  0x16   :  { %257 = vmatpush.msra.mxu0 %v239_v59  ;;  %407 = vperm.xlu1 %2454, %v405_v62   ;;  %v237_v4 = vld [vmem:[#allocation2 + $0x8] sm:$0xff]  ;;  %s2290_s21 = sshll.u32 %s2642_s20, 4  ;;  %s2291_s21 = int_to_ptr.vmem [resolvable:$true] %s2290_s21 }
  0x17   :  { %342 = vmatpush.msra.mxu2 %v319_v6  ;;  %389 = vmatpush.msra.mxu3 %v368_v45 }
  0x18   :  { %2309 = vmatmul.msk.f32.vlgmr.msra.gmra.mxu2 %vm3330_vm1, %v318_v7  ;;  %258 = vmatpush.msra.mxu0 %v238_v60 }
  0x19   :  { %399 = vperm.xlu0 %2453, %v397_v8   ;;  %390 = vmatpush.msra.mxu3 %v367_v53 }
  0x1a   :  { %259 = vmatpush.msra.mxu0 %v237_v4 }
  0x83   :  { %v76_v11 = vpop.permute.xlu0 %75 }
  0x84   :  { %v78_v12 = vmul.f32 %v76_v11, %v72_v9 }
  0x86   :  { %v2700_v13 = vadd.f32 %v79_v10, %v78_v12  ;;  %v236_v10 = vld [vmem:[#allocation2] sm:$0xff] }
  0x87   :  { %260 = vmatpush.msra.mxu0 %v236_v10 }
  0x88   :  { %v84_v14 = vand.u32 2139095040, %v2700_v13  ;;  %v81_v17 = vand.u32 2147483647, %v2700_v13 }
  0x8a   :  { %v85_v15 = vshrl.u32 %v84_v14, 23  ;;  %v88_v19 = vand.u32 8388607, %v81_v17 }
  0x8c   :  { %v2303_v16 = vadd.s32 4294967169, %v85_v15  ;;  %v89_v24 = vor.u32 8388608, %v88_v19 }
  0x8e   :  { %v91_v18 = vadd.s32 1, %v2303_v16  ;;  %v2717_v47 = vshll.u32 %v89_v24, 8 }
  0x90   :  { %vm92_vm2 = vcmp.gt.s32.totalorder %v91_v18, 0  ;;  %v130_v1 = vand.u32 65535, %v2717_v47  ;;  %v131_v6 = vshrl.u32 %v2717_v47, 16 }
  0x91   :  { %v93_v20 = vsel %vm92_vm2, %v91_v18, 0 }
  0x92   :  { %v95_v21 = vand.u32 31, %v93_v20  ;;  %v2708_v25 = vshrl.u32 %v93_v20, 5 }
  0x94   :  { %v2706_v22 = vsub.s32 32, %v95_v21  ;;  %v107_v27 = vshll.u32 %v2630_v26, %v95_v21  ;;  %v110_v29 = vshll.u32 %v2631_v28, %v95_v21  ;;  %v98_v35 = vshll.u32 %v2633_v34, %v95_v21 }
  0x95   :  { %v101_v38 = vshll.u32 %v2634_v36, %v95_v21  ;;  %v104_v41 = vshll.u32 %v2635_v39, %v95_v21  ;;  %vm116_vm3 = vcmp.lt.s32.totalorder %v2708_v25, 4  ;;  %vm113_vm4 = vcmp.lt.s32.totalorder %v2708_v25, 1 }
  0x96   :  { %v108_v30 = vshrl.u32 %v2631_v28, %v2706_v22  ;;  %v111_v32 = vshrl.u32 %v2632_v31, %v2706_v22  ;;  %v99_v37 = vshrl.u32 %v2634_v36, %v2706_v22  ;;  %v102_v40 = vshrl.u32 %v2635_v39, %v2706_v22 }
  0x97   :  { %v105_v42 = vshrl.u32 %v2630_v26, %v2706_v22  ;;  %vm115_vm5 = vcmp.lt.s32.totalorder %v2708_v25, 3  ;;  %vm114_vm6 = vcmp.lt.s32.totalorder %v2708_v25, 2  ;;  %v97_v19 = vshrl.u32 %v2633_v34, %v2706_v22 }
  0x98   :  { %v109_v43 = vor.u32 %v108_v30, %v107_v27  ;;  %v112_v44 = vor.u32 %v111_v32, %v110_v29  ;;  %v2715_v46 = vor.u32 %v99_v37, %v98_v35  ;;  %v2720_v49 = vor.u32 %v102_v40, %v101_v38 }
  0x99   :  { %v106_v50 = vor.u32 %v105_v42, %v104_v41 }
  0x9a   :  { %v122_v51 = vsel %vm116_vm3, %v109_v43, 920167782  ;;  %v126_v52 = vsel %vm116_vm3, %v112_v44, 1326507024  ;;  %v121_v55 = vsel %vm113_vm4, %v2715_v46, %v2720_v49  ;;  %v117_v40 = vsel %vm113_vm4, %v97_v19, %v2715_v46 }
  0x9b   :  { %v344_v54 = vpop.f32.mrf.mxu2  ;;  %v123_v56 = vsel %vm115_vm5, %v106_v50, %v122_v51  ;;  %v125_v57 = vsel %vm113_vm4, %v2720_v49, %v106_v50  ;;  %v127_v63 = vsel %vm115_vm5, %v109_v43, %v126_v52  ;;  %v118_v32 = vsel %vm116_vm3, %v106_v50, 2102212464 }
  0x9c   :  { %v2738_v58 = vadd.f32 %v344_v54, %v323_v48  ;;  %v124_v61 = vsel %vm114_vm6, %v121_v55, %v123_v56  ;;  %v128_v5 = vsel %vm114_vm6, %v125_v57, %v127_v63  ;;  %v119_v41 = vsel %vm115_vm5, %v2720_v49, %v118_v32 }
  0x9d   :  { %v154_v2 = vand.u32 65535, %v124_v61  ;;  %v155_v7 = vshrl.u32 %v124_v61, 16  ;;  %v132_v8 = vand.u32 65535, %v128_v5  ;;  %v133_v9 = vshrl.u32 %v128_v5, 16 }
  0x9e   :  { %v2310_v3 = vmul.f32 -1.442695, %v2738_v58  ;;  %vm83_vm4 = vcmp.lt.s32.totalorder %v2700_v13, 0  ;;  %vm82_vm5 = vcmp.le.f32.partialorder %v81_v17, 0.7853982 }
  0x9f   :  { %v157_v11 = vmul.u32 %v155_v7, %v130_v1  ;;  %v158_v12 = vmul.u32 %v154_v2, %v131_v6  ;;  %v135_v14 = vmul.u32 %v133_v9, %v130_v1  ;;  %v136_v15 = vmul.u32 %v132_v8, %v131_v6 }
  0xa0   :  { %2455 = vpow2.f32 %v2310_v3  ;;  %v156_v16 = vmul.u32 %v154_v2, %v130_v1  ;;  %v134_v20 = vmul.u32 %v132_v8, %v130_v1  ;;  %v159_v23 = vmul.u32 %v155_v7, %v131_v6 }
  0xa1   :  { %v160_v18 = vshll.u32 %v157_v11, 16  ;;  %v138_v21 = vshll.u32 %v135_v14, 16  ;;  %v137_v24 = vmul.u32 %v133_v9, %v131_v6  ;;  %v162_v26 = vshll.u32 %v158_v12, 16 }
  0xa2   :  { %v140_v28 = vshll.u32 %v136_v15, 16  ;;  %v161_v38 = vshrl.u32 %v157_v11, 16  ;;  %v139_v42 = vshrl.u32 %v135_v14, 16  ;;  %v163_v44 = vshrl.u32 %v158_v12, 16 }
  0xa3   :  { %vm164_vm8 = vc.u32 %v156_v16, %v160_v18  ;;  %v166_v27 = vadd.s32 %v160_v18, %v156_v16  ;;  %vm142_vm9 = vc.u32 %v134_v20, %v138_v21  ;;  %v144_v29 = vadd.s32 %v138_v21, %v134_v20 }
  0xa4   :  { %v165_v30 = vsel %vm164_vm8, 1, %v2629_v0  ;;  %v143_v33 = vsel %vm142_vm9, 1, %v2629_v0  ;;  %v141_v48 = vshrl.u32 %v136_v15, 16  ;;  %vm224_vm9 = vweird.f32 %v2700_v13 }
  0xa5   :  { %v167_v35 = vadd.s32 %v165_v30, %v159_v23  ;;  %vm168_vm10 = vc.u32 %v166_v27, %v162_v26  ;;  %v145_v34 = vadd.s32 %v143_v33, %v137_v24  ;;  %vm146_vm11 = vc.u32 %v144_v29, %v140_v28 }
  0xa6   :  { %v2456_v31 = vpop.eup %2455  ;;  %v169_v36 = vsel %vm168_vm10, 1, %v2629_v0  ;;  %v147_v37 = vsel %vm146_vm11, 1, %v2629_v0  ;;  %v120_v0 = vsel %vm114_vm6, %v117_v40, %v119_v41  ;;  %v170_v53 = vadd.s32 %v166_v27, %v162_v26 }
  0xa7   :  { %v350_v22 = vadd.f32 1.0, %v2456_v31  ;;  %v171_v39 = vadd.s32 %v169_v36, %v167_v35  ;;  %v149_v43 = vadd.s32 %v147_v37, %v145_v34  ;;  %v174_v46 = vmul.u32 %v2717_v47, %v120_v0 }
  0xa9   :  { %2457 = vrcp.f32 %v350_v22  ;;  %v172_v45 = vadd.s32 %v171_v39, %v161_v38  ;;  %v150_v50 = vadd.s32 %v149_v43, %v139_v42  ;;  %vm356_vm13 = vweird.f32 %v350_v22 }
  0xaa   :  { %v362_v49 = vand.u32 2147483648, %v350_v22  ;;  %v360_v60 = vand.u32 2147483647, %v350_v22 }
  0xab   :  { %v173_v51 = vadd.s32 %v172_v45, %v163_v44  ;;  %v151_v52 = vadd.s32 %v150_v50, %v141_v48 }
  0xac   :  { %v363_v25 = vor.u32 1.1754944e-38, %v362_v49  ;;  %vm361_vm0 = vcmp.eq.f32.partialorder %v360_v60, 8.507059e+37  ;;  %v289_v49 = vld [vmem:[#allocation2 + $0x40] sm:$0xff]  ;;  %v240_v60 = vld [vmem:[#allocation7 + $0x2] ss:$0 sm:$0xff] }
  0xad   :  { %v177_v54 = vadd.s32 1, %v173_v51  ;;  %vm176_vm12 = vc.u32 %v151_v52, %v170_v53  ;;  %v175_v12 = vadd.s32 %v170_v53, %v151_v52 }
  0xaf   :  { %v2458_v55 = vpop.eup %2457  ;;  %v178_v57 = vsel %vm176_vm12, %v177_v54, %v173_v51 }
  0xb0   :  { %v352_v56 = vmul.f32 %v2458_v55, %v350_v22  ;;  %vm357_vm14 = vweird.f32 %v2458_v55  ;;  %v179_v61 = vadd.s32 %v178_v57, %v174_v46  ;;  %v290_v46 = vld [vmem:[#allocation2 + $0x48] sm:$0xff]  ;;  %v288_v57 = vld [vmem:[#allocation2 + $0x38] sm:$0xff] }
  0xb1   :  { %vm358_vm15 = vmor %vm356_vm13, %vm357_vm14  ;;  %vm3331_vm14 = vcmask 523264  }
  0xb2   :  { %v353_v59 = vsub.f32 1.0, %v352_v56  ;;  %v180_v63 = vadd.s32 536870912, %v179_v61  ;;  %v291_v56 = vld [vmem:[#allocation2 + $0x50] sm:$0xff] }
  0xb4   :  { %v354_v62 = vmul.f32 %v2458_v55, %v353_v59  ;;  %v181_v2 = vshrl.u32 %v180_v63, 30  ;;  %v287_v59 = vld [vmem:[#allocation2 + $0x30] sm:$0xff] }
  0xb6   :  { %v355_v1 = vadd.f32 %v2458_v55, %v354_v62  ;;  %v182_v4 = vshll.u32 %v181_v2, 30  ;;  %v205_v29 = vsub.s32 4, %v181_v2 }
  0xb8   :  { %v359_v3 = vsel %vm358_vm15, %v2458_v55, %v355_v1  ;;  %v183_v6 = vsub.s32 %v179_v61, %v182_v4  ;;  %v206_v35 = vsel %vm83_vm4, %v205_v29, %v181_v2  ;;  %v292_v55 = vld [vmem:[#allocation2 + $0x58] sm:$0xff]  ;;  %v286_v61 = vld [vmem:[#allocation2 + $0x28] sm:$0xff]  ;;  %v400_v29 = vpop.permute.xlu0 %399 }
  0xb9   :  { %v364_v5 = vsel %vm361_vm0, %v363_v25, %v359_v3  ;;  %v208_v36 = vsel %vm82_vm5, 0, %v206_v35  ;;  %306 = vmatpush.msra.mxu1 %v292_v55  ;;  %v445_v25 = vld [vmem:[#allocation2 + $0xe0] sm:$0xff]  ;;  %v444_v1 = vld [vmem:[#allocation2 + $0xd8] sm:$0xff]  ;;  %vm401_vm15 = vcmp.eq.s32.totalorder %v400_v29, 1 }
  0xba   :  { %v366_v47 = vmul.f32 %v364_v5, %v2738_v58  ;;  %vm184_vm2 = vcmp.lt.s32.totalorder %v183_v6, 0  ;;  %v185_v7 = vsub.s32 0, %v183_v6  ;;  %v225_v41 = vadd.s32 3, %v208_v36  ;;  %461 = vmatpush.msrb.mxu2 %v445_v25 }
  0xbb   :  { %307 = vmatpush.msra.mxu1 %v291_v56 }
  0xbc   :  { %2311 = vmatmul.msk.f32.vlgmr.msra.gmra.mxu3 %vm3330_vm1, %v366_v47  ;;  %v186_v8 = vsel %vm184_vm2, %v185_v7, %v183_v6  ;;  %v226_v45 = vand.u32 3, %v225_v41  ;;  %462 = vmatpush.msrb.mxu2 %v444_v1  ;;  %v418_v41 = vld [vmem:[#allocation7 + $0x6] ss:$0 sm:$0xff] }
  0xbd   :  { %v187_v9 = vclz %v186_v8  ;;  %308 = vmatpush.msra.mxu1 %v290_v46 }
  0xbe   :  { %vm228_vm6 = vcmp.eq.s32.totalorder %v226_v45, 0  ;;  %vm231_vm7 = vcmp.eq.s32.totalorder %v226_v45, 2  ;;  %vm227_vm8 = vcmp.lt.s32.totalorder %v226_v45, 2 }
  0xbf   :  { %v2304_v10 = vadd.s32 4294967294, %v187_v9  ;;  %309 = vmatpush.msra.mxu1 %v289_v49 }
  0xc1   :  { %vm2305_vm3 = vcmp.lt.s32.totalorder %v2304_v10, 0  ;;  %310 = vmatpush.msra.mxu1 %v288_v57 }
  0xc2   :  { %v190_v11 = vsel %vm2305_vm3, 0, %v2304_v10 }
  0xc3   :  { %v191_v14 = vsub.s32 32, %v190_v11  ;;  %v195_v15 = vsub.s32 4294967266, %v190_v11  ;;  %v192_v16 = vshll.u32 %v183_v6, %v190_v11  ;;  %311 = vmatpush.msra.mxu1 %v287_v59 }
  0xc5   :  { %v193_v18 = vshrl.u32 %v175_v12, %v191_v14  ;;  %v196_v19 = vadd.s32 127, %v195_v15  ;;  %312 = vmatpush.msra.mxu1 %v286_v61 }
  0xc7   :  { %v194_v20 = vor.u32 %v193_v18, %v192_v16  ;;  %v197_v21 = vshll.u32 %v196_v19, 23  ;;  %v417_v16 = vld [vmem:[#allocation2 + $0xc0] sm:$0xff]  ;;  %v443_v18 = vld [vmem:[#allocation2 + $0xd0] sm:$0xff]  ;;  %v416_v19 = vld [vmem:[#allocation2 + $0xb8] sm:$0xff] }
  0xc8   :  { %434 = vmatpush.msrb.mxu0 %v417_v16  ;;  %463 = vmatpush.msrb.mxu2 %v443_v18 }
  0xc9   :  { %v198_v23 = vor.u32 4788187, %v197_v21  ;;  %v201_v24 = vcvt.s32.f32 %v194_v20  ;;  %v442_v20 = vld [vmem:[#allocation2 + $0xc8] sm:$0xff]  ;;  %v415_v21 = vld [vmem:[#allocation2 + $0xb0] sm:$0xff] }
  0xca   :  { %435 = vmatpush.msrb.mxu0 %v416_v19  ;;  %464 = vmatpush.msrb.mxu2 %v442_v20 }
  0xcb   :  { %v199_v58 = vand.u32 2147483647, %v198_v23  ;;  %v475_v23 = vld [vmem:[#allocation2 + $0x100] sm:$0xff] }
  0xcc   :  { %492 = vmatpush.msrb.mxu3 %v475_v23  ;;  %436 = vmatpush.msrb.mxu0 %v415_v21 }
  0xcd   :  { %v202_v26 = vmul.f32 %v201_v24, %v199_v58  ;;  %v414_v58 = vld [vmem:[#allocation2 + $0xa8] sm:$0xff]  ;;  %v413_v24 = vld [vmem:[%s3317_s0] sm:$0xff] }
  0xce   :  { %437 = vmatpush.msrb.mxu0 %v414_v58 }
  0xcf   :  { %v203_v27 = vxor.u32 2147483648, %v202_v26 }
  0xd1   :  { %v204_v28 = vsel %vm83_vm4, %v203_v27, %v202_v26  ;;  %v371_v26 = vld [vmem:[#allocation7 + $0x5] ss:$0 sm:$0xff] }
  0xd2   :  { %v207_v30 = vsel %vm82_vm5, %v2700_v13, %v204_v28  ;;  %v285_v13 = vld [vmem:[#allocation2 + $0x20] sm:$0xff] }
  0xd3   :  { %v209_v31 = vmul.f32 %v207_v30, %v207_v30  ;;  %313 = vmatpush.msra.mxu1 %v285_v13 }
  0xd5   :  { %v210_v32 = vmul.f32 -0.001358992, %v209_v31  ;;  %v217_v33 = vmul.f32 -0.00019511016, %v209_v31 }
  0xd7   :  { %v211_v22 = vadd.f32 0.041655596, %v210_v32  ;;  %v218_v34 = vadd.f32 0.008332121, %v217_v33  ;;  %v293_v33 = vld [vmem:[#allocation7 + $0x3] ss:$0 sm:$0xff] }
  0xd9   :  { %v212_v37 = vmul.f32 %v211_v22, %v209_v31  ;;  %v219_v38 = vmul.f32 %v218_v34, %v209_v31 }
  0xdb   :  { %v213_v39 = vadd.f32 -0.4999988, %v212_v37  ;;  %v220_v40 = vadd.f32 -0.16666654, %v219_v38  ;;  %v474_v38 = vld [vmem:[#allocation2 + $0xf8] sm:$0xff] }
  0xdc   :  { %493 = vmatpush.msrb.mxu3 %v474_v38 }
  0xdd   :  { %v214_v42 = vmul.f32 %v213_v39, %v209_v31  ;;  %v221_v43 = vmul.f32 %v220_v40, %v209_v31  ;;  %v408_v31 = vpop.permute.xlu1 %407  ;;  %v473_v39 = vld [vmem:[#allocation2 + $0xf0] sm:$0xff]  ;;  %v472_v40 = vld [vmem:[#allocation2 + $0xe8] sm:$0xff] }
  0xde   :  { %vm409_vm0 = vcmp.eq.s32.totalorder %v408_v31, 1  ;;  %494 = vmatpush.msrb.mxu3 %v473_v39  ;;  %v590_v39 = vld [vmem:[#allocation5 + $0x50] sm:$0xff] }
  0xdf   :  { %v215_v44 = vadd.f32 1.0, %v214_v42  ;;  %v222_v17 = vadd.f32 1.0, %v221_v43  ;;  %636 = vmatpush.msrb.mxu1 %v590_v39 }
  0xe0   :  { %495 = vmatpush.msrb.mxu3 %v472_v40  ;;  %v589_v40 = vld [vmem:[#allocation5 + $0x48] sm:$0xff] }
  0xe1   :  { %v223_v48 = vmul.f32 %v222_v17, %v207_v30  ;;  %v232_v50 = vxor.u32 2147483648, %v215_v44  ;;  %v470_v17 = vld [vmem:[#allocation7 + $0x7] ss:$0 sm:$0xff] }
  0xe3   :  { %v229_v51 = vxor.u32 2147483648, %v223_v48  ;;  %v233_v52 = vsel %vm231_vm7, %v232_v50, %v223_v48  ;;  %v476_v50 = vld [vmem:[#allocation7 + $0x18] ss:$0 sm:$0xff] }
  0xe5   :  { %v230_v0 = vsel %vm228_vm6, %v215_v44, %v229_v51 }
  0xe6   :  { %v234_v53 = vsel %vm227_vm8, %v230_v0, %v233_v52 }
  0xe7   :  { %v235_v54 = vsel %vm224_vm9, nan, %v234_v53  ;;  %v2636_v53 = vmov 32.0  }
  0xe8   :  { %2306 = vmatmul.msk.f32.vlgmr.msra.gmra.mxu0 %vm3330_vm1, %v235_v54 }
  0xe9   :  { %616 = vmatpush.msra.mxu0 %v589_v40 }
  0xf0   :  { %2312 = vmatmul.msk.f32.vlgmr.msrb.gmra.mxu0 %vm3330_vm1, %v413_v24 }
 0x13f   :  { %v392_v27 = vpop.f32.mrf.mxu3 }
 0x140   :  { %v393_v28 = vadd.f32 %v392_v27, %v371_v26 }
 0x142   :  { %v402_v30 = vperm.slane %v393_v28, 0  ;;  %v410_v32 = vperm.slane %v393_v28, 1 }
 0x144   :  { %v403_v35 = vsel %vm401_vm15, %v402_v30, 0.0 }
 0x145   :  { %v2782_v36 = vsel %vm409_vm0, %v410_v32, %v403_v35 }
 0x165   :  { %v262_v62 = vpop.f32.mrf.mxu0 }
 0x166   :  { %v263_v63 = vadd.f32 %v262_v62, %v240_v60 }
 0x168   :  { %v2307_v2 = vmul.f32 -1.442695, %v263_v63 }
 0x16a   :  { %2459 = vpow2.f32 %v2307_v2 }
 0x16d   :  { %v439_v42 = vpop.f32.mrf.mxu0 }
 0x16e   :  { %v440_v43 = vadd.f32 %v439_v42, %v418_v41  ;;  %v591_v41 = vld [vmem:[#allocation5 + $0x58] sm:$0xff] }
 0x16f   :  { %656 = vmatpush.msra.mxu2 %v591_v41  ;;  %v587_v42 = vld [vmem:[#allocation5 + $0x38] sm:$0xff] }
 0x170   :  { %v2460_v3 = vpop.eup %2459  ;;  %637 = vmatpush.msrb.mxu1 %v587_v42 }
 0x171   :  { %v268_v4 = vadd.f32 1.0, %v2460_v3 }
 0x173   :  { %2461 = vrcp.f32 %v268_v4  ;;  %v280_v7 = vand.u32 2147483648, %v268_v4  ;;  %v278_v9 = vand.u32 2147483647, %v268_v4  ;;  %vm274_vm11 = vweird.f32 %v268_v4 }
 0x174   :  { %2463 = vrcp.f32 %v2636_v53 }
 0x175   :  { %v281_v11 = vor.u32 1.1754944e-38, %v280_v7  ;;  %vm279_vm13 = vcmp.eq.f32.partialorder %v278_v9, 8.507059e+37 }
 0x179   :  { %v2462_v5 = vpop.eup %2461 }
 0x17a   :  { %v270_v47 = vmul.f32 %v2462_v5, %v268_v4  ;;  %vm275_vm10 = vweird.f32 %v2462_v5  ;;  %v2464_v54 = vpop.eup %2463 }
 0x17b   :  { %vm276_vm12 = vmor %vm274_vm11, %vm275_vm10  ;;  %v506_v55 = vmul.f32 32.0, %v2464_v54  ;;  %vm510_vm2 = vweird.f32 %v2464_v54 }
 0x17c   :  { %v271_v6 = vsub.f32 1.0, %v270_v47 }
 0x17d   :  { %v507_v56 = vsub.f32 1.0, %v506_v55 }
 0x17e   :  { %v272_v8 = vmul.f32 %v2462_v5, %v271_v6 }
 0x17f   :  { %v508_v46 = vmul.f32 %v2464_v54, %v507_v56 }
 0x180   :  { %v273_v10 = vadd.f32 %v2462_v5, %v272_v8  ;;  %v500_v8 = vld [vmem:[#allocation7 + $0x19] ss:$0 sm:$0xff] }
 0x181   :  { %v509_v49 = vadd.f32 %v2464_v54, %v508_v46 }
 0x182   :  { %v277_v12 = vsel %vm276_vm12, %v2462_v5, %v273_v10  ;;  %v501_v10 = vld [vmem:[#allocation7 + $0x1a] ss:$0 sm:$0xff] }
 0x183   :  { %v282_v14 = vsel %vm279_vm13, %v281_v11, %v277_v12  ;;  %v2792_v57 = vsel %vm510_vm2, %v2464_v54, %v509_v49 }
 0x184   :  { %v284_v15 = vmul.f32 %v282_v14, %v263_v63 }
 0x186   :  { %2308 = vmatmul.msk.f32.vlgmr.msra.gmra.mxu1 %vm3331_vm14, %v284_v15 }
 0x203   :  { %v315_v22 = vpop.f32.mrf.mxu1 }
 0x204   :  { %v2780_v34 = vadd.f32 %v315_v22, %v293_v33 }
 0x206   :  { %v2786_v37 = vadd.f32 %v2782_v36, %v2780_v34 }
 0x208   :  { %2313 = vmatmul.msk.f32.vlgmr.msrb.gmra.mxu2 %vm3330_vm1, %v2786_v37 }
 0x28b   :  { %v466_v44 = vpop.f32.mrf.mxu2 }
 0x28c   :  { %v469_v45 = vadd.f32 %v466_v44, %v440_v43  ;;  %v586_v43 = vld [vmem:[#allocation5 + $0x30] sm:$0xff]  ;;  %v588_v44 = vld [vmem:[#allocation5 + $0x40] sm:$0xff] }
 0x28d   :  { %617 = vmatpush.msra.mxu0 %v586_v43  ;;  %657 = vmatpush.msra.mxu2 %v588_v44 }
 0x28e   :  { %v471_v48 = vadd.f32 %v470_v17, %v469_v45  ;;  %v584_v17 = vld [vmem:[#allocation5 + $0x20] sm:$0xff]  ;;  %v583_v45 = vld [vmem:[#allocation5 + $0x18] sm:$0xff] }
 0x28f   :  { %638 = vmatpush.msrb.mxu1 %v584_v17  ;;  %618 = vmatpush.msra.mxu0 %v583_v45 }
 0x290   :  { %2314 = vmatmul.msk.f32.vlgmr.msrb.gmra.mxu3 %vm3330_vm1, %v471_v48 }
 0x313   :  { %v497_v51 = vpop.f32.mrf.mxu3 }
 0x314   :  { %v498_v0 = vadd.f32 %v497_v51, %v476_v50  ;;  %v581_v50 = vld [vmem:[#allocation5 + $0x8] sm:$0xff]  ;;  %v580_v51 = vld [vmem:[#allocation5] sm:$0xff] }
 0x315   :  { %639 = vmatpush.msrb.mxu1 %v581_v50  ;;  %619 = vmatpush.msra.mxu0 %v580_v51 }
 0x316   :  { %v502_v52 = vsel %vm3330_vm1, %v498_v0, 0.0 }
 0x317   :  { %503 = vadd.xlane.f32.xlu1 %v502_v52 }
 0x38a   :  { %v504_v59 = vpop.xlane.xlu1 %503 }
 0x38b   :  { %v512_v60 = vmul.f32 %v2792_v57, %v504_v59 }
 0x38d   :  { %v513_v61 = vsub.f32 %v498_v0, %v512_v60  ;;  %v582_v0 = vld [vmem:[#allocation5 + $0x10] sm:$0xff] }
 0x38f   :  { %v514_v13 = vmul.f32 %v513_v61, %v513_v61 }
 0x391   :  { %v515_v62 = vsel %vm3330_vm1, %v514_v13, 0.0 }
 0x392   :  { %516 = vadd.xlane.f32.xlu2 %v515_v62 }
 0x405   :  { %v517_v63 = vpop.xlane.xlu2 %516 }
 0x406   :  { %v518_v25 = vmul.f32 %v517_v63, %v2792_v57  ;;  %v555_v63 = vld [vmem:[#allocation7 + $0x1c] ss:$0 sm:$0xff] }
 0x408   :  { %v519_v1 = vadd.f32 1e-05, %v518_v25 }
 0x40a   :  { %2465 = vrsqrt.f32 %v519_v1  ;;  %vm526_vm4 = vweird.f32 %v519_v1 }
 0x410   :  { %v2466_v2 = vpop.eup %2465 }
 0x411   :  { %v521_v3 = vmul.f32 %v2466_v2, %v519_v1  ;;  %vm527_vm3 = vweird.f32 %v2466_v2 }
 0x412   :  { %vm528_vm5 = vmor %vm526_vm4, %vm527_vm3 }
 0x413   :  { %v522_v4 = vmul.f32 %v2466_v2, %v521_v3 }
 0x415   :  { %v523_v5 = vmul.f32 0.5, %v522_v4  ;;  %v2810_v4 = vld [vmem:[#allocation7 + $0x1d] ss:$8 sm:$0x7] }
 0x416   :  { %v595_v45 = vperm.slane %v2810_v4, 0 }
 0x417   :  { %v524_v47 = vsub.f32 1.5, %v523_v5  ;;  %v596_v5 = vperm.slane %v2810_v4, 1 }
 0x419   :  { %v525_v6 = vmul.f32 %v2466_v2, %v524_v47 }
 0x41b   :  { %v529_v7 = vsel %vm528_vm5, %v2466_v2, %v525_v6  ;;  %v665_v2 = vlaneseq }
 0x41c   :  { %v530_v9 = vmul.f32 %v529_v7, %v513_v61  ;;  %v554_v61 = vld [vmem:[#allocation7 + $0x1b] ss:$0 sm:$0xff]  ;;  %v2637_v7 = vmov 0.0  }
 0x41d   :  { %v2808_v3 = vand.u32 127, %v665_v2  ;;  %v821_v2 = vld [vmem:[#allocation2 + $0x108] sm:$0xff] }
 0x41e   :  { %v531_v11 = vmul.f32 %v530_v9, %v500_v8 }
 0x41f   :  { %vm702_vm13 = vcmp.ge.s32.totalorder %v2808_v3, 28  ;;  %vm3328_vm15 = vcmp.lt.s32.totalorder %v2808_v3, 32  ;;  %vm697_vm2 = vcmp.ge.s32.totalorder %v2808_v3, 24  ;;  %vm698_vm3 = vcmp.lt.s32.totalorder %v2808_v3, 28 }
 0x420   :  { %v532_v12 = vadd.f32 %v531_v11, %v501_v10  ;;  %vm2817_vm0 = vmand %vm702_vm13, %vm3328_vm15  ;;  %vm692_vm5 = vcmp.ge.s32.totalorder %v2808_v3, 20  ;;  %v852_v10 = vld [vmem:[#allocation2 + $0x130] sm:$0xff] }
 0x421   :  { %v2326_v8 = vsel %vm2817_vm0, 1.0, %v2637_v7  ;;  %vm2828_vm4 = vmand %vm697_vm2, %vm698_vm3  ;;  %vm677_vm3 = vcmp.ge.s32.totalorder %v2808_v3, 8 }
 0x422   :  { %v2315_v14 = vmul.f32 -1.442695, %v532_v12 }
 0x424   :  { %2467 = vpow2.f32 %v2315_v14  ;;  %v2325_v14 = vsel %vm2828_vm4, 1.0, %v2637_v7 }
 0x42a   :  { %v2468_v15 = vpop.eup %2467 }
 0x42b   :  { %v536_v16 = vadd.f32 1.0, %v2468_v15  ;;  %v911_v15 = vld [vmem:[#allocation2 + $0x190] sm:$0xff] }
 0x42d   :  { %2469 = vrcp.f32 %v536_v16  ;;  %v548_v21 = vand.u32 2147483648, %v536_v16  ;;  %v546_v58 = vand.u32 2147483647, %v536_v16  ;;  %vm542_vm7 = vweird.f32 %v536_v16 }
 0x42f   :  { %v549_v26 = vor.u32 1.1754944e-38, %v548_v21  ;;  %vm547_vm9 = vcmp.eq.f32.partialorder %v546_v58, 8.507059e+37 }
 0x433   :  { %v2470_v18 = vpop.eup %2469 }
 0x434   :  { %v538_v19 = vmul.f32 %v2470_v18, %v536_v16  ;;  %vm543_vm6 = vweird.f32 %v2470_v18 }
 0x435   :  { %vm544_vm8 = vmor %vm542_vm7, %vm543_vm6  ;;  %vm693_vm6 = vcmp.lt.s32.totalorder %v2808_v3, 24 }
 0x436   :  { %v539_v20 = vsub.f32 1.0, %v538_v19  ;;  %vm2841_vm7 = vmand %vm692_vm5, %vm693_vm6  ;;  %vm678_vm5 = vcmp.lt.s32.totalorder %v2808_v3, 12 }
 0x438   :  { %v540_v23 = vmul.f32 %v2470_v18, %v539_v20  ;;  %v2324_v20 = vsel %vm2841_vm7, 1.0, %v2637_v7 }
 0x43a   :  { %v541_v24 = vadd.f32 %v2470_v18, %v540_v23 }
 0x43c   :  { %v545_v27 = vsel %vm544_vm8, %v2470_v18, %v541_v24  ;;  %vm3324_vm8 = vcmp.ge.s32.totalorder %v2808_v3, 16 }
 0x43d   :  { %v550_v28 = vsel %vm547_vm9, %v549_v26, %v545_v27  ;;  %vm688_vm9 = vcmp.lt.s32.totalorder %v2808_v3, 20  ;;  %v855_v27 = vld [vmem:[#allocation7 + $0x1f] ss:$0 sm:$0xff] }
 0x43e   :  { %v552_v29 = vmul.f32 %v550_v28, %v532_v12  ;;  %v597_v12 = vperm.slane %v2810_v4, 2  ;;  %v854_v4 = vld [vmem:[#allocation2 + $0x140] sm:$0xff] }
 0x440   :  { %v2797_v30 = vadd.f32 %v552_v29, %v471_v48  ;;  %v585_v48 = vld [vmem:[#allocation5 + $0x28] sm:$0xff] }
 0x441   :  { %658 = vmatpush.msra.mxu2 %v585_v48 }
 0x442   :  { %v556_v31 = vsel %vm3330_vm1, %v2797_v30, 0.0 }
 0x443   :  { %557 = vadd.xlane.f32.xlu2 %v556_v31  ;;  %659 = vmatpush.msra.mxu2 %v582_v0 }
 0x4b6   :  { %v558_v32 = vpop.xlane.xlu2 %557 }
 0x4b7   :  { %v559_v33 = vmul.f32 %v558_v32, %v2792_v57 }
 0x4b9   :  { %v560_v35 = vsub.f32 %v2797_v30, %v559_v33 }
 0x4bb   :  { %v561_v22 = vmul.f32 %v560_v35, %v560_v35 }
 0x4bd   :  { %v562_v38 = vsel %vm3330_vm1, %v561_v22, 0.0 }
 0x4be   :  { %563 = vadd.xlane.f32.xlu0 %v562_v38 }
 0x531   :  { %v564_v52 = vpop.xlane.xlu0 %563 }
 0x532   :  { %v565_v53 = vmul.f32 %v564_v52, %v2792_v57 }
 0x534   :  { %v566_v54 = vadd.f32 1e-05, %v565_v53  ;;  %v2638_v53 = vmov 1.0  }
 0x535   :  { %2337 = vmatpush.msk.msra.mxu1 %vm2817_vm0, %v2638_v53 }
 0x536   :  { %2471 = vrsqrt.f32 %v566_v54  ;;  %vm573_vm11 = vweird.f32 %v566_v54 }
 0x537   :  { %2338 = vmatpush.msk.msra.mxu1 %vm2828_vm4, %v2638_v53 }
 0x539   :  { %2339 = vmatpush.msk.msra.mxu1 %vm2841_vm7, %v2638_v53 }
 0x53c   :  { %v2472_v55 = vpop.eup %2471 }
 0x53d   :  { %v568_v56 = vmul.f32 %v2472_v55, %v566_v54  ;;  %vm574_vm10 = vweird.f32 %v2472_v55 }
 0x53e   :  { %vm575_vm12 = vmor %vm573_vm11, %vm574_vm10  ;;  %vm682_vm11 = vcmp.ge.s32.totalorder %v2808_v3, 12 }
 0x53f   :  { %v569_v46 = vmul.f32 %v2472_v55, %v568_v56  ;;  %vm2853_vm10 = vmand %vm3324_vm8, %vm688_vm9  ;;  %vm672_vm9 = vcmp.ge.s32.totalorder %v2808_v3, 4  ;;  %vm3329_vm8 = vcmp.lt.s32.totalorder %v2808_v3, 8  ;;  %v882_v56 = vld [vmem:[#allocation2 + $0x160] sm:$0xff] }
 0x540   :  { %v2323_v26 = vsel %vm2853_vm10, 1.0, %v2637_v7  ;;  %2340 = vmatpush.msk.msra.mxu1 %vm2853_vm10, %v2638_v53 }
 0x541   :  { %v570_v49 = vmul.f32 0.5, %v569_v46  ;;  %v881_v46 = vld [vmem:[#allocation2 + $0x158] sm:$0xff] }
 0x543   :  { %v571_v59 = vsub.f32 1.5, %v570_v49  ;;  %v880_v49 = vld [vmem:[#allocation2 + $0x150] sm:$0xff] }
 0x545   :  { %v572_v60 = vmul.f32 %v2472_v55, %v571_v59  ;;  %v879_v59 = vld [vmem:[#allocation2 + $0x148] sm:$0xff] }
 0x547   :  { %v576_v13 = vsel %vm575_vm12, %v2472_v55, %v572_v60  ;;  %vm3325_vm12 = vcmp.lt.s32.totalorder %v2808_v3, 16 }
 0x548   :  { %v577_v62 = vmul.f32 %v576_v13, %v560_v35  ;;  %vm2865_vm13 = vmand %vm682_vm11, %vm3325_vm12 }
 0x549   :  { %v2322_v32 = vsel %vm2865_vm13, 1.0, %v2637_v7  ;;  %vm2878_vm11 = vmand %vm677_vm3, %vm678_vm5  ;;  %vm668_vm5 = vcmp.lt.s32.totalorder %v2808_v3, 4  ;;  %2341 = vmatpush.msk.msra.mxu1 %vm2865_vm13, %v2638_v53 }
 0x54a   :  { %v578_v25 = vmul.f32 %v577_v62, %v554_v61  ;;  %vm2885_vm12 = vmand %vm672_vm9, %vm3329_vm8  ;;  %v2321_v39 = vsel %vm2878_vm11, 1.0, %v2637_v7  ;;  %v2319_v44 = vsel %vm668_vm5, 1.0, %v2637_v7 }
 0x54b   :  { %v2320_v41 = vsel %vm2885_vm12, 1.0, %v2637_v7  ;;  %2342 = vmatpush.msk.msra.mxu1 %vm2878_vm11, %v2638_v53 }
 0x54c   :  { %v579_v1 = vadd.f32 %v578_v25, %v555_v63  ;;  %v824_v63 = vld [vmem:[#allocation2 + $0x120] sm:$0xff]  ;;  %v823_v25 = vld [vmem:[#allocation2 + $0x118] sm:$0xff] }
 0x54d   :  { %2343 = vmatpush.msk.msra.mxu1 %vm2885_vm12, %v2638_v53  ;;  %840 = vmatpush.msrb.mxu2 %v824_v63  ;;  %v938_v63 = vld [vmem:[#allocation7 + $0x32] ss:$0 sm:$0xff] }
 0x54e   :  { %2316 = vmatmul.msk.f32.vlgmr.msra.gmra.mxu0 %vm3330_vm1, %v579_v1  ;;  %2317 = vmatmul.msk.f32.vlgmr.msrb.gmra.mxu1 %vm3330_vm1, %v579_v1 }
 0x54f   :  { %2318 = vmatmul.msk.f32.vlgmr.msra.gmra.mxu2 %vm3330_vm1, %v579_v1  ;;  %2344 = vmatpush.msk.msra.mxu1 %vm668_vm5, %v2638_v53  ;;  %v822_v1 = vld [vmem:[#allocation2 + $0x110] sm:$0xff] }
 0x550   :  { %841 = vmatpush.msrb.mxu2 %v823_v25 }
 0x552   :  { %842 = vmatpush.msrb.mxu2 %v822_v1  ;;  %v939_v1 = vld [vmem:[#allocation7 + $0x33] ss:$0 sm:$0xff] }
 0x554   :  { %843 = vmatpush.msrb.mxu2 %v821_v2 }
 0x556   :  { %871 = vmatpush.msra.mxu2 %v854_v4 }
 0x5cb   :  { %v641_v6 = vpop.f32.mrf.mxu1  ;;  %v621_v48 = vpop.f32.mrf.mxu0 }
 0x5cc   :  { %v642_v9 = vadd.f32 %v641_v6, %v596_v5  ;;  %v622_v51 = vadd.f32 %v621_v48, %v595_v45  ;;  %v853_v5 = vld [vmem:[#allocation2 + $0x138] sm:$0xff] }
 0x5cd   :  { %872 = vmatpush.msra.mxu2 %v853_v5 }
 0x5ce   :  { %v714_v11 = vmul.f32 %v2326_v8, %v642_v9  ;;  %v713_v18 = vmul.f32 %v2325_v14, %v642_v9  ;;  %v712_v58 = vmul.f32 %v2324_v20, %v642_v9  ;;  %v711_v29 = vmul.f32 %v2323_v26, %v642_v9 }
 0x5cf   :  { %v710_v38 = vmul.f32 %v2322_v32, %v642_v9  ;;  %v709_v43 = vmul.f32 %v2321_v39, %v642_v9  ;;  %v708_v50 = vmul.f32 %v2320_v41, %v642_v9  ;;  %v707_v0 = vmul.f32 %v2319_v44, %v642_v9  ;;  %873 = vmatpush.msra.mxu2 %v852_v10 }
 0x5d0   :  { %2327 = vmatpush.xpose.msk.msra.mxu3 %vm3330_vm1, %v714_v11  ;;  %v664_v52 = vmul.f32 0.5, %v622_v51  ;;  %v851_v11 = vld [vmem:[#allocation2 + $0x128] sm:$0xff] }
 0x5d1   :  { %874 = vmatpush.msra.mxu2 %v851_v11 }
 0x5d2   :  { %v661_v16 = vpop.f32.mrf.mxu2 }
 0x5d3   :  { %v662_v19 = vadd.f32 %v661_v16, %v597_v12  ;;  %v913_v12 = vld [vmem:[#allocation2 + $0x1a0] sm:$0xff]  ;;  %v910_v16 = vld [vmem:[#allocation2 + $0x188] sm:$0xff] }
 0x5d4   :  { %2328 = vmatpush.xpose.msk.msra.mxu3 %vm3330_vm1, %v713_v18  ;;  %926 = vmatpush.msrb.mxu1 %v913_v12 }
 0x5d5   :  { %v722_v23 = vmul.f32 %v2326_v8, %v662_v19  ;;  %v721_v24 = vmul.f32 %v2325_v14, %v662_v19  ;;  %v720_v28 = vmul.f32 %v2324_v20, %v662_v19  ;;  %v719_v31 = vmul.f32 %v2323_v26, %v662_v19  ;;  %v912_v14 = vld [vmem:[#allocation2 + $0x198] sm:$0xff]  ;;  %v906_v26 = vld [vmem:[#allocation2 + $0x168] sm:$0xff] }
 0x5d6   :  { %v718_v35 = vmul.f32 %v2322_v32, %v662_v19  ;;  %v717_v40 = vmul.f32 %v2321_v39, %v662_v19  ;;  %v716_v42 = vmul.f32 %v2320_v41, %v662_v19  ;;  %v715_v17 = vmul.f32 %v2319_v44, %v662_v19  ;;  %927 = vmatpush.msrb.mxu1 %v912_v14  ;;  %v849_v19 = vld [vmem:[#allocation7 + $0x1e] ss:$0 sm:$0xff]  ;;  %v904_v32 = vld [vmem:[#allocation7 + $0x30] ss:$0 sm:$0xff] }
 0x5d7   :  { %787 = vmatpush.msrb.mxu0 %v722_v23  ;;  %v909_v23 = vld [vmem:[#allocation2 + $0x180] sm:$0xff] }
 0x5d8   :  { %2329 = vmatpush.xpose.msk.msra.mxu3 %vm3330_vm1, %v712_v58  ;;  %928 = vmatpush.msrb.mxu1 %v911_v15  ;;  %v908_v58 = vld [vmem:[#allocation2 + $0x178] sm:$0xff] }
 0x5d9   :  { %788 = vmatpush.msrb.mxu0 %v721_v24  ;;  %v907_v24 = vld [vmem:[#allocation2 + $0x170] sm:$0xff] }
 0x5da   :  { %929 = vmatpush.msrb.mxu1 %v910_v16 }
 0x5db   :  { %789 = vmatpush.msrb.mxu0 %v720_v28 }
 0x5dc   :  { %2330 = vmatpush.xpose.msk.msra.mxu3 %vm3330_vm1, %v711_v29  ;;  %930 = vmatpush.msrb.mxu1 %v909_v23 }
 0x5dd   :  { %790 = vmatpush.msrb.mxu0 %v719_v31 }
 0x5de   :  { %931 = vmatpush.msrb.mxu1 %v908_v58 }
 0x5df   :  { %791 = vmatpush.msrb.mxu0 %v718_v35 }
 0x5e0   :  { %2331 = vmatpush.xpose.msk.msra.mxu3 %vm3330_vm1, %v710_v38  ;;  %932 = vmatpush.msrb.mxu1 %v907_v24 }
 0x5e1   :  { %792 = vmatpush.msrb.mxu0 %v717_v40  ;;  %v2639_v40 = vmov 64.0  }
 0x5e2   :  { %933 = vmatpush.msrb.mxu1 %v906_v26 }
 0x5e3   :  { %793 = vmatpush.msrb.mxu0 %v716_v42 }
 0x5e4   :  { %2332 = vmatpush.xpose.msk.msra.mxu3 %vm3330_vm1, %v709_v43 }
 0x5e5   :  { %794 = vmatpush.msrb.mxu0 %v715_v17 }
 0x5e7   :  { %895 = vmatpush.msra.mxu0 %v882_v56 }
 0x5e8   :  { %2333 = vmatpush.xpose.msk.msra.mxu3 %vm3330_vm1, %v708_v50 }
 0x5e9   :  { %896 = vmatpush.msra.mxu0 %v881_v46 }
 0x5eb   :  { %897 = vmatpush.msra.mxu0 %v880_v49 }
 0x5ec   :  { %2334 = vmatpush.xpose.msk.msra.mxu3 %vm3330_vm1, %v707_v0 }
 0x5ed   :  { %898 = vmatpush.msra.mxu0 %v879_v59 }
 0x5ef   :  { %2335 = vmatmul.msk.f32.vlgmr.msra.gmra.mxu3 %vm3330_vm1, %v664_v52 }
 0x672   :  { %v767_v54 = vpop.f32.mrf.mxu3 }
 0x673   :  { %v770_v55 = vsel %vm3331_vm14, %v767_v54, -inf }
 0x674   :  { %771 = vmax.xlane.f32.xlu2 %v770_v55 }
 0x6e7   :  { %v772_v60 = vpop.xlane.xlu2 %771 }
 0x6e8   :  { %v773_v61 = vsub.f32 %v767_v54, %v772_v60 }
 0x6ea   :  { %v774_v13 = vmul.f32 1.442695, %v773_v61 }
 0x6ec   :  { %2473 = vpow2.f32 %v774_v13 }
 0x6f2   :  { %v2474_v62 = vpop.eup %2473 }
 0x6f3   :  { %2336 = vmatmul.msk.f32.vlgmr.msrb.gmra.mxu0 %vm3331_vm14, %v2474_v62  ;;  %2345 = vmatmul.msk.f32.vlgmr.msra.gmra.mxu1 %vm3331_vm14, %v2474_v62 }
 0x6fb   :  { %2348 = vmatmul.msk.f32.vlgmr.msra.gmra.mxu0 %vm3330_vm1, %v2786_v37 }
 0x770   :  { %v816_v47 = vpop.f32.mrf.mxu1  ;;  %v796_v8 = vpop.f32.mrf.mxu0 }
 0x771   :  { %2475 = vrcp.f32 %v816_v47 }
 0x772   :  { %2477 = vrcp.f32 %v2639_v40  ;;  %v1030_v40 = vld [vmem:[#allocation5 + $0xc0] sm:$0xff] }
 0x777   :  { %v2476_v6 = vpop.eup %2475 }
 0x778   :  { %v820_v9 = vmul.f32 %v2476_v6, %v796_v8  ;;  %v900_v31 = vpop.f32.mrf.mxu0  ;;  %v2478_v41 = vpop.eup %2477 }
 0x779   :  { %v944_v42 = vmul.f32 64.0, %v2478_v41  ;;  %vm948_vm0 = vweird.f32 %v2478_v41 }
 0x77a   :  { %2346 = vmatmul.msk.f32.vlgmr.msrb.gmra.mxu2 %vm3330_vm1, %v820_v9 }
 0x77b   :  { %v945_v43 = vsub.f32 1.0, %v944_v42  ;;  %v1032_v42 = vld [vmem:[#allocation5 + $0xd0] sm:$0xff] }
 0x77d   :  { %v946_v44 = vmul.f32 %v2478_v41, %v945_v43  ;;  %v1027_v43 = vld [vmem:[#allocation5 + $0xa8] sm:$0xff] }
 0x77f   :  { %v947_v17 = vadd.f32 %v2478_v41, %v946_v44  ;;  %v1028_v44 = vld [vmem:[#allocation5 + $0xb0] sm:$0xff] }
 0x781   :  { %v2939_v45 = vsel %vm948_vm0, %v2478_v41, %v947_v17  ;;  %v1031_v41 = vld [vmem:[#allocation5 + $0xc8] sm:$0xff]  ;;  %v1029_v17 = vld [vmem:[#allocation5 + $0xb8] sm:$0xff] }
 0x7fd   :  { %v845_v18 = vpop.f32.mrf.mxu2 }
 0x7fe   :  { %v848_v20 = vadd.f32 %v845_v18, %v2797_v30  ;;  %v914_v30 = vld [vmem:[#allocation7 + $0x31] ss:$0 sm:$0xff] }
 0x800   :  { %v850_v21 = vadd.f32 %v849_v19, %v848_v20 }
 0x802   :  { %2347 = vmatmul.msk.f32.vlgmr.msra.gmra.mxu2 %vm3330_vm1, %v850_v21 }
 0x885   :  { %v876_v28 = vpop.f32.mrf.mxu2 }
 0x886   :  { %v877_v29 = vadd.f32 %v876_v28, %v855_v27 }
 0x888   :  { %v903_v33 = vadd.f32 %v900_v31, %v877_v29  ;;  %v1039_v29 = vld [vmem:[#allocation5 + $0x108] sm:$0xff]  ;;  %v1040_v31 = vld [vmem:[#allocation5 + $0x110] sm:$0xff] }
 0x889   :  { %1062 = vmatpush.msrb.mxu2 %v1039_v29  ;;  %1082 = vmatpush.msrb.mxu0 %v1040_v31 }
 0x88a   :  { %v905_v35 = vadd.f32 %v904_v32, %v903_v33  ;;  %v1041_v32 = vld [vmem:[#allocation5 + $0x118] sm:$0xff]  ;;  %v1036_v33 = vld [vmem:[#allocation5 + $0xf0] sm:$0xff] }
 0x88b   :  { %1102 = vmatpush.msrb.mxu3 %v1041_v32  ;;  %1063 = vmatpush.msrb.mxu2 %v1036_v33 }
 0x88c   :  { %2349 = vmatmul.msk.f32.vlgmr.msrb.gmra.mxu1 %vm3331_vm14, %v905_v35 }
 0x909   :  { %v935_v22 = vpop.f32.mrf.mxu1 }
 0x90a   :  { %v936_v38 = vadd.f32 %v935_v22, %v914_v30  ;;  %v1038_v30 = vld [vmem:[#allocation5 + $0x100] sm:$0xff]  ;;  %v1033_v22 = vld [vmem:[#allocation5 + $0xd8] sm:$0xff] }
 0x90b   :  { %1103 = vmatpush.msrb.mxu3 %v1038_v30  ;;  %1064 = vmatpush.msrb.mxu2 %v1033_v22 }
 0x90c   :  { %v940_v39 = vsel %vm3331_vm14, %v936_v38, 0.0 }
 0x90d   :  { %941 = vadd.xlane.f32.xlu2 %v940_v39  ;;  %v1035_v39 = vld [vmem:[#allocation5 + $0xe8] sm:$0xff]  ;;  %1065 = vmatpush.msrb.mxu2 %v1030_v40 }
 0x90e   :  { %1104 = vmatpush.msrb.mxu3 %v1035_v39 }
 0x90f   :  { %1066 = vmatpush.msrb.mxu2 %v1027_v43 }
 0x910   :  { %1105 = vmatpush.msrb.mxu3 %v1032_v42 }
 0x912   :  { %1106 = vmatpush.msrb.mxu3 %v1029_v17 }
 0x980   :  { %v942_v48 = vpop.xlane.xlu2 %941 }
 0x981   :  { %v950_v50 = vmul.f32 %v2939_v45, %v942_v48  ;;  %v1024_v48 = vld [vmem:[#allocation5 + $0x90] sm:$0xff] }
 0x982   :  { %1067 = vmatpush.msrb.mxu2 %v1024_v48 }
 0x983   :  { %v951_v51 = vsub.f32 %v936_v38, %v950_v50  ;;  %v1034_v38 = vld [vmem:[#allocation5 + $0xe0] sm:$0xff]  ;;  %v1025_v50 = vld [vmem:[#allocation5 + $0x98] sm:$0xff] }
 0x985   :  { %v952_v0 = vmul.f32 %v951_v51, %v951_v51 }
 0x987   :  { %v953_v52 = vsel %vm3331_vm14, %v952_v0, 0.0  ;;  %v1021_v0 = vld [vmem:[#allocation5 + $0x78] sm:$0xff] }
 0x988   :  { %954 = vadd.xlane.f32.xlu2 %v953_v52  ;;  %v1022_v52 = vld [vmem:[#allocation5 + $0x80] sm:$0xff]  ;;  %1068 = vmatpush.msrb.mxu2 %v1021_v0  ;;  %v3096_v0 = vsel %vm3329_vm8, 1.0, %v2637_v7 }
 0x9fb   :  { %v955_v54 = vpop.xlane.xlu2 %954 }
 0x9fc   :  { %v956_v55 = vmul.f32 %v955_v54, %v2939_v45  ;;  %v1023_v54 = vld [vmem:[#allocation5 + $0x88] sm:$0xff] }
 0x9fe   :  { %v957_v56 = vadd.f32 1e-05, %v956_v55  ;;  %v1018_v55 = vld [vmem:[#allocation5 + $0x60] sm:$0xff] }
 0x9ff   :  { %1069 = vmatpush.msrb.mxu2 %v1018_v55 }
 0xa00   :  { %2479 = vrsqrt.f32 %v957_v56  ;;  %vm964_vm7 = vweird.f32 %v957_v56 }
 0xa06   :  { %v2480_v46 = vpop.eup %2479 }
 0xa07   :  { %v959_v49 = vmul.f32 %v2480_v46, %v957_v56  ;;  %vm965_vm4 = vweird.f32 %v2480_v46  ;;  %v1019_v56 = vld [vmem:[#allocation5 + $0x68] sm:$0xff] }
 0xa08   :  { %vm966_vm10 = vmor %vm964_vm7, %vm965_vm4  ;;  %vm1142_vm7 = vcmp.ge.s32.totalorder %v2808_v3, 56 }
 0xa09   :  { %v960_v59 = vmul.f32 %v2480_v46, %v959_v49 }
 0xa0b   :  { %v961_v60 = vmul.f32 0.5, %v960_v59 }
 0xa0d   :  { %v962_v61 = vsub.f32 1.5, %v961_v60 }
 0xa0f   :  { %v963_v13 = vmul.f32 %v2480_v46, %v962_v61 }
 0xa11   :  { %v967_v62 = vsel %vm966_vm10, %v2480_v46, %v963_v13  ;;  %v1020_v46 = vld [vmem:[#allocation5 + $0x70] sm:$0xff]  ;;  %vm3326_vm10 = vcmp.lt.s32.totalorder %v2808_v3, 64 }
 0xa12   :  { %v968_v25 = vmul.f32 %v967_v62, %v951_v51  ;;  %v1026_v51 = vld [vmem:[#allocation5 + $0xa0] sm:$0xff] }
 0xa13   :  { %1107 = vmatpush.msrb.mxu3 %v1026_v51 }
 0xa14   :  { %v969_v2 = vmul.f32 %v968_v25, %v938_v63 }
 0xa15   :  { %1108 = vmatpush.msrb.mxu3 %v1023_v54 }
 0xa16   :  { %v970_v4 = vadd.f32 %v969_v2, %v939_v1  ;;  %v992_v2 = vld [vmem:[#allocation7 + $0x34] ss:$0 sm:$0xff] }
 0xa17   :  { %1109 = vmatpush.msrb.mxu3 %v1020_v46 }
 0xa18   :  { %v2350_v5 = vmul.f32 -1.442695, %v970_v4 }
 0xa1a   :  { %2481 = vpow2.f32 %v2350_v5 }
 0xa20   :  { %v2482_v47 = vpop.eup %2481 }
 0xa21   :  { %v974_v6 = vadd.f32 1.0, %v2482_v47  ;;  %v993_v47 = vld [vmem:[#allocation7 + $0x35] ss:$0 sm:$0xff] }
 0xa23   :  { %2483 = vrcp.f32 %v974_v6  ;;  %v986_v11 = vand.u32 2147483648, %v974_v6  ;;  %v984_v14 = vand.u32 2147483647, %v974_v6  ;;  %vm980_vm13 = vweird.f32 %v974_v6 }
 0xa25   :  { %v987_v16 = vor.u32 1.1754944e-38, %v986_v11  ;;  %vm985_vm11 = vcmp.eq.f32.partialorder %v984_v14, 8.507059e+37 }
 0xa29   :  { %v2484_v8 = vpop.eup %2483 }
 0xa2a   :  { %v976_v9 = vmul.f32 %v2484_v8, %v974_v6  ;;  %vm981_vm12 = vweird.f32 %v2484_v8 }
 0xa2b   :  { %vm982_vm9 = vmor %vm980_vm13, %vm981_vm12  ;;  %vm3333_vm13 = vcmp.ge.s32.totalorder %v2808_v3, 48 }
 0xa2c   :  { %v977_v10 = vsub.f32 1.0, %v976_v9  ;;  %vm2964_vm12 = vmand %vm1142_vm7, %vm3326_vm10  ;;  %vm1128_vm7 = vcmp.lt.s32.totalorder %v2808_v3, 40 }
 0xa2e   :  { %v978_v12 = vmul.f32 %v2484_v8, %v977_v10 }
 0xa30   :  { %v979_v15 = vadd.f32 %v2484_v8, %v978_v12 }
 0xa32   :  { %v983_v18 = vsel %vm982_vm9, %v2484_v8, %v979_v15  ;;  %vm1138_vm9 = vcmp.lt.s32.totalorder %v2808_v3, 56 }
 0xa33   :  { %v988_v19 = vsel %vm985_vm11, %v987_v16, %v983_v18  ;;  %vm1132_vm11 = vcmp.ge.s32.totalorder %v2808_v3, 40  ;;  %v3364_v16 = vmov 0  ;;  %v1043_v18 = vld [vmem:[#allocation7 + $0x36] ss:$8 sm:$0x7] }
 0xa34   :  { %v990_v20 = vmul.f32 %v988_v19, %v970_v4  ;;  %v1046_v19 = vperm.slane %v1043_v18, 1  ;;  %v1045_v54 = vperm.slane %v1043_v18, 0 }
 0xa36   :  { %v2944_v21 = vadd.f32 %v990_v20, %v905_v35  ;;  %v1037_v35 = vld [vmem:[#allocation5 + $0xf8] sm:$0xff] }
 0xa37   :  { %1083 = vmatpush.msrb.mxu0 %v1037_v35 }
 0xa38   :  { %v994_v23 = vsel %vm3331_vm14, %v2944_v21, 0.0 }
 0xa39   :  { %995 = vadd.xlane.f32.xlu2 %v994_v23  ;;  %1084 = vmatpush.msrb.mxu0 %v1034_v38  ;;  %v3043_v23 = vsel %vm2964_vm12, 1.0, %v2637_v7 }
 0xa3b   :  { %1085 = vmatpush.msrb.mxu0 %v1031_v41 }
 0xa3d   :  { %1086 = vmatpush.msrb.mxu0 %v1028_v44 }
 0xa3f   :  { %1087 = vmatpush.msrb.mxu0 %v1025_v50 }
 0xa41   :  { %1088 = vmatpush.msrb.mxu0 %v1022_v52 }
 0xa43   :  { %1089 = vmatpush.msrb.mxu0 %v1019_v56 }
 0xa45   :  { %2372 = vmatpush.msk.msra.mxu0 %vm2964_vm12, %v2638_v53 }
 0xaac   :  { %v996_v58 = vpop.xlane.xlu2 %995 }
 0xaad   :  { %v997_v24 = vmul.f32 %v996_v58, %v2939_v45 }
 0xaaf   :  { %v2950_v26 = vsub.f32 %v2944_v21, %v997_v24 }
 0xab1   :  { %v999_v27 = vmul.f32 %v2950_v26, %v2950_v26 }
 0xab3   :  { %v1000_v28 = vsel %vm3331_vm14, %v999_v27, 0.0 }
 0xab4   :  { %1001 = vadd.xlane.f32.xlu2 %v1000_v28 }
 0xb27   :  { %v1002_v49 = vpop.xlane.xlu2 %1001 }
 0xb28   :  { %v1003_v59 = vmul.f32 %v1002_v49, %v2939_v45 }
 0xb2a   :  { %v1004_v60 = vadd.f32 1e-05, %v1003_v59 }
 0xb2c   :  { %2485 = vrsqrt.f32 %v1004_v60  ;;  %vm1011_vm0 = vweird.f32 %v1004_v60 }
 0xb32   :  { %v2486_v61 = vpop.eup %2485 }
 0xb33   :  { %v1006_v13 = vmul.f32 %v2486_v61, %v1004_v60  ;;  %vm1012_vm5 = vweird.f32 %v2486_v61 }
 0xb34   :  { %vm1013_vm4 = vmor %vm1011_vm0, %vm1012_vm5  ;;  %vm3332_vm5 = vcmp.lt.s32.totalorder %v2808_v3, 48 }
 0xb35   :  { %v1007_v62 = vmul.f32 %v2486_v61, %v1006_v13  ;;  %vm2977_vm0 = vmand %vm3333_vm13, %vm1138_vm9  ;;  %v1330_v13 = vld [vmem:[#allocation2 + $0x240] sm:$0xff] }
 0xb36   :  { %2373 = vmatpush.msk.msra.mxu0 %vm2977_vm0, %v2638_v53  ;;  %vm2988_vm10 = vmand %vm1132_vm11, %vm3332_vm5  ;;  %v3049_v27 = vsel %vm2977_vm0, 1.0, %v2637_v7  ;;  %vm1598_vm5 = vcmp.lt.s32.totalorder %v2808_v3, 80 }
 0xb37   :  { %v1008_v63 = vmul.f32 0.5, %v1007_v62  ;;  %vm3008_vm11 = vmand %vm697_vm2, %vm3328_vm15  ;;  %vm3363_vm2 = vcmp.lt.s32.totalorder %v2808_v3, 16  ;;  %v3056_v32 = vsel %vm2988_vm10, 1.0, %v2637_v7  ;;  %v1329_v62 = vld [vmem:[#allocation2 + $0x238] sm:$0xff] }
 0xb38   :  { %2374 = vmatpush.msk.msra.mxu0 %vm2988_vm10, %v2638_v53  ;;  %vm3030_vm15 = vmand %vm677_vm3, %vm3363_vm2  ;;  %v3074_v41 = vsel %vm3008_vm11, 1.0, %v2637_v7 }
 0xb39   :  { %v1009_v25 = vsub.f32 1.5, %v1008_v63  ;;  %v3365_v16 = vsel %vm3030_vm15, 4294967295, %v3364_v16  ;;  %v3089_v48 = vsel %vm3030_vm15, 1.0, %v2637_v7  ;;  %v1328_v63 = vld [vmem:[#allocation2 + $0x230] sm:$0xff] }
 0xb3b   :  { %v1010_v1 = vmul.f32 %v2486_v61, %v1009_v25  ;;  %v1327_v25 = vld [vmem:[#allocation2 + $0x228] sm:$0xff] }
 0xb3d   :  { %v1014_v4 = vsel %vm1013_vm4, %v2486_v61, %v1010_v1  ;;  %vm3327_vm4 = vcmp.ge.s32.totalorder %v2808_v3, 32  ;;  %v1268_v1 = vld [vmem:[#allocation2 + $0x1e0] sm:$0xff] }
 0xb3e   :  { %v1015_v5 = vmul.f32 %v1014_v4, %v2950_v26  ;;  %vm2997_vm9 = vmand %vm3327_vm4, %vm1128_vm7  ;;  %vm3360_vm7 = vcmp.ge.s32.totalorder %v2808_v3, 16  ;;  %v1047_v26 = vperm.slane %v1043_v18, 2  ;;  %1280 = vmatpush.msra.mxu3 %v1268_v1  ;;  %v1266_v4 = vld [vmem:[#allocation2 + $0x1d0] sm:$0xff]  ;;  %v1265_v18 = vld [vmem:[#allocation2 + $0x1c8] sm:$0xff] }
 0xb3f   :  { %2375 = vmatpush.msk.msra.mxu0 %vm2997_vm9, %v2638_v53  ;;  %vm3019_vm4 = vmand %vm3360_vm7, %vm693_vm6  ;;  %v3065_v22 = vsel %vm2997_vm9, 1.0, %v2637_v7  ;;  %v1357_v1 = vld [vmem:[#allocation2 + $0x260] sm:$0xff] }
 0xb40   :  { %v1016_v6 = vmul.f32 %v1015_v5, %v992_v2  ;;  %v3082_v44 = vsel %vm3019_vm4, 1.0, %v2637_v7  ;;  %v1267_v2 = vld [vmem:[#allocation2 + $0x1d8] sm:$0xff] }
 0xb41   :  { %2376 = vmatpush.msk.msra.mxu0 %vm3008_vm11, %v2638_v53  ;;  %1281 = vmatpush.msra.mxu3 %v1267_v2  ;;  %v1356_v2 = vld [vmem:[#allocation2 + $0x258] sm:$0xff] }
 0xb42   :  { %v1017_v8 = vadd.f32 %v1016_v6, %v993_v47 }
 0xb43   :  { %2377 = vmatpush.msk.msra.mxu0 %vm3019_vm4, %v2638_v53  ;;  %1282 = vmatpush.msra.mxu3 %v1266_v4  ;;  %v1355_v4 = vld [vmem:[#allocation2 + $0x250] sm:$0xff] }
 0xb44   :  { %2351 = vmatmul.msk.f32.vlgmr.msrb.gmra.mxu2 %vm3331_vm14, %v1017_v8  ;;  %2352 = vmatmul.msk.f32.vlgmr.msrb.gmra.mxu0 %vm3331_vm14, %v1017_v8 }
 0xb45   :  { %2353 = vmatmul.msk.f32.vlgmr.msrb.gmra.mxu3 %vm3331_vm14, %v1017_v8  ;;  %2378 = vmatpush.msk.msra.mxu0 %vm3030_vm15, %v2638_v53 }
 0xb46   :  { %1283 = vmatpush.msra.mxu3 %v1265_v18 }
 0xb47   :  { %2379 = vmatpush.msk.msra.mxu0 %vm3329_vm8, %v2638_v53  ;;  %vm1608_vm8 = vcmp.lt.s32.totalorder %v2808_v3, 112 }
 0xb49   :  { %1343 = vmatpush.msrb.mxu0 %v1330_v13 }
 0xb4b   :  { %1344 = vmatpush.msrb.mxu0 %v1329_v62  ;;  %v1293_v62 = vld [vmem:[#allocation7 + $0x37] ss:$0 sm:$0xff] }
 0xb4d   :  { %1345 = vmatpush.msrb.mxu0 %v1328_v63 }
 0xb4f   :  { %1346 = vmatpush.msrb.mxu0 %v1327_v25 }
 0xbc1   :  { %v1091_v20 = vpop.f32.mrf.mxu0 }
 0xbc2   :  { %v1092_v58 = vadd.f32 %v1091_v20, %v1046_v19  ;;  %v1264_v19 = vld [vmem:[#allocation2 + $0x1c0] sm:$0xff]  ;;  %v1263_v20 = vld [vmem:[#allocation2 + $0x1b8] sm:$0xff] }
 0xbc3   :  { %1284 = vmatpush.msra.mxu3 %v1264_v19  ;;  %v1352_v19 = vld [vmem:[#allocation7 + $0x49] ss:$0 sm:$0xff] }
 0xbc4   :  { %v1154_v24 = vmul.f32 %v3043_v23, %v1092_v58  ;;  %v1153_v29 = vmul.f32 %v3049_v27, %v1092_v58  ;;  %v1152_v35 = vmul.f32 %v3056_v32, %v1092_v58  ;;  %v1151_v39 = vmul.f32 %v3065_v22, %v1092_v58 }
 0xbc5   :  { %v1150_v43 = vmul.f32 %v3074_v41, %v1092_v58  ;;  %v1149_v51 = vmul.f32 %v3082_v44, %v1092_v58  ;;  %v1148_v56 = vmul.f32 %v3089_v48, %v1092_v58  ;;  %v1147_v49 = vmul.f32 %v3096_v0, %v1092_v58  ;;  %1285 = vmatpush.msra.mxu3 %v1263_v20  ;;  %v1262_v58 = vld [vmem:[#allocation2 + $0x1b0] sm:$0xff] }
 0xbc6   :  { %2362 = vmatpush.xpose.msk.msra.mxu1 %vm3331_vm14, %v1154_v24  ;;  %v1261_v24 = vld [vmem:[#allocation2 + $0x1a8] sm:$0xff] }
 0xbc7   :  { %v1071_v55 = vpop.f32.mrf.mxu2  ;;  %1286 = vmatpush.msra.mxu3 %v1262_v58 }
 0xbc8   :  { %v1111_v28 = vpop.f32.mrf.mxu3  ;;  %v1072_v46 = vadd.f32 %v1071_v55, %v1045_v54  ;;  %v1365_v54 = vld [vmem:[#allocation2 + $0x2a0] sm:$0xff]  ;;  %v1364_v55 = vld [vmem:[#allocation2 + $0x298] sm:$0xff] }
 0xbc9   :  { %v1112_v31 = vadd.f32 %v1111_v28, %v1047_v26  ;;  %v1302_v26 = vld [vmem:[#allocation2 + $0x220] sm:$0xff]  ;;  %v1301_v28 = vld [vmem:[#allocation2 + $0x218] sm:$0xff]  ;;  %1287 = vmatpush.msra.mxu3 %v1261_v24 }
 0xbca   :  { %2363 = vmatpush.xpose.msk.msra.mxu1 %vm3331_vm14, %v1153_v29  ;;  %v1114_v59 = vmul.f32 0.35355338, %v1072_v46  ;;  %v1300_v29 = vld [vmem:[#allocation2 + $0x210] sm:$0xff]  ;;  %v1362_v46 = vld [vmem:[#allocation2 + $0x288] sm:$0xff] }
 0xbcb   :  { %v1162_v33 = vmul.f32 %v3043_v23, %v1112_v31  ;;  %v1161_v30 = vmul.f32 %v3049_v27, %v1112_v31  ;;  %v1160_v38 = vmul.f32 %v3056_v32, %v1112_v31  ;;  %v1159_v40 = vmul.f32 %v3065_v22, %v1112_v31 }
 0xbcc   :  { %v1158_v42 = vmul.f32 %v3074_v41, %v1112_v31  ;;  %v1157_v17 = vmul.f32 %v3082_v44, %v1112_v31  ;;  %v1156_v50 = vmul.f32 %v3089_v48, %v1112_v31  ;;  %v1155_v52 = vmul.f32 %v3096_v0, %v1112_v31  ;;  %v1299_v31 = vld [vmem:[#allocation2 + $0x208] sm:$0xff] }
 0xbcd   :  { %1227 = vmatpush.msra.mxu2 %v1162_v33  ;;  %v1298_v33 = vld [vmem:[#allocation2 + $0x200] sm:$0xff] }
 0xbce   :  { %2364 = vmatpush.xpose.msk.msra.mxu1 %vm3331_vm14, %v1152_v35 }
 0xbcf   :  { %1228 = vmatpush.msra.mxu2 %v1161_v30 }
 0xbd1   :  { %1229 = vmatpush.msra.mxu2 %v1160_v38 }
 0xbd2   :  { %2365 = vmatpush.xpose.msk.msra.mxu1 %vm3331_vm14, %v1151_v39 }
 0xbd3   :  { %1230 = vmatpush.msra.mxu2 %v1159_v40  ;;  %v1297_v40 = vld [vmem:[#allocation2 + $0x1f8] sm:$0xff] }
 0xbd5   :  { %1231 = vmatpush.msra.mxu2 %v1158_v42  ;;  %v1296_v42 = vld [vmem:[#allocation2 + $0x1f0] sm:$0xff] }
 0xbd6   :  { %2366 = vmatpush.xpose.msk.msra.mxu1 %vm3331_vm14, %v1150_v43  ;;  %v1295_v43 = vld [vmem:[#allocation2 + $0x1e8] sm:$0xff] }
 0xbd7   :  { %1232 = vmatpush.msra.mxu2 %v1157_v17  ;;  %v1369_v17 = vld [vmem:[#allocation2 + $0x2c0] sm:$0xff] }
 0xbd8   :  { %1371 = vmatpush.msrb.mxu3 %v1369_v17 }
 0xbd9   :  { %1233 = vmatpush.msra.mxu2 %v1156_v50  ;;  %v1368_v50 = vld [vmem:[#allocation2 + $0x2b8] sm:$0xff] }
 0xbda   :  { %2367 = vmatpush.xpose.msk.msra.mxu1 %vm3331_vm14, %v1149_v51  ;;  %v1367_v51 = vld [vmem:[#allocation2 + $0x2b0] sm:$0xff]  ;;  %1372 = vmatpush.msrb.mxu3 %v1368_v50 }
 0xbdb   :  { %1234 = vmatpush.msra.mxu2 %v1155_v52  ;;  %v1366_v52 = vld [vmem:[#allocation2 + $0x2a8] sm:$0xff] }
 0xbdc   :  { %1373 = vmatpush.msrb.mxu3 %v1367_v51 }
 0xbdd   :  { %1315 = vmatpush.msrb.mxu2 %v1302_v26 }
 0xbde   :  { %2368 = vmatpush.xpose.msk.msra.mxu1 %vm3331_vm14, %v1148_v56  ;;  %1374 = vmatpush.msrb.mxu3 %v1366_v52  ;;  %v1363_v56 = vld [vmem:[#allocation2 + $0x290] sm:$0xff] }
 0xbdf   :  { %1316 = vmatpush.msrb.mxu2 %v1301_v28  ;;  %v2640_v28 = vmov 128.0  }
 0xbe0   :  { %1375 = vmatpush.msrb.mxu3 %v1365_v54 }
 0xbe1   :  { %1317 = vmatpush.msrb.mxu2 %v1300_v29 }
 0xbe2   :  { %2369 = vmatpush.xpose.msk.msra.mxu1 %vm3331_vm14, %v1147_v49  ;;  %1376 = vmatpush.msrb.mxu3 %v1364_v55  ;;  %v1361_v49 = vld [vmem:[#allocation2 + $0x280] sm:$0xff] }
 0xbe3   :  { %1318 = vmatpush.msrb.mxu2 %v1299_v31 }
 0xbe4   :  { %1377 = vmatpush.msrb.mxu3 %v1363_v56 }
 0xbe5   :  { %2370 = vmatmul.msk.f32.vlgmr.msra.gmra.mxu1 %vm3331_vm14, %v1114_v59  ;;  %1319 = vmatpush.msrb.mxu2 %v1298_v33  ;;  %v1360_v59 = vld [vmem:[#allocation2 + $0x278] sm:$0xff] }
 0xbe6   :  { %1378 = vmatpush.msrb.mxu3 %v1362_v46 }
 0xbe7   :  { %1320 = vmatpush.msrb.mxu2 %v1297_v40 }
 0xbe8   :  { %1379 = vmatpush.msrb.mxu3 %v1361_v49 }
 0xbe9   :  { %1321 = vmatpush.msrb.mxu2 %v1296_v42 }
 0xbea   :  { %1380 = vmatpush.msrb.mxu3 %v1360_v59 }
 0xbeb   :  { %1322 = vmatpush.msrb.mxu2 %v1295_v43 }
 0xc62   :  { %v1207_v60 = vpop.f32.mrf.mxu1 }
 0xc63   :  { %v1210_v61 = vsel %vm3331_vm14, %v1207_v60, -inf }
 0xc64   :  { %1211 = vmax.xlane.f32.xlu1 %v1210_v61  ;;  %v1358_v61 = vld [vmem:[#allocation2 + $0x268] sm:$0xff] }
 0xcd7   :  { %v1212_v5 = vpop.xlane.xlu1 %1211 }
 0xcd8   :  { %v1213_v47 = vsub.f32 %v1207_v60, %v1212_v5  ;;  %v1359_v60 = vld [vmem:[#allocation2 + $0x270] sm:$0xff]  ;;  %v1354_v5 = vld [vmem:[#allocation2 + $0x248] sm:$0xff] }
 0xcd9   :  { %1381 = vmatpush.msrb.mxu3 %v1359_v60  ;;  %v1391_v60 = vld [vmem:[#allocation7 + $0x4b] ss:$0 sm:$0xff] }
 0xcda   :  { %v1214_v6 = vmul.f32 1.442695, %v1213_v47  ;;  %v1303_v47 = vld [vmem:[#allocation7 + $0x48] ss:$0 sm:$0xff] }
 0xcdb   :  { %1382 = vmatpush.msrb.mxu3 %v1358_v61 }
 0xcdc   :  { %2487 = vpow2.f32 %v1214_v6 }
 0xcdd   :  { %1383 = vmatpush.msrb.mxu3 %v1357_v1 }
 0xcdf   :  { %1384 = vmatpush.msrb.mxu3 %v1356_v2 }
 0xce1   :  { %1385 = vmatpush.msrb.mxu3 %v1355_v4 }
 0xce2   :  { %v2488_v8 = vpop.eup %2487 }
 0xce3   :  { %2371 = vmatmul.msk.f32.vlgmr.msra.gmra.mxu2 %vm3331_vm14, %v2488_v8  ;;  %2380 = vmatmul.msk.f32.vlgmr.msra.gmra.mxu0 %vm3331_vm14, %v2488_v8 }
 0xce4   :  { %1386 = vmatpush.msrb.mxu3 %v1354_v5 }
 0xceb   :  { %2383 = vmatmul.msk.f32.vlgmr.msrb.gmra.mxu0 %vm3330_vm1, %v2786_v37  ;;  %vm3334_vm1 = vcmp.ge.s32.totalorder %v2808_v3, 112 }
 0xd60   :  { %v1256_v35 = vpop.f32.mrf.mxu0 }
 0xd61   :  { %2489 = vrcp.f32 %v1256_v35 }
 0xd62   :  { %2491 = vrcp.f32 %v2640_v28 }
 0xd66   :  { %v1236_v30 = vpop.f32.mrf.mxu2 }
 0xd67   :  { %v2490_v38 = vpop.eup %2489 }
 0xd68   :  { %v1260_v39 = vmul.f32 %v2490_v38, %v1236_v30  ;;  %v1348_v18 = vpop.f32.mrf.mxu0  ;;  %v2492_v29 = vpop.eup %2491 }
 0xd69   :  { %v1396_v31 = vmul.f32 128.0, %v2492_v29  ;;  %vm1400_vm6 = vweird.f32 %v2492_v29 }
 0xd6a   :  { %2381 = vmatmul.msk.f32.vlgmr.msra.gmra.mxu3 %vm3331_vm14, %v1260_v39 }
 0xd6b   :  { %v1397_v33 = vsub.f32 1.0, %v1396_v31  ;;  %v1513_v31 = vld [vmem:[#allocation5 + $0x290] sm:$0xff] }
 0xd6c   :  { %1544 = vmatpush.msrb.mxu1 %v1513_v31  ;;  %v1476_v31 = vld [vmem:[#allocation5 + $0x168] sm:$0xff] }
 0xd6d   :  { %v1398_v35 = vmul.f32 %v2492_v29, %v1397_v33  ;;  %v1514_v33 = vld [vmem:[#allocation5 + $0x298] sm:$0xff] }
 0xd6e   :  { %1564 = vmatpush.msra.mxu2 %v1514_v33  ;;  %v1477_v33 = vld [vmem:[#allocation5 + $0x170] sm:$0xff] }
 0xd6f   :  { %v1399_v30 = vadd.f32 %v2492_v29, %v1398_v35  ;;  %v1509_v35 = vld [vmem:[#allocation5 + $0x270] sm:$0xff] }
 0xd71   :  { %v3113_v38 = vsel %vm1400_vm6, %v2492_v29, %v1399_v30  ;;  %v1512_v29 = vld [vmem:[#allocation5 + $0x288] sm:$0xff]  ;;  %v1510_v30 = vld [vmem:[#allocation5 + $0x278] sm:$0xff] }
 0xd72   :  { %1524 = vmatpush.msra.mxu0 %v1512_v29  ;;  %1545 = vmatpush.msrb.mxu1 %v1510_v30  ;;  %v1481_v29 = vld [vmem:[#allocation5 + $0x190] sm:$0xff] }
 0xd73   :  { %v1473_v30 = vld [vmem:[#allocation5 + $0x150] sm:$0xff] }
 0xd74   :  { %1525 = vmatpush.msra.mxu0 %v1509_v35  ;;  %v1478_v35 = vld [vmem:[#allocation5 + $0x178] sm:$0xff] }
 0xded   :  { %v1289_v13 = vpop.f32.mrf.mxu3 }
 0xdee   :  { %v1292_v63 = vadd.f32 %v1289_v13, %v2944_v21  ;;  %v1370_v21 = vld [vmem:[#allocation7 + $0x4a] ss:$0 sm:$0xff]  ;;  %v1392_v13 = vld [vmem:[#allocation7 + $0x4c] ss:$0 sm:$0xff] }
 0xdf0   :  { %v1294_v25 = vadd.f32 %v1293_v62, %v1292_v63 }
 0xdf2   :  { %2382 = vmatmul.msk.f32.vlgmr.msrb.gmra.mxu2 %vm3331_vm14, %v1294_v25  ;;  %vm1602_vm14 = vcmp.ge.s32.totalorder %v2808_v3, 80 }
 0xe75   :  { %v1324_v6 = vpop.f32.mrf.mxu2 }
 0xe76   :  { %v1325_v8 = vadd.f32 %v1324_v6, %v1303_v47 }
 0xe78   :  { %v1351_v20 = vadd.f32 %v1348_v18, %v1325_v8 }
 0xe7a   :  { %v1353_v58 = vadd.f32 %v1352_v19, %v1351_v20 }
 0xe7c   :  { %1387 = vmatmul.f32.vlgmr.msrb.gmra.mxu3 %v1353_v58 }
 0xeff   :  { %v1388_v24 = vpop.f32.mrf.mxu3 }
 0xf00   :  { %v1389_v26 = vadd.f32 %v1388_v24, %v1370_v21 }
 0xf02   :  { %1393 = vadd.xlane.f32.xlu2 %v1389_v26 }
 0xf75   :  { %v1394_v39 = vpop.xlane.xlu2 %1393 }
 0xf76   :  { %v1402_v40 = vmul.f32 %v3113_v38, %v1394_v39  ;;  %v1511_v39 = vld [vmem:[#allocation5 + $0x280] sm:$0xff] }
 0xf77   :  { %1565 = vmatpush.msra.mxu2 %v1511_v39  ;;  %v1474_v39 = vld [vmem:[#allocation5 + $0x158] sm:$0xff] }
 0xf78   :  { %v1403_v42 = vsub.f32 %v1389_v26, %v1402_v40 }
 0xf7a   :  { %v1404_v43 = vmul.f32 %v1403_v42, %v1403_v42 }
 0xf7c   :  { %1405 = vadd.xlane.f32.xlu0 %v1404_v43 }
 0xfef   :  { %v1406_v17 = vpop.xlane.xlu0 %1405 }
 0xff0   :  { %v1407_v50 = vmul.f32 %v1406_v17, %v3113_v38  ;;  %v1506_v17 = vld [vmem:[#allocation5 + $0x258] sm:$0xff] }
 0xff1   :  { %1526 = vmatpush.msra.mxu0 %v1506_v17  ;;  %v1472_v17 = vld [vmem:[#allocation5 + $0x148] sm:$0xff] }
 0xff2   :  { %v1408_v51 = vadd.f32 1e-05, %v1407_v50  ;;  %v1507_v50 = vld [vmem:[#allocation5 + $0x260] sm:$0xff] }
 0xff3   :  { %1546 = vmatpush.msrb.mxu1 %v1507_v50  ;;  %v1467_v50 = vld [vmem:[#allocation5 + $0x120] sm:$0xff] }
 0xff4   :  { %2493 = vrsqrt.f32 %v1408_v51  ;;  %vm1415_vm7 = vweird.f32 %v1408_v51 }
 0xffa   :  { %v2494_v52 = vpop.eup %2493 }
 0xffb   :  { %v1410_v54 = vmul.f32 %v2494_v52, %v1408_v51  ;;  %vm1416_vm3 = vweird.f32 %v2494_v52  ;;  %v1508_v51 = vld [vmem:[#allocation5 + $0x268] sm:$0xff] }
 0xffc   :  { %vm1417_vm2 = vmor %vm1415_vm7, %vm1416_vm3  ;;  %1566 = vmatpush.msra.mxu2 %v1508_v51  ;;  %v1468_v51 = vld [vmem:[#allocation5 + $0x128] sm:$0xff] }
 0xffd   :  { %v1411_v55 = vmul.f32 %v2494_v52, %v1410_v54  ;;  %v1504_v54 = vld [vmem:[#allocation5 + $0x248] sm:$0xff] }
 0xffe   :  { %1547 = vmatpush.msrb.mxu1 %v1504_v54 }
 0xfff   :  { %v1412_v56 = vmul.f32 0.5, %v1411_v55  ;;  %v1505_v55 = vld [vmem:[#allocation5 + $0x250] sm:$0xff] }
0x1000   :  { %1567 = vmatpush.msra.mxu2 %v1505_v55 }
0x1001   :  { %v1413_v46 = vsub.f32 1.5, %v1412_v56  ;;  %v1500_v56 = vld [vmem:[#allocation5 + $0x228] sm:$0xff] }
0x1003   :  { %v1414_v49 = vmul.f32 %v2494_v52, %v1413_v46  ;;  %v1501_v46 = vld [vmem:[#allocation5 + $0x230] sm:$0xff] }
0x1004   :  { %1548 = vmatpush.msrb.mxu1 %v1501_v46 }
0x1005   :  { %v1418_v59 = vsel %vm1417_vm2, %v2494_v52, %v1414_v49  ;;  %v1503_v52 = vld [vmem:[#allocation5 + $0x240] sm:$0xff]  ;;  %v1502_v49 = vld [vmem:[#allocation5 + $0x238] sm:$0xff] }
0x1006   :  { %v1419_v61 = vmul.f32 %v1418_v59, %v1403_v42  ;;  %1527 = vmatpush.msra.mxu0 %v1503_v52  ;;  %1568 = vmatpush.msra.mxu2 %v1502_v49  ;;  %v1497_v59 = vld [vmem:[#allocation5 + $0x210] sm:$0xff] }
0x1007   :  { %v1469_v52 = vld [vmem:[#allocation5 + $0x130] sm:$0xff] }
0x1008   :  { %v1420_v62 = vmul.f32 %v1419_v61, %v1391_v60  ;;  %1528 = vmatpush.msra.mxu0 %v1500_v56  ;;  %v1498_v60 = vld [vmem:[#allocation5 + $0x218] sm:$0xff]  ;;  %v1499_v61 = vld [vmem:[#allocation5 + $0x220] sm:$0xff] }
0x1009   :  { %1549 = vmatpush.msrb.mxu1 %v1498_v60  ;;  %1569 = vmatpush.msra.mxu2 %v1499_v61 }
0x100a   :  { %v1421_v63 = vadd.f32 %v1420_v62, %v1392_v13  ;;  %1529 = vmatpush.msra.mxu0 %v1497_v59  ;;  %v1494_v13 = vld [vmem:[#allocation5 + $0x1f8] sm:$0xff]  ;;  %v1495_v62 = vld [vmem:[#allocation5 + $0x200] sm:$0xff] }
0x100b   :  { %1550 = vmatpush.msrb.mxu1 %v1495_v62 }
0x100c   :  { %v2384_v25 = vmul.f32 -1.442695, %v1421_v63  ;;  %1530 = vmatpush.msra.mxu0 %v1494_v13 }
0x100e   :  { %2495 = vpow2.f32 %v2384_v25  ;;  %v1491_v25 = vld [vmem:[#allocation5 + $0x1e0] sm:$0xff] }
0x100f   :  { %1531 = vmatpush.msra.mxu0 %v1491_v25 }
0x1014   :  { %v2496_v1 = vpop.eup %2495 }
0x1015   :  { %v1425_v2 = vadd.f32 1.0, %v2496_v1  ;;  %v1492_v1 = vld [vmem:[#allocation5 + $0x1e8] sm:$0xff] }
0x1016   :  { %1551 = vmatpush.msrb.mxu1 %v1492_v1  ;;  %v1444_v1 = vld [vmem:[#allocation7 + $0x4e] ss:$0 sm:$0xff] }
0x1017   :  { %2497 = vrcp.f32 %v1425_v2  ;;  %v1437_v6 = vand.u32 2147483648, %v1425_v2  ;;  %v1435_v18 = vand.u32 2147483647, %v1425_v2  ;;  %vm1431_vm3 = vweird.f32 %v1425_v2 }
0x1019   :  { %v1438_v20 = vor.u32 1.1754944e-38, %v1437_v6  ;;  %vm1436_vm2 = vcmp.eq.f32.partialorder %v1435_v18, 8.507059e+37  ;;  %v1485_v6 = vld [vmem:[#allocation5 + $0x1b0] sm:$0xff]  ;;  %v1487_v18 = vld [vmem:[#allocation5 + $0x1c0] sm:$0xff] }
0x101d   :  { %v2498_v4 = vpop.eup %2497 }
0x101e   :  { %v1427_v5 = vmul.f32 %v2498_v4, %v1425_v2  ;;  %vm1432_vm6 = vweird.f32 %v2498_v4  ;;  %v1493_v2 = vld [vmem:[#allocation5 + $0x1f0] sm:$0xff] }
0x101f   :  { %vm1433_vm7 = vmor %vm1431_vm3, %vm1432_vm6 }
0x1020   :  { %v1428_v47 = vsub.f32 1.0, %v1427_v5  ;;  %v1489_v5 = vld [vmem:[#allocation5 + $0x1d0] sm:$0xff] }
0x1021   :  { %1552 = vmatpush.msrb.mxu1 %v1489_v5 }
0x1022   :  { %v1429_v8 = vmul.f32 %v2498_v4, %v1428_v47  ;;  %v1490_v47 = vld [vmem:[#allocation5 + $0x1d8] sm:$0xff] }
0x1024   :  { %v1430_v19 = vadd.f32 %v2498_v4, %v1429_v8  ;;  %v1486_v8 = vld [vmem:[#allocation5 + $0x1b8] sm:$0xff] }
0x1025   :  { %1553 = vmatpush.msrb.mxu1 %v1486_v8  ;;  %v1780_v8 = vld [vmem:[#allocation2 + $0x3c8] sm:$0xff] }
0x1026   :  { %v1434_v21 = vsel %vm1433_vm7, %v2498_v4, %v1430_v19  ;;  %v1488_v4 = vld [vmem:[#allocation5 + $0x1c8] sm:$0xff]  ;;  %v1482_v19 = vld [vmem:[#allocation5 + $0x198] sm:$0xff] }
0x1027   :  { %v1439_v24 = vsel %vm1436_vm2, %v1438_v20, %v1434_v21  ;;  %1532 = vmatpush.msra.mxu0 %v1488_v4  ;;  %v1483_v20 = vld [vmem:[#allocation5 + $0x1a0] sm:$0xff]  ;;  %v1484_v21 = vld [vmem:[#allocation5 + $0x1a8] sm:$0xff]  ;;  %vm1607_vm2 = vcmp.ge.s32.totalorder %v2808_v3, 96 }
0x1028   :  { %v1441_v26 = vmul.f32 %v1439_v24, %v1421_v63  ;;  %v1496_v63 = vld [vmem:[#allocation5 + $0x208] sm:$0xff]  ;;  %1554 = vmatpush.msrb.mxu1 %v1483_v20  ;;  %v1479_v24 = vld [vmem:[#allocation5 + $0x180] sm:$0xff] }
0x1029   :  { %1570 = vmatpush.msra.mxu2 %v1496_v63  ;;  %1533 = vmatpush.msra.mxu0 %v1485_v6  ;;  %v1443_v63 = vld [vmem:[#allocation7 + $0x4d] ss:$0 sm:$0xff]  ;;  %v1782_v6 = vld [vmem:[#allocation2 + $0x3d8] sm:$0xff] }
0x102a   :  { %v3117_v28 = vadd.f32 %v1441_v26, %v1353_v58  ;;  %v1480_v26 = vld [vmem:[#allocation5 + $0x188] sm:$0xff] }
0x102b   :  { %1571 = vmatpush.msra.mxu2 %v1493_v2  ;;  %1534 = vmatpush.msra.mxu0 %v1482_v19 }
0x102c   :  { %1445 = vadd.xlane.f32.xlu1 %v3117_v28  ;;  %1555 = vmatpush.msrb.mxu1 %v1480_v26 }
0x102d   :  { %1572 = vmatpush.msra.mxu2 %v1490_v47  ;;  %1535 = vmatpush.msra.mxu0 %v1479_v24  ;;  %v1783_v47 = vld [vmem:[#allocation2 + $0x3e0] sm:$0xff] }
0x102e   :  { %1556 = vmatpush.msrb.mxu1 %v1477_v33 }
0x102f   :  { %1573 = vmatpush.msra.mxu2 %v1487_v18  ;;  %1536 = vmatpush.msra.mxu0 %v1476_v31  ;;  %v1516_v18 = vld [vmem:[#allocation7 + $0x4f] ss:$8 sm:$0x7] }
0x1030   :  { %1557 = vmatpush.msrb.mxu1 %v1474_v39  ;;  %v1519_v19 = vperm.slane %v1516_v18, 1 }
0x1031   :  { %1574 = vmatpush.msra.mxu2 %v1484_v21  ;;  %1537 = vmatpush.msra.mxu0 %v1473_v30 }
0x1033   :  { %1575 = vmatpush.msra.mxu2 %v1481_v29  ;;  %v1520_v29 = vperm.slane %v1516_v18, 2 }
0x1035   :  { %1576 = vmatpush.msra.mxu2 %v1478_v35 }
0x109f   :  { %v1446_v40 = vpop.xlane.xlu1 %1445 }
0x10a0   :  { %v1447_v42 = vmul.f32 %v1446_v40, %v3113_v38  ;;  %v1475_v40 = vld [vmem:[#allocation5 + $0x160] sm:$0xff] }
0x10a1   :  { %1577 = vmatpush.msra.mxu2 %v1475_v40 }
0x10a2   :  { %v3122_v58 = vsub.f32 %v3117_v28, %v1447_v42  ;;  %v1470_v42 = vld [vmem:[#allocation5 + $0x138] sm:$0xff] }
0x10a3   :  { %1538 = vmatpush.msra.mxu0 %v1470_v42  ;;  %1578 = vmatpush.msra.mxu2 %v1472_v17 }
0x10a4   :  { %v1449_v43 = vmul.f32 %v3122_v58, %v3122_v58 }
0x10a5   :  { %1539 = vmatpush.msra.mxu0 %v1467_v50  ;;  %1579 = vmatpush.msra.mxu2 %v1469_v52 }
0x10a6   :  { %1450 = vadd.xlane.f32.xlu2 %v1449_v43  ;;  %v1471_v43 = vld [vmem:[#allocation5 + $0x140] sm:$0xff] }
0x10a7   :  { %1558 = vmatpush.msrb.mxu1 %v1471_v43 }
0x10a9   :  { %1559 = vmatpush.msrb.mxu1 %v1468_v51 }
0x10ab   :  { %2394 = vmatpush.msk.msra.mxu1 %vm3334_vm1, %v2638_v53  ;;  %vm3373_vm1 = vcmp.ge.s32.totalorder %v2808_v3, 48 }
0x1119   :  { %v1451_v54 = vpop.xlane.xlu2 %1450 }
0x111a   :  { %v1452_v55 = vmul.f32 %v1451_v54, %v3113_v38 }
0x111c   :  { %v1453_v56 = vadd.f32 1e-05, %v1452_v55 }
0x111e   :  { %2499 = vrsqrt.f32 %v1453_v56  ;;  %vm1460_vm3 = vweird.f32 %v1453_v56 }
0x1124   :  { %v2500_v46 = vpop.eup %2499 }
0x1125   :  { %v1455_v49 = vmul.f32 %v2500_v46, %v1453_v56  ;;  %vm1461_vm6 = vweird.f32 %v2500_v46 }
0x1126   :  { %vm1462_vm7 = vmor %vm1460_vm3, %vm1461_vm6  ;;  %vm1603_vm6 = vcmp.lt.s32.totalorder %v2808_v3, 96 }
0x1127   :  { %v1456_v59 = vmul.f32 %v2500_v46, %v1455_v49  ;;  %vm3136_vm3 = vmand %vm1607_vm2, %vm1608_vm8  ;;  %vm3372_vm2 = vcmp.lt.s32.totalorder %v2808_v3, 64 }
0x1128   :  { %2395 = vmatpush.msk.msra.mxu1 %vm3136_vm3, %v2638_v53  ;;  %vm3145_vm13 = vmand %vm1602_vm14, %vm1603_vm6  ;;  %vm3377_vm6 = vcmp.ge.s32.totalorder %v2808_v3, 32  ;;  %v2391_v31 = vsel %vm3136_vm3, 1.0, %v2637_v7 }
0x1129   :  { %v1457_v60 = vmul.f32 0.5, %v1456_v59  ;;  %vm3163_vm14 = vmand %vm3373_vm1, %vm3372_vm2  ;;  %vm3380_vm1 = vcmp.lt.s32.totalorder %v2808_v3, 32  ;;  %vm3381_vm2 = vcmp.ge.s32.totalorder %v2808_v3, 16  ;;  %v2390_v39 = vsel %vm3145_vm13, 1.0, %v2637_v7 }
0x112a   :  { %2396 = vmatpush.msk.msra.mxu1 %vm3145_vm13, %v2638_v53  ;;  %vm3185_vm15 = vmand %vm3381_vm2, %vm3380_vm1  ;;  %v2388_v54 = vsel %vm3163_vm14, 1.0, %v2637_v7 }
0x112b   :  { %v1458_v61 = vsub.f32 1.5, %v1457_v60  ;;  %v2386_v59 = vsel %vm3185_vm15, 1.0, %v2637_v7 }
0x112d   :  { %v1459_v13 = vmul.f32 %v2500_v46, %v1458_v61 }
0x112f   :  { %v1463_v62 = vsel %vm1462_vm7, %v2500_v46, %v1459_v13  ;;  %vm1597_vm7 = vcmp.ge.s32.totalorder %v2808_v3, 64 }
0x1130   :  { %v1464_v25 = vmul.f32 %v1463_v62, %v3122_v58  ;;  %vm3152_vm8 = vmand %vm1597_vm7, %vm1598_vm5  ;;  %vm3376_vm5 = vcmp.lt.s32.totalorder %v2808_v3, 48 }
0x1131   :  { %2397 = vmatpush.msk.msra.mxu1 %vm3152_vm8, %v2638_v53  ;;  %vm3174_vm7 = vmand %vm3377_vm6, %vm3376_vm5  ;;  %vm3384_vm5 = vcmp.lt.s32.totalorder %v2808_v3, 16  ;;  %vm3385_vm6 = vcmp.ge.s32.totalorder %v2808_v3, 112  ;;  %v2389_v17 = vsel %vm3152_vm8, 1.0, %v2637_v7 }
0x1132   :  { %v1465_v2 = vmul.f32 %v1464_v25, %v1443_v63  ;;  %v2392_v21 = vsel %vm3385_vm6, 1.0, %v2637_v7  ;;  %v2387_v46 = vsel %vm3174_vm7, 1.0, %v2637_v7  ;;  %vm3386_vm13 = vmmov %vm3384_vm5  ;;  %v1518_v63 = vperm.slane %v1516_v18, 0  ;;  %v1719_v18 = vld [vmem:[#allocation2 + $0x340] sm:$0xff] }
0x1133   :  { %2398 = vmatpush.msk.msra.mxu1 %vm3163_vm14, %v2638_v53  ;;  %v2385_v13 = vsel %vm3386_vm13, 1.0, %v2637_v7  ;;  %v1781_v7 = vld [vmem:[#allocation2 + $0x3d0] sm:$0xff]  ;;  %1720 = vmatpush.msrb.mxu2 %v1719_v18  ;;  %vm3390_vm14 = vcmask 261120  }
0x1134   :  { %v1466_v4 = vadd.f32 %v1465_v2, %v1444_v1  ;;  %v1812_v18 = vld [vmem:[#allocation2 + $0x410] sm:$0xff] }
0x1135   :  { %2399 = vmatpush.msk.msra.mxu1 %vm3174_vm7, %v2638_v53 }
0x1136   :  { %1540 = vmatmul.f32.vlgmr.msra.gmra.mxu0 %v1466_v4  ;;  %1560 = vmatmul.f32.vlgmr.msrb.gmra.mxu1 %v1466_v4 }
0x1137   :  { %1580 = vmatmul.f32.vlgmr.msra.gmra.mxu2 %v1466_v4  ;;  %2400 = vmatpush.msk.msra.mxu1 %vm3185_vm15, %v2638_v53  ;;  %vm3387_vm15 = vcmask 523264  }
0x1138   :  { %vm3388_vm3 = vmmov %vm3387_vm15 }
0x1139   :  { %2401 = vmatpush.msk.msra.mxu1 %vm3384_vm5, %v2638_v53  ;;  %vm3389_vm8 = vmmov %vm3388_vm3 }
0x113a   :  { %vm3391_vm7 = vmmov %vm3388_vm3 }
0x113b   :  { %1796 = vmatpush.msrb.mxu1 %v1783_v47  ;;  %v1744_v47 = vld [vmem:[#allocation2 + $0x350] sm:$0xff]  ;;  %vm3392_vm1 = vmmov %vm3388_vm3 }
0x113c   :  { %vm3393_vm2 = vmmov %vm3392_vm1 }
0x113d   :  { %1797 = vmatpush.msrb.mxu1 %v1782_v6  ;;  %v1743_v6 = vld [vmem:[#allocation2 + $0x348] sm:$0xff] }
0x113f   :  { %1798 = vmatpush.msrb.mxu1 %v1781_v7  ;;  %v1814_v7 = vld [vmem:[#allocation2 + $0x420] sm:$0xff] }
0x1141   :  { %1799 = vmatpush.msrb.mxu1 %v1780_v8  ;;  %v1813_v8 = vld [vmem:[#allocation2 + $0x418] sm:$0xff] }
0x11b3   :  { %v1561_v20 = vpop.f32.mrf.mxu1  ;;  %v1541_v25 = vpop.f32.mrf.mxu0 }
0x11b4   :  { %v1562_v24 = vadd.f32 %v1561_v20, %v1519_v19  ;;  %v1542_v2 = vadd.f32 %v1541_v25, %v1518_v63  ;;  %v1718_v19 = vld [vmem:[#allocation2 + $0x338] sm:$0xff]  ;;  %v1717_v20 = vld [vmem:[#allocation2 + $0x330] sm:$0xff]  ;;  %v1747_v25 = vld [vmem:[#allocation2 + $0x368] sm:$0xff] }
0x11b5   :  { %1721 = vmatpush.msrb.mxu2 %v1718_v19  ;;  %v1748_v63 = vld [vmem:[#allocation2 + $0x370] sm:$0xff]  ;;  %v1811_v19 = vld [vmem:[#allocation2 + $0x408] sm:$0xff] }
0x11b6   :  { %v1624_v26 = vmul.f32 %v2392_v21, %v1562_v24  ;;  %v1623_v35 = vmul.f32 %v2391_v31, %v1562_v24  ;;  %v1622_v42 = vmul.f32 %v2390_v39, %v1562_v24  ;;  %v1621_v51 = vmul.f32 %v2389_v17, %v1562_v24 }
0x11b7   :  { %v1620_v56 = vmul.f32 %v2388_v54, %v1562_v24  ;;  %v1619_v61 = vmul.f32 %v2387_v46, %v1562_v24  ;;  %v1618_v1 = vmul.f32 %v2386_v59, %v1562_v24  ;;  %v1617_v4 = vmul.f32 %v2385_v13, %v1562_v24  ;;  %1722 = vmatpush.msrb.mxu2 %v1717_v20  ;;  %v1715_v24 = vld [vmem:[#allocation2 + $0x320] sm:$0xff] }
0x11b8   :  { %1641 = vmatpush.xpose.msra.mxu3 %v1624_v26  ;;  %v1584_v38 = vmul.f32 0.25, %v1542_v2  ;;  %v1714_v26 = vld [vmem:[#allocation2 + $0x318] sm:$0xff]  ;;  %v1746_v2 = vld [vmem:[#allocation2 + $0x360] sm:$0xff] }
0x11ba   :  { %v1581_v33 = vpop.f32.mrf.mxu2 }
0x11bb   :  { %v1582_v30 = vadd.f32 %v1581_v33, %v1520_v29  ;;  %v1713_v29 = vld [vmem:[#allocation2 + $0x310] sm:$0xff]  ;;  %v1712_v33 = vld [vmem:[#allocation2 + $0x308] sm:$0xff] }
0x11bc   :  { %1642 = vmatpush.xpose.msra.mxu3 %v1623_v35 }
0x11bd   :  { %v1632_v40 = vmul.f32 %v2392_v21, %v1582_v30  ;;  %v1631_v43 = vmul.f32 %v2391_v31, %v1582_v30  ;;  %v1630_v50 = vmul.f32 %v2390_v39, %v1582_v30  ;;  %v1629_v52 = vmul.f32 %v2389_v17, %v1582_v30  ;;  %v1716_v21 = vld [vmem:[#allocation2 + $0x328] sm:$0xff] }
0x11be   :  { %v1628_v55 = vmul.f32 %v2388_v54, %v1582_v30  ;;  %v1627_v49 = vmul.f32 %v2387_v46, %v1582_v30  ;;  %v1626_v60 = vmul.f32 %v2386_v59, %v1582_v30  ;;  %v1625_v62 = vmul.f32 %v2385_v13, %v1582_v30  ;;  %1723 = vmatpush.msrb.mxu2 %v1716_v21  ;;  %v1711_v30 = vld [vmem:[#allocation2 + $0x300] sm:$0xff]  ;;  %v1708_v17 = vld [vmem:[#allocation2 + $0x2e8] sm:$0xff]  ;;  %v1756_v46 = vld [vmem:[#allocation2 + $0x3b0] sm:$0xff] }
0x11bf   :  { %1670 = vmatpush.msrb.mxu0 %v1632_v40  ;;  %v1710_v40 = vld [vmem:[#allocation2 + $0x2f8] sm:$0xff]  ;;  %v1704_v54 = vld [vmem:[#allocation2 + $0x2c8] sm:$0xff]  ;;  %v1754_v59 = vld [vmem:[#allocation2 + $0x3a0] sm:$0xff] }
0x11c0   :  { %1643 = vmatpush.xpose.msra.mxu3 %v1622_v42  ;;  %1724 = vmatpush.msrb.mxu2 %v1715_v24  ;;  %v1709_v42 = vld [vmem:[#allocation2 + $0x2f0] sm:$0xff]  ;;  %v1750_v13 = vld [vmem:[#allocation2 + $0x380] sm:$0xff]  ;;  %v1741_v21 = vld [vmem:[#allocation7 + $0x60] ss:$0 sm:$0xff] }
0x11c1   :  { %1671 = vmatpush.msrb.mxu0 %v1631_v43 }
0x11c2   :  { %1725 = vmatpush.msrb.mxu2 %v1714_v26 }
0x11c3   :  { %1672 = vmatpush.msrb.mxu0 %v1630_v50  ;;  %v1707_v50 = vld [vmem:[#allocation2 + $0x2e0] sm:$0xff] }
0x11c4   :  { %1644 = vmatpush.xpose.msra.mxu3 %v1621_v51  ;;  %1726 = vmatpush.msrb.mxu2 %v1713_v29  ;;  %v1706_v51 = vld [vmem:[#allocation2 + $0x2d8] sm:$0xff]  ;;  %v1810_v29 = vld [vmem:[#allocation2 + $0x400] sm:$0xff] }
0x11c5   :  { %1673 = vmatpush.msrb.mxu0 %v1629_v52  ;;  %v1705_v52 = vld [vmem:[#allocation2 + $0x2d0] sm:$0xff] }
0x11c6   :  { %1727 = vmatpush.msrb.mxu2 %v1712_v33  ;;  %v1808_v33 = vld [vmem:[#allocation2 + $0x3f0] sm:$0xff] }
0x11c7   :  { %1674 = vmatpush.msrb.mxu0 %v1628_v55  ;;  %v1758_v55 = vld [vmem:[#allocation2 + $0x3c0] sm:$0xff] }
0x11c8   :  { %1645 = vmatpush.xpose.msra.mxu3 %v1620_v56  ;;  %1728 = vmatpush.msrb.mxu2 %v1711_v30  ;;  %v1757_v56 = vld [vmem:[#allocation2 + $0x3b8] sm:$0xff]  ;;  %v1759_v30 = vld [vmem:[#allocation7 + $0x61] ss:$0 sm:$0xff] }
0x11c9   :  { %1675 = vmatpush.msrb.mxu0 %v1627_v49  ;;  %v1755_v49 = vld [vmem:[#allocation2 + $0x3a8] sm:$0xff] }
0x11ca   :  { %1729 = vmatpush.msrb.mxu2 %v1710_v40 }
0x11cb   :  { %1676 = vmatpush.msrb.mxu0 %v1626_v60  ;;  %v1752_v60 = vld [vmem:[#allocation2 + $0x390] sm:$0xff] }
0x11cc   :  { %1646 = vmatpush.xpose.msra.mxu3 %v1619_v61  ;;  %1730 = vmatpush.msrb.mxu2 %v1709_v42  ;;  %v1751_v61 = vld [vmem:[#allocation2 + $0x388] sm:$0xff] }
0x11cd   :  { %1677 = vmatpush.msrb.mxu0 %v1625_v62  ;;  %v1749_v62 = vld [vmem:[#allocation2 + $0x378] sm:$0xff] }
0x11ce   :  { %1731 = vmatpush.msrb.mxu2 %v1708_v17 }
0x11cf   :  { %1760 = vmatpush.msra.mxu0 %v1758_v55 }
0x11d0   :  { %1647 = vmatpush.xpose.msra.mxu3 %v1618_v1  ;;  %1732 = vmatpush.msrb.mxu2 %v1707_v50 }
0x11d1   :  { %1761 = vmatpush.msra.mxu0 %v1757_v56 }
0x11d2   :  { %1733 = vmatpush.msrb.mxu2 %v1706_v51 }
0x11d3   :  { %1762 = vmatpush.msra.mxu0 %v1756_v46 }
0x11d4   :  { %1648 = vmatpush.xpose.msra.mxu3 %v1617_v4  ;;  %1734 = vmatpush.msrb.mxu2 %v1705_v52 }
0x11d5   :  { %1763 = vmatpush.msra.mxu0 %v1755_v49 }
0x11d6   :  { %1735 = vmatpush.msrb.mxu2 %v1704_v54 }
0x11d7   :  { %1649 = vmatmul.f32.vlgmr.msra.gmra.mxu3 %v1584_v38  ;;  %1764 = vmatpush.msra.mxu0 %v1754_v59 }
0x125a   :  { %v1650_v58 = vpop.f32.mrf.mxu3 }
0x125b   :  { %v1653_v5 = vsel %vm3387_vm15, %v1650_v58, -inf }
0x125c   :  { %1654 = vmax.xlane.f32.xlu0 %v1653_v5  ;;  %v1745_v5 = vld [vmem:[#allocation2 + $0x358] sm:$0xff] }
0x12cf   :  { %v1655_v31 = vpop.xlane.xlu0 %1654 }
0x12d0   :  { %v1656_v35 = vsub.f32 %v1650_v58, %v1655_v31  ;;  %v1809_v31 = vld [vmem:[#allocation2 + $0x3f8] sm:$0xff] }
0x12d2   :  { %v1657_v39 = vmul.f32 1.442695, %v1656_v35  ;;  %v1807_v35 = vld [vmem:[#allocation2 + $0x3e8] sm:$0xff] }
0x12d4   :  { %2501 = vpow2.f32 %v1657_v39 }
0x12da   :  { %v2502_v43 = vpop.eup %2501 }
0x12db   :  { %2393 = vmatmul.msk.f32.vlgmr.msrb.gmra.mxu0 %vm3388_vm3, %v2502_v43  ;;  %2402 = vmatmul.msk.f32.vlgmr.msra.gmra.mxu1 %vm3389_vm8, %v2502_v43  ;;  %v1805_v43 = vld [vmem:[#allocation7 + $0x62] ss:$0 sm:$0xff] }
0x12dc   :  { %1827 = vmatpush.msra.mxu1 %v1814_v7 }
0x12de   :  { %1828 = vmatpush.msra.mxu1 %v1813_v8 }
0x12e0   :  { %1829 = vmatpush.msra.mxu1 %v1812_v18 }
0x12e2   :  { %1830 = vmatpush.msra.mxu1 %v1811_v19 }
0x12e3   :  { %2403 = vmatmul.msk.f32.vlgmr.msrb.gmra.mxu1 %vm3390_vm14, %v2786_v37  ;;  %v1753_v37 = vld [vmem:[#allocation2 + $0x398] sm:$0xff] }
0x12e4   :  { %1765 = vmatpush.msra.mxu0 %v1753_v37  ;;  %1831 = vmatpush.msra.mxu1 %v1810_v29 }
0x12e6   :  { %1766 = vmatpush.msra.mxu0 %v1752_v60  ;;  %1832 = vmatpush.msra.mxu1 %v1809_v31 }
0x12e8   :  { %1767 = vmatpush.msra.mxu0 %v1751_v61  ;;  %1833 = vmatpush.msra.mxu1 %v1808_v33 }
0x12ea   :  { %1768 = vmatpush.msra.mxu0 %v1750_v13  ;;  %1834 = vmatpush.msra.mxu1 %v1807_v35 }
0x12ec   :  { %1769 = vmatpush.msra.mxu0 %v1749_v62 }
0x12ee   :  { %1770 = vmatpush.msra.mxu0 %v1748_v63 }
0x12f0   :  { %1771 = vmatpush.msra.mxu0 %v1747_v25 }
0x12f2   :  { %1772 = vmatpush.msra.mxu0 %v1746_v2 }
0x12f4   :  { %1773 = vmatpush.msra.mxu0 %v1745_v5  ;;  %v1840_v5 = vld [vmem:[#allocation7 + $0x65] ss:$0 sm:$0xff] }
0x12f6   :  { %1774 = vmatpush.msra.mxu0 %v1744_v47 }
0x12f8   :  { %1775 = vmatpush.msra.mxu0 %v1743_v6 }
0x1358   :  { %v1699_v1 = vpop.f32.mrf.mxu1  ;;  %v1679_v38 = vpop.f32.mrf.mxu0 }
0x1359   :  { %2503 = vrcp.f32 %v1699_v1 }
0x135f   :  { %v2504_v4 = vpop.eup %2503 }
0x1360   :  { %v1703_v58 = vmul.f32 %v2504_v4, %v1679_v38  ;;  %v1801_v42 = vpop.f32.mrf.mxu1  ;;  %v1839_v38 = vld [vmem:[#allocation7 + $0x64] ss:$0 sm:$0xff] }
0x1362   :  { %1736 = vmatmul.f32.vlgmr.msrb.gmra.mxu2 %v1703_v58 }
0x13e5   :  { %v1737_v20 = vpop.f32.mrf.mxu2 }
0x13e6   :  { %v1740_v24 = vadd.f32 %v1737_v20, %v3117_v28  ;;  %v1815_v28 = vld [vmem:[#allocation7 + $0x63] ss:$0 sm:$0xff] }
0x13e8   :  { %v1742_v26 = vadd.f32 %v1741_v21, %v1740_v24 }
0x13ea   :  { %1776 = vmatmul.f32.vlgmr.msra.gmra.mxu0 %v1742_v26 }
0x1467   :  { %v1777_v39 = vpop.f32.mrf.mxu0 }
0x1468   :  { %v1778_v40 = vadd.f32 %v1777_v39, %v1759_v30 }
0x146a   :  { %v1804_v17 = vadd.f32 %v1801_v42, %v1778_v40 }
0x146c   :  { %v1806_v50 = vadd.f32 %v1805_v43, %v1804_v17 }
0x146e   :  { %2404 = vmatmul.msk.f32.vlgmr.msra.gmra.mxu1 %vm3391_vm7, %v1806_v50  ;;  %vm3394_vm7 = vmmov %vm3392_vm1 }
0x14eb   :  { %v1836_v51 = vpop.f32.mrf.mxu1 }
0x14ec   :  { %v1837_v52 = vadd.f32 %v1836_v51, %v1815_v28 }
0x14ee   :  { %v1841_v54 = vsel %vm3392_vm1, %v1837_v52, 0.0 }
0x14ef   :  { %1842 = vadd.xlane.f32.xlu1 %v1841_v54  ;;  %v1934_v54 = vld [vmem:[#allocation5 + $0x350] sm:$0xff] }
0x14f0   :  { %1976 = vmatpush.msra.mxu2 %v1934_v54 }
0x1562   :  { %v1843_v55 = vpop.xlane.xlu1 %1842 }
0x1563   :  { %v1844_v56 = vmul.f32 %v1843_v55, %v2939_v45  ;;  %v1935_v55 = vld [vmem:[#allocation5 + $0x358] sm:$0xff] }
0x1564   :  { %1996 = vmatpush.msrb.mxu1 %v1935_v55 }
0x1565   :  { %v1845_v46 = vsub.f32 %v1837_v52, %v1844_v56  ;;  %v1930_v56 = vld [vmem:[#allocation5 + $0x330] sm:$0xff] }
0x1567   :  { %v1846_v49 = vmul.f32 %v1845_v46, %v1845_v46 }
0x1569   :  { %v1847_v59 = vsel %vm3393_vm2, %v1846_v49, 0.0  ;;  %v1927_v49 = vld [vmem:[#allocation5 + $0x318] sm:$0xff]  ;;  %vm3398_vm2 = vmmov %vm3392_vm1 }
0x156a   :  { %1848 = vadd.xlane.f32.xlu2 %v1847_v59  ;;  %v1928_v59 = vld [vmem:[#allocation5 + $0x320] sm:$0xff] }
0x15dd   :  { %v1849_v37 = vpop.xlane.xlu2 %1848 }
0x15de   :  { %v1850_v60 = vmul.f32 %v1849_v37, %v2939_v45  ;;  %v1929_v37 = vld [vmem:[#allocation5 + $0x328] sm:$0xff] }
0x15e0   :  { %v1851_v61 = vadd.f32 1e-05, %v1850_v60  ;;  %v1924_v60 = vld [vmem:[#allocation5 + $0x300] sm:$0xff] }
0x15e2   :  { %2505 = vrsqrt.f32 %v1851_v61  ;;  %vm1858_vm6 = vweird.f32 %v1851_v61 }
0x15e8   :  { %v2506_v13 = vpop.eup %2505 }
0x15e9   :  { %v1853_v62 = vmul.f32 %v2506_v13, %v1851_v61  ;;  %vm1859_vm5 = vweird.f32 %v2506_v13  ;;  %v1925_v61 = vld [vmem:[#allocation5 + $0x308] sm:$0xff] }
0x15ea   :  { %vm1860_vm13 = vmor %vm1858_vm6, %vm1859_vm5 }
0x15eb   :  { %v1854_v63 = vmul.f32 %v2506_v13, %v1853_v62  ;;  %v1921_v62 = vld [vmem:[#allocation5 + $0x2e8] sm:$0xff]  ;;  %vm3399_vm5 = vmmov %vm3392_vm1 }
0x15ec   :  { %vm3400_vm6 = vmmov %vm3392_vm1 }
0x15ed   :  { %v1855_v25 = vmul.f32 0.5, %v1854_v63  ;;  %v1922_v63 = vld [vmem:[#allocation5 + $0x2f0] sm:$0xff] }
0x15ef   :  { %v1856_v1 = vsub.f32 1.5, %v1855_v25  ;;  %v1923_v25 = vld [vmem:[#allocation5 + $0x2f8] sm:$0xff] }
0x15f1   :  { %v1857_v2 = vmul.f32 %v2506_v13, %v1856_v1  ;;  %v1918_v1 = vld [vmem:[#allocation5 + $0x2d0] sm:$0xff] }
0x15f3   :  { %v1861_v4 = vsel %vm1860_vm13, %v2506_v13, %v1857_v2  ;;  %v1926_v13 = vld [vmem:[#allocation5 + $0x310] sm:$0xff]  ;;  %v1919_v2 = vld [vmem:[#allocation5 + $0x2d8] sm:$0xff]  ;;  %vm3401_vm13 = vmmov %vm3392_vm1 }
0x15f4   :  { %v1862_v58 = vmul.f32 %v1861_v4, %v1845_v46  ;;  %v1932_v46 = vld [vmem:[#allocation5 + $0x340] sm:$0xff] }
0x15f5   :  { %1997 = vmatpush.msrb.mxu1 %v1932_v46  ;;  %v1920_v4 = vld [vmem:[#allocation5 + $0x2e0] sm:$0xff] }
0x15f6   :  { %v1863_v47 = vmul.f32 %v1862_v58, %v1839_v38  ;;  %v1915_v38 = vld [vmem:[#allocation5 + $0x2b8] sm:$0xff]  ;;  %v1916_v58 = vld [vmem:[#allocation5 + $0x2c0] sm:$0xff] }
0x15f7   :  { %1998 = vmatpush.msrb.mxu1 %v1929_v37 }
0x15f8   :  { %v1864_v6 = vadd.f32 %v1863_v47, %v1840_v5  ;;  %v1917_v5 = vld [vmem:[#allocation5 + $0x2c8] sm:$0xff]  ;;  %v1912_v47 = vld [vmem:[#allocation5 + $0x2a0] sm:$0xff] }
0x15f9   :  { %1999 = vmatpush.msrb.mxu1 %v1926_v13  ;;  %v2199_v13 = vld [vmem:[#allocation2 + $0x4d0] sm:$0xff] }
0x15fa   :  { %v2405_v7 = vmul.f32 -1.442695, %v1864_v6 }
0x15fb   :  { %2000 = vmatpush.msrb.mxu1 %v1923_v25  ;;  %v2194_v25 = vld [vmem:[#allocation2 + $0x4a8] sm:$0xff] }
0x15fc   :  { %2507 = vpow2.f32 %v2405_v7  ;;  %v1914_v7 = vld [vmem:[#allocation5 + $0x2b0] sm:$0xff] }
0x15fd   :  { %2001 = vmatpush.msrb.mxu1 %v1920_v4 }
0x15ff   :  { %2002 = vmatpush.msrb.mxu1 %v1917_v5 }
0x1601   :  { %2003 = vmatpush.msrb.mxu1 %v1914_v7  ;;  %v2128_v7 = vld [vmem:[#allocation2 + $0x450] sm:$0xff] }
0x1602   :  { %v2508_v8 = vpop.eup %2507 }
0x1603   :  { %v1868_v18 = vadd.f32 1.0, %v2508_v8 }
0x1605   :  { %2509 = vrcp.f32 %v1868_v18  ;;  %v1880_v24 = vand.u32 2147483648, %v1868_v18  ;;  %v1878_v29 = vand.u32 2147483647, %v1868_v18  ;;  %vm1874_vm3 = vweird.f32 %v1868_v18 }
0x1607   :  { %v1881_v33 = vor.u32 1.1754944e-38, %v1880_v24  ;;  %vm1879_vm14 = vcmp.eq.f32.partialorder %v1878_v29, 8.507059e+37  ;;  %v1887_v24 = vld [vmem:[#allocation7 + $0x67] ss:$0 sm:$0xff] }
0x160b   :  { %v2510_v19 = vpop.eup %2509 }
0x160c   :  { %v1870_v20 = vmul.f32 %v2510_v19, %v1868_v18  ;;  %vm1875_vm15 = vweird.f32 %v2510_v19 }
0x160d   :  { %vm1876_vm8 = vmor %vm1874_vm3, %vm1875_vm15 }
0x160e   :  { %v1871_v21 = vsub.f32 1.0, %v1870_v20  ;;  %v1886_v20 = vld [vmem:[#allocation7 + $0x66] ss:$0 sm:$0xff]  ;;  %vm3402_vm15 = vmmov %vm3392_vm1 }
0x160f   :  { %vm3403_vm3 = vmmov %vm3392_vm1 }
0x1610   :  { %v1872_v26 = vmul.f32 %v2510_v19, %v1871_v21 }
0x1612   :  { %v1873_v31 = vadd.f32 %v2510_v19, %v1872_v26 }
0x1614   :  { %v1877_v35 = vsel %vm1876_vm8, %v2510_v19, %v1873_v31  ;;  %vm3404_vm8 = vmmov %vm3392_vm1 }
0x1615   :  { %v1882_v30 = vsel %vm1879_vm14, %v1881_v33, %v1877_v35  ;;  %vm3405_vm14 = vmmov %vm3392_vm1 }
0x1616   :  { %v1884_v39 = vmul.f32 %v1882_v30, %v1864_v6  ;;  %v1913_v6 = vld [vmem:[#allocation5 + $0x2a8] sm:$0xff] }
0x1618   :  { %v3230_v40 = vadd.f32 %v1884_v39, %v1806_v50  ;;  %v1933_v50 = vld [vmem:[#allocation5 + $0x348] sm:$0xff] }
0x1619   :  { %1956 = vmatpush.msrb.mxu3 %v1933_v50 }
0x161a   :  { %v1888_v42 = vsel %vm3394_vm7, %v3230_v40, 0.0  ;;  %vm3406_vm7 = vmmov %vm3392_vm1 }
0x161b   :  { %1889 = vadd.xlane.f32.xlu0 %v1888_v42  ;;  %1957 = vmatpush.msrb.mxu3 %v1930_v56 }
0x161d   :  { %1958 = vmatpush.msrb.mxu3 %v1927_v49 }
0x161f   :  { %1959 = vmatpush.msrb.mxu3 %v1924_v60 }
0x1621   :  { %1960 = vmatpush.msrb.mxu3 %v1921_v62  ;;  %v2197_v62 = vld [vmem:[#allocation2 + $0x4c0] sm:$0xff] }
0x1623   :  { %1961 = vmatpush.msrb.mxu3 %v1918_v1 }
0x1625   :  { %1962 = vmatpush.msrb.mxu3 %v1915_v38 }
0x1627   :  { %1963 = vmatpush.msrb.mxu3 %v1912_v47  ;;  %v2130_v47 = vld [vmem:[#allocation2 + $0x460] sm:$0xff] }
0x1628   :  { %2142 = vmatpush.msra.mxu1 %v2130_v47 }
0x162f   :  { %2190 = vrot.lane.b32.xlu0 %v2782_v36, %s2641_s17  ;;  %v1931_v36 = vld [vmem:[#allocation5 + $0x338] sm:$0xff] }
0x1630   :  { %1977 = vmatpush.msra.mxu2 %v1931_v36 }
0x1632   :  { %1978 = vmatpush.msra.mxu2 %v1928_v59 }
0x1634   :  { %1979 = vmatpush.msra.mxu2 %v1925_v61  ;;  %v2200_v61 = vld [vmem:[#allocation2 + $0x4d8] sm:$0xff] }
0x1636   :  { %1980 = vmatpush.msra.mxu2 %v1922_v63  ;;  %v2196_v63 = vld [vmem:[#allocation2 + $0x4b8] sm:$0xff] }
0x1638   :  { %1981 = vmatpush.msra.mxu2 %v1919_v2 }
0x163a   :  { %1982 = vmatpush.msra.mxu2 %v1916_v58 }
0x163c   :  { %1983 = vmatpush.msra.mxu2 %v1913_v6  ;;  %v2129_v6 = vld [vmem:[#allocation2 + $0x458] sm:$0xff] }
0x163d   :  { %2143 = vmatpush.msra.mxu1 %v2129_v6 }
0x163e   :  { %2419 = vmatpush.msk.msrb.mxu2 %vm2964_vm12, %v2638_v53  ;;  %vm3395_vm12 = vnez %v3365_v16 }
0x163f   :  { %2144 = vmatpush.msra.mxu1 %v2128_v7 }
0x1640   :  { %2420 = vmatpush.msk.msrb.mxu2 %vm2977_vm0, %v2638_v53 }
0x1642   :  { %2421 = vmatpush.msk.msrb.mxu2 %vm2988_vm10, %v2638_v53  ;;  %vm3396_vm10 = vcmp.lt.s32.totalorder %v2808_v3, 8  ;;  %v1937_v3 = vld [vmem:[#allocation7 + $0x78] ss:$8 sm:$0x7] }
0x1643   :  { %v1940_v33 = vperm.slane %v1937_v3, 1  ;;  %v1939_v46 = vperm.slane %v1937_v3, 0 }
0x1644   :  { %2422 = vmatpush.msk.msrb.mxu2 %vm2997_vm9, %v2638_v53 }
0x1646   :  { %2423 = vmatpush.msk.msrb.mxu2 %vm3008_vm11, %v2638_v53 }
0x1648   :  { %2424 = vmatpush.msk.msrb.mxu2 %vm3019_vm4, %v2638_v53  ;;  %vm3397_vm4 = vmmov %vm3392_vm1 }
0x164a   :  { %2425 = vmatpush.msk.msrb.mxu2 %vm3395_vm12, %v2638_v53  ;;  %vm3407_vm12 = vmmov %vm3392_vm1 }
0x164c   :  { %2426 = vmatpush.msk.msrb.mxu2 %vm3396_vm10, %v2638_v53  ;;  %v1941_v53 = vperm.slane %v1937_v3, 2  ;;  %vm3408_vm10 = vmmov %vm3392_vm1  ;;  %v2157_v3 = vld [vmem:[#allocation2 + $0x468] sm:$0xff] }
0x168e   :  { %v1890_v43 = vpop.xlane.xlu0 %1889 }
0x168f   :  { %v1891_v17 = vmul.f32 %v1890_v43, %v2939_v45 }
0x1691   :  { %v3237_v28 = vsub.f32 %v3230_v40, %v1891_v17 }
0x1693   :  { %v1893_v51 = vmul.f32 %v3237_v28, %v3237_v28 }
0x1695   :  { %v1894_v52 = vsel %vm3392_vm1, %v1893_v51, 0.0 }
0x1696   :  { %1895 = vadd.xlane.f32.xlu1 %v1894_v52 }
0x16a1   :  { %v2191_v58 = vpop.permute.xlu0 %2190 }
0x1709   :  { %v1896_v8 = vpop.xlane.xlu1 %1895 }
0x170a   :  { %v1897_v18 = vmul.f32 %v1896_v8, %v2939_v45  ;;  %v2127_v8 = vld [vmem:[#allocation2 + $0x448] sm:$0xff] }
0x170b   :  { %2145 = vmatpush.msra.mxu1 %v2127_v8 }
0x170c   :  { %v1898_v19 = vadd.f32 1e-05, %v1897_v18  ;;  %v2126_v18 = vld [vmem:[#allocation2 + $0x440] sm:$0xff] }
0x170d   :  { %2146 = vmatpush.msra.mxu1 %v2126_v18 }
0x170e   :  { %2511 = vrsqrt.f32 %v1898_v19  ;;  %vm1905_vm9 = vweird.f32 %v1898_v19 }
0x1714   :  { %v2512_v45 = vpop.eup %2511 }
0x1715   :  { %v1900_v9 = vmul.f32 %v2512_v45, %v1898_v19  ;;  %vm1906_vm0 = vweird.f32 %v2512_v45  ;;  %v2125_v19 = vld [vmem:[#allocation2 + $0x438] sm:$0xff] }
0x1716   :  { %vm1907_vm11 = vmor %vm1905_vm9, %vm1906_vm0  ;;  %2147 = vmatpush.msra.mxu1 %v2125_v19 }
0x1717   :  { %v1901_v10 = vmul.f32 %v2512_v45, %v1900_v9  ;;  %vm3409_vm0 = vmmov %vm3392_vm1  ;;  %v2123_v9 = vld [vmem:[#allocation2 + $0x428] sm:$0xff] }
0x1718   :  { %vm3410_vm9 = vmmov %vm3409_vm0 }
0x1719   :  { %v1902_v11 = vmul.f32 0.5, %v1901_v10  ;;  %v2164_v10 = vld [vmem:[#allocation2 + $0x4a0] sm:$0xff] }
0x171b   :  { %v1903_v12 = vsub.f32 1.5, %v1902_v11  ;;  %v2163_v11 = vld [vmem:[#allocation2 + $0x498] sm:$0xff] }
0x171d   :  { %v1904_v14 = vmul.f32 %v2512_v45, %v1903_v12  ;;  %v2161_v12 = vld [vmem:[#allocation2 + $0x488] sm:$0xff] }
0x171f   :  { %v1908_v15 = vsel %vm1907_vm11, %v2512_v45, %v1904_v14  ;;  %vm3411_vm11 = vcmask 261120   ;;  %v2124_v45 = vld [vmem:[#allocation2 + $0x430] sm:$0xff]  ;;  %v2160_v14 = vld [vmem:[#allocation2 + $0x480] sm:$0xff] }
0x1720   :  { %v1909_v21 = vmul.f32 %v1908_v15, %v3237_v28  ;;  %v2193_v5 = vsel %vm3411_vm11, %v2780_v34, %v2191_v58  ;;  %2148 = vmatpush.msra.mxu1 %v2124_v45  ;;  %v2162_v34 = vld [vmem:[#allocation2 + $0x490] sm:$0xff] }
0x1722   :  { %v1910_v26 = vmul.f32 %v1909_v21, %v1886_v20  ;;  %2149 = vmatpush.msra.mxu1 %v2123_v9 }
0x1724   :  { %v1911_v16 = vadd.f32 %v1910_v26, %v1887_v24  ;;  %v2159_v26 = vld [vmem:[#allocation2 + $0x478] sm:$0xff] }
0x1726   :  { %2406 = vmatmul.msk.f32.vlgmr.msrb.gmra.mxu3 %vm3397_vm4, %v1911_v16  ;;  %2407 = vmatmul.msk.f32.vlgmr.msra.gmra.mxu2 %vm3398_vm2, %v1911_v16  ;;  %vm3412_vm4 = vmmov %vm3409_vm0 }
0x1727   :  { %2408 = vmatmul.msk.f32.vlgmr.msrb.gmra.mxu1 %vm3399_vm5, %v1911_v16  ;;  %vm3413_vm2 = vmmov %vm3409_vm0  ;;  %v2158_v16 = vld [vmem:[#allocation2 + $0x470] sm:$0xff] }
0x1728   :  { %vm3414_vm5 = vmmov %vm3409_vm0 }
0x17a4   :  { %v2005_v29 = vpop.f32.mrf.mxu1 }
0x17a5   :  { %v2006_v31 = vadd.f32 %v2005_v29, %v1941_v53  ;;  %v2155_v29 = vld [vmem:[#allocation7 + $0x79] ss:$0 sm:$0xff] }
0x17a7   :  { %v2024_v35 = vmul.f32 %v3043_v23, %v2006_v31  ;;  %v2023_v39 = vmul.f32 %v3049_v27, %v2006_v31  ;;  %v2022_v43 = vmul.f32 %v3056_v32, %v2006_v31  ;;  %v2021_v28 = vmul.f32 %v3065_v22, %v2006_v31 }
0x17a8   :  { %v2020_v51 = vmul.f32 %v3074_v41, %v2006_v31  ;;  %v2019_v50 = vmul.f32 %v3082_v44, %v2006_v31  ;;  %v2018_v54 = vmul.f32 %v3089_v48, %v2006_v31  ;;  %v2017_v55 = vmul.f32 %v3096_v0, %v2006_v31 }
0x17a9   :  { %2089 = vmatpush.msrb.mxu0 %v2024_v35  ;;  %v1985_v30 = vpop.f32.mrf.mxu2  ;;  %v2165_v35 = vld [vmem:[#allocation7 + $0x7a] ss:$0 sm:$0xff] }
0x17aa   :  { %v1986_v42 = vadd.f32 %v1985_v30, %v1940_v33 }
0x17ab   :  { %2090 = vmatpush.msrb.mxu0 %v2023_v39 }
0x17ac   :  { %v2016_v17 = vmul.f32 %v3043_v23, %v1986_v42  ;;  %v2015_v52 = vmul.f32 %v3049_v27, %v1986_v42  ;;  %v2014_v23 = vmul.f32 %v3056_v32, %v1986_v42  ;;  %v2013_v56 = vmul.f32 %v3065_v22, %v1986_v42  ;;  %v1965_v32 = vpop.f32.mrf.mxu3 }
0x17ad   :  { %2091 = vmatpush.msrb.mxu0 %v2022_v43  ;;  %v2012_v27 = vmul.f32 %v3074_v41, %v1986_v42  ;;  %v2011_v36 = vmul.f32 %v3082_v44, %v1986_v42  ;;  %v2010_v49 = vmul.f32 %v3089_v48, %v1986_v42  ;;  %v1966_v59 = vadd.f32 %v1965_v32, %v1939_v46  ;;  %v2201_v44 = vld [vmem:[#allocation2 + $0x4e0] sm:$0xff]  ;;  %v2198_v48 = vld [vmem:[#allocation2 + $0x4c8] sm:$0xff] }
0x17ae   :  { %2409 = vmatpush.xpose.msk.msra.mxu3 %vm3400_vm6, %v2016_v17  ;;  %v2009_v37 = vmul.f32 %v3096_v0, %v1986_v42  ;;  %2213 = vmatpush.msra.mxu2 %v2201_v44  ;;  %v2195_v0 = vld [vmem:[#allocation2 + $0x4b0] sm:$0xff]  ;;  %v2226_v43 = vld [vmem:[#allocation7 + $0x7b] ss:$0 sm:$0xff]  ;;  %vm3415_vm6 = vmmov %vm3411_vm11 }
0x17af   :  { %2092 = vmatpush.msrb.mxu0 %v2021_v28  ;;  %v2008_v22 = vmul.f32 0.35355338, %v1966_v59 }
0x17b0   :  { %2214 = vmatpush.msra.mxu2 %v2200_v61  ;;  %v2228_v61 = vld [vmem:[#allocation7 + $0x7c] ss:$0 sm:$0xff] }
0x17b1   :  { %2093 = vmatpush.msrb.mxu0 %v2020_v51 }
0x17b2   :  { %2410 = vmatpush.xpose.msk.msra.mxu3 %vm3401_vm13, %v2015_v52  ;;  %2215 = vmatpush.msra.mxu2 %v2199_v13  ;;  %vm3416_vm13 = vmmov %vm3415_vm6 }
0x17b3   :  { %2094 = vmatpush.msrb.mxu0 %v2019_v50 }
0x17b4   :  { %2216 = vmatpush.msra.mxu2 %v2198_v48 }
0x17b5   :  { %2095 = vmatpush.msrb.mxu0 %v2018_v54 }
0x17b6   :  { %2411 = vmatpush.xpose.msk.msra.mxu3 %vm3402_vm15, %v2014_v23  ;;  %2217 = vmatpush.msra.mxu2 %v2197_v62  ;;  %v2229_v62 = vld [vmem:[#allocation7 + $0x7d] ss:$0 sm:$0xff] }
0x17b7   :  { %2096 = vmatpush.msrb.mxu0 %v2017_v55  ;;  %v2259_v55 = vld [vmem:[#allocation2 + $0x500] sm:$0xff] }
0x17b8   :  { %2218 = vmatpush.msra.mxu2 %v2196_v63  ;;  %2276 = vmatpush.msrb.mxu1 %v2259_v55 }
0x17b9   :  { %2177 = vmatpush.msra.mxu0 %v2164_v10 }
0x17ba   :  { %2412 = vmatpush.xpose.msk.msra.mxu3 %vm3403_vm3, %v2013_v56  ;;  %2219 = vmatpush.msra.mxu2 %v2195_v0  ;;  %v2258_v56 = vld [vmem:[#allocation2 + $0x4f8] sm:$0xff] }
0x17bb   :  { %2178 = vmatpush.msra.mxu0 %v2163_v11  ;;  %2277 = vmatpush.msrb.mxu1 %v2258_v56 }
0x17bc   :  { %2220 = vmatpush.msra.mxu2 %v2194_v25 }
0x17bd   :  { %2179 = vmatpush.msra.mxu0 %v2162_v34 }
0x17be   :  { %2413 = vmatpush.xpose.msk.msra.mxu3 %vm3404_vm8, %v2012_v27  ;;  %v2257_v27 = vld [vmem:[#allocation2 + $0x4f0] sm:$0xff] }
0x17bf   :  { %2180 = vmatpush.msra.mxu0 %v2161_v12  ;;  %2278 = vmatpush.msrb.mxu1 %v2257_v27 }
0x17c1   :  { %2181 = vmatpush.msra.mxu0 %v2160_v14 }
0x17c2   :  { %2414 = vmatpush.xpose.msk.msra.mxu3 %vm3405_vm14, %v2011_v36  ;;  %v2256_v36 = vld [vmem:[#allocation2 + $0x4e8] sm:$0xff]  ;;  %vm3417_vm14 = vmmov %vm3415_vm6 }
0x17c3   :  { %2182 = vmatpush.msra.mxu0 %v2159_v26  ;;  %2279 = vmatpush.msrb.mxu1 %v2256_v36 }
0x17c5   :  { %2183 = vmatpush.msra.mxu0 %v2158_v16 }
0x17c6   :  { %2415 = vmatpush.xpose.msk.msra.mxu3 %vm3406_vm7, %v2010_v49  ;;  %vm3418_vm7 = vmmov %vm3415_vm6 }
0x17c7   :  { %2184 = vmatpush.msra.mxu0 %v2157_v3 }
0x17ca   :  { %2416 = vmatpush.xpose.msk.msra.mxu3 %vm3392_vm1, %v2009_v37 }
0x17cd   :  { %2417 = vmatmul.msk.f32.vlgmr.msra.gmra.mxu3 %vm3407_vm12, %v2008_v22 }
0x1850   :  { %v2069_v41 = vpop.f32.mrf.mxu3 }
0x1851   :  { %v2072_v60 = vsel %vm3408_vm10, %v2069_v41, -inf }
0x1852   :  { %2073 = vmax.xlane.f32.xlu2 %v2072_v60 }
0x18c5   :  { %v2074_v1 = vpop.xlane.xlu2 %2073 }
0x18c6   :  { %v2075_v2 = vsub.f32 %v2069_v41, %v2074_v1 }
0x18c8   :  { %v2076_v4 = vmul.f32 1.442695, %v2075_v2  ;;  %v2260_v2 = vld [vmem:[#allocation7 + $0x7e] ss:$0 sm:$0xff] }
0x18ca   :  { %2513 = vpow2.f32 %v2076_v4 }
0x18d0   :  { %v2514_v38 = vpop.eup %2513 }
0x18d1   :  { %2418 = vmatmul.msk.f32.vlgmr.msrb.gmra.mxu0 %vm3409_vm0, %v2514_v38  ;;  %2427 = vmatmul.msk.f32.vlgmr.msrb.gmra.mxu2 %vm3410_vm9, %v2514_v38 }
0x18d9   :  { %2430 = vmatmul.msk.f32.vlgmr.msra.gmra.mxu2 %vm3412_vm4, %v2193_v5 }
0x194e   :  { %v2098_v21 = vpop.f32.mrf.mxu0 }
0x1954   :  { %v2118_v20 = vpop.f32.mrf.mxu2 }
0x1955   :  { %2515 = vrcp.f32 %v2118_v20 }
0x195b   :  { %v2516_v15 = vpop.eup %2515 }
0x195c   :  { %v2122_v24 = vmul.f32 %v2516_v15, %v2098_v21  ;;  %v2222_v42 = vpop.f32.mrf.mxu2 }
0x195e   :  { %2428 = vmatmul.msk.f32.vlgmr.msra.gmra.mxu1 %vm3413_vm2, %v2122_v24 }
0x19db   :  { %v2151_v53 = vpop.f32.mrf.mxu1 }
0x19dc   :  { %v2154_v31 = vadd.f32 %v2151_v53, %v3230_v40 }
0x19de   :  { %v2156_v33 = vadd.f32 %v2155_v29, %v2154_v31 }
0x19e0   :  { %2429 = vmatmul.msk.f32.vlgmr.msra.gmra.mxu0 %vm3414_vm5, %v2156_v33 }
0x1a5d   :  { %v2186_v30 = vpop.f32.mrf.mxu0 }
0x1a5e   :  { %v2187_v39 = vadd.f32 %v2186_v30, %v2165_v35 }
0x1a60   :  { %v2225_v17 = vadd.f32 %v2222_v42, %v2187_v39 }
0x1a62   :  { %v2227_v28 = vadd.f32 %v2226_v43, %v2225_v17 }
0x1a64   :  { %v2230_v51 = vsel %vm3415_vm6, %v2227_v28, 0.0 }
0x1a65   :  { %2231 = vadd.xlane.f32.xlu1 %v2230_v51 }
0x1ad8   :  { %v2232_v52 = vpop.xlane.xlu1 %2231 }
0x1ad9   :  { %v2233_v50 = vmul.f32 %v2232_v52, %v2792_v57 }
0x1adb   :  { %v2234_v54 = vsub.f32 %v2227_v28, %v2233_v50 }
0x1add   :  { %v2235_v23 = vmul.f32 %v2234_v54, %v2234_v54 }
0x1adf   :  { %v2236_v40 = vsel %vm3416_vm13, %v2235_v23, 0.0 }
0x1ae0   :  { %2237 = vadd.xlane.f32.xlu2 %v2236_v40 }
0x1b53   :  { %v2238_v46 = vpop.xlane.xlu2 %2237 }
0x1b54   :  { %v2239_v32 = vmul.f32 %v2238_v46, %v2792_v57  ;;  %v2519_v57 = vld [vmem:[%s3317_s0] sm:$0xff] }
0x1b56   :  { %v2240_v49 = vadd.f32 1e-05, %v2239_v32 }
0x1b58   :  { %2517 = vrsqrt.f32 %v2240_v49  ;;  %vm2247_vm3 = vweird.f32 %v2240_v49 }
0x1b5e   :  { %v2518_v59 = vpop.eup %2517 }
0x1b5f   :  { %v2242_v37 = vmul.f32 %v2518_v59, %v2240_v49  ;;  %vm2248_vm15 = vweird.f32 %v2518_v59 }
0x1b60   :  { %vm2249_vm8 = vmor %vm2247_vm3, %vm2248_vm15 }
0x1b61   :  { %v2243_v22 = vmul.f32 %v2518_v59, %v2242_v37 }
0x1b63   :  { %v2244_v41 = vmul.f32 0.5, %v2243_v22 }
0x1b65   :  { %v2245_v60 = vsub.f32 1.5, %v2244_v41 }
0x1b67   :  { %v2246_v44 = vmul.f32 %v2518_v59, %v2245_v60 }
0x1b69   :  { %v2250_v13 = vsel %vm2249_vm8, %v2518_v59, %v2246_v44 }
0x1b6a   :  { %v2251_v48 = vmul.f32 %v2250_v13, %v2234_v54 }
0x1b6c   :  { %v2252_v63 = vmul.f32 %v2251_v48, %v2228_v61 }
0x1b6e   :  { %v2253_v0 = vadd.f32 %v2252_v63, %v2229_v62 }
0x1b70   :  { %v2254_v25 = vadd.f32 %v2519_v57, %v2253_v0 }
0x1b72   :  { %v2255_v1 = vmul.f32 0.5, %v2254_v25 }
0x1b74   :  { %2431 = vmatmul.msk.f32.vlgmr.msrb.gmra.mxu1 %vm3417_vm14, %v2255_v1 }
0x1bf1   :  { %v2281_v4 = vpop.f32.mrf.mxu1 }
0x1bf2   :  { %v2282_v38 = vadd.f32 %v2281_v4, %v2260_v2 }
0x1bf4   :  { %2284 = vst.msk [vmem:[#allocation8] sm:$0xff] %vm3418_vm7, %v2282_v38 }
0x1bf5   :  { %2295 = dma.vmem_to_hbm [thread:$0]  %s2291_s21, 128, %s2293_s24, [#allocation4]  }
0x1bf6   :  { %2620 = dma.done.wait [#allocation4], 128  }
0x1bf7   :  { %2621 = vsyncadd [#allocation4], 4294967168 }
0x1bf8   :  { %2300 = vsyncpa [#allocation3], 1 }
0x1bf9   :  { %2301 = vsyncpa [#allocation6], 1 }
0x1bfa   :  { %2302 = vsyncpa [#allocation4], 1 }

</bundles_post_ra>
